<compile_context>
chip_gen: v5e
topology: v5e:2x2
jax: 0.10.0
libtpu: 0.0.40
codegen_flags: <defaults>
</compile_context>

<pallas_src>
import jax
import jax.numpy as jnp
import numpy as np
from jax.experimental import pallas as pl
from jax.experimental.pallas import tpu as pltpu

EPS = 1e-5    # PyTorch BatchNorm2d default eps
LANE = 128    # TPU lane width: channel dims are zero-padded to a multiple of this


# ------------------------------ small helpers ------------------------------ #

def _round_up(x, m):
    return (x + m - 1) // m * m


def _pick_tile(m, target):
    """Largest multiple-of-8 tile <= target dividing m, else m itself (untiled)."""
    if m <= target:
        return m
    best = None
    for t in range(8, target + 1, 8):
        if m % t == 0:
            best = t
    return best if best is not None else m


def _pick_rows(ho, target=4):
    """Even output-row block size dividing ho.  Prefer the largest <= target that keeps
    >= 2 grid steps (so the 'parallel' axis can still shard across v7x's two TCs)."""
    best = None
    for r in range(2, target + 1, 2):
        if ho % r == 0 and (ho // r >= 2 or best is None):
            best = r
    if best is None:
        for r in range(2, ho + 1, 2):
            if ho % r == 0:
                best = r
    return best


_VMEM_BUDGET = None


def _vmem_budget():
    """~48 MiB on 64 MiB parts (v7x), ~100 MiB on 128 MiB parts (v5e/v6e)."""
    global _VMEM_BUDGET
    if _VMEM_BUDGET is None:
        cap = 128 << 20
        try:
            fn = getattr(pltpu, "get_tpu_info", None)
            if fn is not None:
                cap = int(getattr(fn(), "vmem_capacity_bytes", cap))
        except Exception:
            pass
        _VMEM_BUDGET = (48 << 20) if cap <= (96 << 20) else (100 << 20)
    return _VMEM_BUDGET


def _cparams(block_bytes):
    limit = int(min(max(2 * int(block_bytes) + (16 << 20), 32 << 20), _vmem_budget()))
    return pltpu.CompilerParams(dimension_semantics=("parallel",),
                                vmem_limit_bytes=limit)


# ----------------------------- Pallas kernels ------------------------------ #

def _make_conv_kernel(stride, R, Wo, fused_affine):
    """3x3 conv over a block of R output rows (whole batch) + partial BN statistics.

    Non-fused (conv1; input spatially + channel pre-padded by the host):
        stride 1 refs = (x_main, x_halo, w9, y, ps, acc)
            x_main : (N, R,   W+2, CP)  padded rows [r*R, r*R+R)
            x_halo : (N, 2,   W+2, CP)  padded rows [r*R+R, r*R+R+2)
        stride 2 refs = same, but the input is W-parity packed (N, H+2, 2, Wc, CP):
            x_main : (N, 2R, 2, Wc, CP) padded rows [2rR, 2rR+2R)
            x_halo : (N, 2,  2, Wc, CP) padded rows [2rR+2R, 2rR+2R+2)
    Fused with BN1 + ReLU (conv2; input is conv1's raw, unpadded output):
        refs = (y1_main, y1_top, y1_bot, w9, p1, y, ps, acc)
            y1_main: (N, R, Wo, CP) rows [r*R, r*R+R)
            y1_top : (N, 1, Wo, CP) row  max(r*R-1, 0)     (zeroed when r == 0)
            y1_bot : (N, 1, Wo, CP) row  min(r*R+R, Ho-1)  (zeroed when r == last)
            p1     : (2, CP) f32 BN1 scale / shift
    w9  : (9, CP, CO) weight taps (kh*3+kw), VMEM-resident (constant index_map)
    y   : (N, R, Wo, CO) conv output block (compute dtype)
    ps  : (2, CO) f32 [sum ; sum of squares] over this block's pixels
    acc : VMEM scratch (N*R*Wo, CO) f32 accumulator
    """
    def kernel(*refs):
        if fused_affine:
            main_ref, top_ref, bot_ref, w_ref, p_ref, y_ref, ps_ref, acc_ref = refs
        else:
            main_ref, halo_ref, w_ref, y_ref, ps_ref, acc_ref = refs

        N = y_ref.shape[0]
        CO = y_ref.shape[-1]
        M = N * R * Wo
        cdt = w_ref.dtype

        if fused_affine:
            # Apply BN1 scale/shift + ReLU to the raw conv1 rows in VMEM, zero the H
            # borders (grid edges), and zero-pad W (conv padding=1) in registers.
            s = p_ref[0, :]
            t = p_ref[1, :]
            act = lambda v: jnp.maximum(v.astype(jnp.float32) * s + t, 0.0)
            r0 = pl.program_id(0)
            top = act(top_ref[...]) * jnp.where(r0 == 0, 0.0, 1.0)
            bot = act(bot_ref[...]) * jnp.where(r0 == pl.num_programs(0) - 1, 0.0, 1.0)
            rows = jnp.concatenate([top, act(main_ref[...]), bot], axis=1)
            zcol = jnp.zeros((N, R + 2, 1, rows.shape[-1]), jnp.float32)
            x_all = jnp.concatenate([zcol, rows, zcol], axis=2).astype(cdt)

            def tap(kh, kw):
                return x_all[:, kh:kh + R, kw:kw + Wo, :]

        elif stride == 1:
            x_all = jnp.concatenate([main_ref[...], halo_ref[...]], axis=1)

            def tap(kh, kw):
                return x_all[:, kh:kh + R, kw:kw + Wo, :]

        else:
            # stride 2: W-parity was packed by the host (dim 2); split H parity with a
            # major-dim-only reshape -> every tap below is a unit-stride slice.
            x_all = jnp.concatenate([main_ref[...], halo_ref[...]], axis=1)
            Wc = x_all.shape[3]
            C = x_all.shape[-1]
            cols = []
            for q in range(2):
                xq = x_all[:, :, q, :, :]                       # (N, 2R+2, Wc, C)
                cols.append(xq.reshape(N, R + 1, 2, Wc, C))     # split H rows by parity

            def tap(kh, kw):
                i0, p = divmod(kh, 2)
                j0, q = divmod(kw, 2)
                return cols[q][:, i0:i0 + R, p, j0:j0 + Wo, :]

        # 9 accumulated MXU matmuls into an explicit f32 VMEM accumulator.
        for idx in range(9):
            kh, kw = divmod(idx, 3)
            contrib = jnp.dot(tap(kh, kw).reshape(M, -1), w_ref[idx],
                              preferred_element_type=jnp.float32)
            if idx == 0:
                acc_ref[...] = contrib
            else:
                acc_ref[...] += contrib

        acc = acc_ref[...]
        y_ref[...] = acc.reshape(N, R, Wo, CO).astype(y_ref.dtype)
        # single-pass BN statistics, f32 accumulation
        ps_ref[0:1, :] = jnp.sum(acc, axis=0, keepdims=True)
        ps_ref[1:2, :] = jnp.sum(acc * acc, axis=0, keepdims=True)

    return kernel


def _matmul_stats_kernel(x_ref, w_ref, y_ref, ps_ref):
    """1x1 conv (plain matmul) tile + per-tile partial BN stats."""
    y = jnp.dot(x_ref[...], w_ref[...], preferred_element_type=jnp.float32)
    y_ref[...] = y.astype(y_ref.dtype)
    ps_ref[0:1, :] = jnp.sum(y, axis=0, keepdims=True)
    ps_ref[1:2, :] = jnp.sum(y * y, axis=0, keepdims=True)


def _make_affine_kernel(relu, has_residual):
    """Pass B: y*scale+shift [+ residual*rscale+rshift] [-> ReLU], per pixel tile."""
    def kernel(*refs):
        if has_residual:
            y_ref, r_ref, p_ref, o_ref = refs
        else:
            y_ref, p_ref, o_ref = refs
        out = y_ref[...].astype(jnp.float32) * p_ref[0:1, :] + p_ref[1:2, :]
        if has_residual:
            out = out + r_ref[...].astype(jnp.float32) * p_ref[2:3, :] + p_ref[3:4, :]
        if relu:
            out = jnp.maximum(out, 0.0)
        o_ref[...] = out.astype(o_ref.dtype)
    return kernel


# ---------------------------- pallas_call wrappers -------------------------- #

def _conv3x3_block(xin, w9, stride, R, out_dtype):
    """Pass A of conv+BN from a spatially pre-padded, channel-padded input.
    Grid = blocks of R output rows; each step runs 9 accumulated MXU matmuls with
    M = N*R*Wo and emits per-block BN partial sums."""
    if stride == 1:
        N, Hp, Wp, CP = xin.shape
        H, W = Hp - 2, Wp - 2
    else:
        N, Hp, _two, Wc, CP = xin.shape
        H, W = Hp - 2, 2 * Wc - 2
    CO = w9.shape[-1]
    Ho = (H - 1) // stride + 1
    Wo = (W - 1) // stride + 1
    assert Ho % R == 0
    nblk = Ho // R
    rs = R * stride           # input rows consumed by the main block (even)

    if stride == 1:
        act_specs = [
            pl.BlockSpec((N, rs, Wp, CP), lambda r: (0, r, 0, 0)),
            pl.BlockSpec((N, 2, Wp, CP), lambda r: (0, (r + 1) * (rs // 2), 0, 0)),
        ]
        act_elems = N * (rs + 2) * Wp * CP
    else:
        act_specs = [
            pl.BlockSpec((N, rs, 2, Wc, CP), lambda r: (0, r, 0, 0, 0)),
            pl.BlockSpec((N, 2, 2, Wc, CP), lambda r: (0, (r + 1) * (rs // 2), 0, 0, 0)),
        ]
        act_elems = N * (rs + 2) * 2 * Wc * CP

    itm = jnp.dtype(xin.dtype).itemsize
    est = (2 * act_elems * itm
           + 2 * 9 * CP * CO * itm
           + 2 * (N * R * Wo * CO * jnp.dtype(out_dtype).itemsize + 2 * CO * 4)
           + N * R * Wo * CO * 4)

    y, ps = pl.pallas_call(
        _make_conv_kernel(stride, R, Wo, fused_affine=False),
        grid=(nblk,),
        in_specs=act_specs + [
            pl.BlockSpec(w9.shape, lambda r: (0,) * w9.ndim),   # VMEM-resident weights
        ],
        out_specs=[
            pl.BlockSpec((N, R, Wo, CO), lambda r: (0, r, 0, 0)),
            pl.BlockSpec((None, 2, CO), lambda r: (r, 0, 0)),
        ],
        out_shape=[
            jax.ShapeDtypeStruct((N, Ho, Wo, CO), out_dtype),
            jax.ShapeDtypeStruct((nblk, 2, CO), jnp.float32),
        ],
        scratch_shapes=[pltpu.VMEM((N * R * Wo, CO), jnp.float32)],
        compiler_params=_cparams(est),
    )(xin, xin, w9)
    return y, ps


def _conv3x3_fused(y1, w9, p1, R, out_dtype):
    """Pass A of conv2 with BN1 scale/shift + ReLU fused onto the loaded raw conv1 rows
    (no separate affine pass, no host padding of the intermediate activation)."""
    N, Ho, Wo, CP = y1.shape
    CO = w9.shape[-1]
    assert Ho % R == 0
    nblk = Ho // R

    itm = jnp.dtype(y1.dtype).itemsize
    est = (2 * N * (R + 2) * Wo * CP * itm
           + 2 * 9 * CP * CO * itm + 2 * 2 * CP * 4
           + 2 * (N * R * Wo * CO * jnp.dtype(out_dtype).itemsize + 2 * CO * 4)
           + N * R * Wo * CO * 4)

    y, ps = pl.pallas_call(
        _make_conv_kernel(1, R, Wo, fused_affine=True),
        grid=(nblk,),
        in_specs=[
            pl.BlockSpec((N, R, Wo, CP), lambda r: (0, r, 0, 0)),                          # main rows
            pl.BlockSpec((N, 1, Wo, CP), lambda r: (0, jnp.maximum(r * R - 1, 0), 0, 0)),  # top halo
            pl.BlockSpec((N, 1, Wo, CP), lambda r: (0, jnp.minimum(r * R + R, Ho - 1), 0, 0)),  # bottom halo
            pl.BlockSpec((9, CP, CO), lambda r: (0, 0, 0)),                                # weights
            pl.BlockSpec((2, CP), lambda r: (0, 0)),                                       # BN1 scale/shift
        ],
        out_specs=[
            pl.BlockSpec((N, R, Wo, CO), lambda r: (0, r, 0, 0)),
            pl.BlockSpec((None, 2, CO), lambda r: (r, 0, 0)),
        ],
        out_shape=[
            jax.ShapeDtypeStruct((N, Ho, Wo, CO), out_dtype),
            jax.ShapeDtypeStruct((nblk, 2, CO), jnp.float32),
        ],
        scratch_shapes=[pltpu.VMEM((N * R * Wo, CO), jnp.float32)],
        compiler_params=_cparams(est),
    )(y1, y1, y1, w9, p1)
    return y, ps


def _matmul_stats(x_flat, w_mat, out_dtype, tm_target=2048):
    """Pass A of the 1x1 stride-2 downsample conv, tiled over pixels."""
    M, CP = x_flat.shape
    CO = w_mat.shape[-1]
    TM = _pick_tile(M, tm_target)
    nt = M // TM
    itm = jnp.dtype(x_flat.dtype).itemsize
    est = 2 * (TM * CP * itm + int(w_mat.size) * itm
               + TM * CO * jnp.dtype(out_dtype).itemsize + 2 * CO * 4)
    y, ps = pl.pallas_call(
        _matmul_stats_kernel,
        grid=(nt,),
        in_specs=[pl.BlockSpec((TM, CP), lambda i: (i, 0)),
                  pl.BlockSpec((CP, CO), lambda i: (0, 0))],
        out_specs=[pl.BlockSpec((TM, CO), lambda i: (i, 0)),
                   pl.BlockSpec((None, 2, CO), lambda i: (i, 0, 0))],
        out_shape=[jax.ShapeDtypeStruct((M, CO), out_dtype),
                   jax.ShapeDtypeStruct((nt, 2, CO), jnp.float32)],
        compiler_params=_cparams(est),
    )(x_flat, w_mat)
    return y, ps


def _affine(y_flat, p_rows, residual=None, relu=True,
            out_dtype=jnp.float32, tm_target=2048):
    """Pass B: fused BN scale/shift (+ residual affine) (+ ReLU), large pixel tiles."""
    M, CO = y_flat.shape
    TM = _pick_tile(M, tm_target)
    nt = M // TM
    args = [y_flat]
    in_specs = [pl.BlockSpec((TM, CO), lambda i: (i, 0))]
    if residual is not None:
        args.append(residual)
        in_specs.append(pl.BlockSpec((TM, CO), lambda i: (i, 0)))
    args.append(p_rows)
    in_specs.append(pl.BlockSpec(p_rows.shape, lambda i: (0, 0)))
    res_b = jnp.dtype(residual.dtype).itemsize if residual is not None else 0
    est = (2 * TM * CO * (jnp.dtype(y_flat.dtype).itemsize + res_b
                          + jnp.dtype(out_dtype).itemsize)
           + int(p_rows.size) * 4)
    return pl.pallas_call(
        _make_affine_kernel(relu, residual is not None),
        grid=(nt,),
        in_specs=in_specs,
        out_specs=pl.BlockSpec((TM, CO), lambda i: (i, 0)),
        out_shape=jax.ShapeDtypeStruct((M, CO), out_dtype),
        compiler_params=_cparams(est),
    )(*args)


# ------------------------------- host-side glue ----------------------------- #

def _bn_scale_shift(ps, count, gamma_p, beta_p):
    """Finalize global (training-mode) BN stats from per-block partials: O(C) work."""
    s = jnp.sum(ps[:, 0, :], axis=0)
    ss = jnp.sum(ps[:, 1, :], axis=0)
    mean = s / count
    var = jnp.maximum(ss / count - mean * mean, 0.0)  # f32 accumulation keeps this stable
    scale = gamma_p * jax.lax.rsqrt(var + EPS)
    shift = beta_p - mean * scale
    return scale, shift


def _pad_vec(v, cp):
    return jnp.pad(v.astype(jnp.float32), (0, cp - v.shape[0]))


def _prep_w3x3(w_oihw, cin_p, cout_p, dtype):
    cout, cin = w_oihw.shape[0], w_oihw.shape[1]
    w = jnp.transpose(w_oihw, (2, 3, 1, 0))                       # (3,3,Cin,Cout)
    w = jnp.pad(w, ((0, 0), (0, 0), (0, cin_p - cin), (0, cout_p - cout)))
    return w.reshape(9, cin_p, cout_p).astype(dtype)


def _prep_w1x1(w_oihw, cin_p, cout_p, dtype):
    cout, cin = w_oihw.shape[0], w_oihw.shape[1]
    w = jnp.transpose(w_oihw.reshape(cout, cin), (1, 0))          # (Cin, Cout)
    w = jnp.pad(w, ((0, cin_p - cin), (0, cout_p - cout)))
    return w.astype(dtype)


def basic_block_forward(x_nchw, params, compute_dtype=jnp.bfloat16,
                        row_block=4, tm_target=2048):
    """BasicBlock forward (training-mode BN, matching a freshly constructed nn.Module).
    I/O is NCHW float32.  Matmul inputs & pass-A intermediates use `compute_dtype`
    (bf16 = native MXU path); all accumulation and BN math stays in float32."""
    f32 = jnp.float32
    x = jnp.transpose(x_nchw, (0, 2, 3, 1)).astype(f32)           # NHWC
    N, H, W, Cin = x.shape
    Cout = params["w1"].shape[0]
    # TODO(synk): the reference module ties stride to channel doubling; expose an
    # explicit stride argument for variants with projection shortcuts at stride 1.
    stride = 1 if Cin == Cout else 2
    Ho, Wo = (H - 1) // stride + 1, (W - 1) // stride + 1
    assert Ho % 2 == 0 and Wo % 2 == 0, "even spatial sizes expected (ResNet CIFAR-10)"
    M = N * Ho * Wo
    CPi, CPo = _round_up(Cin, LANE), _round_up(Cout, LANE)
    R = _pick_rows(Ho, row_block)

    # lane-dense layout: channels zero-padded to 128, spatial pad folded into the same op
    xc = x.astype(compute_dtype)
    xpad = jnp.pad(xc, ((0, 0), (1, 1), (1, 1), (0, CPi - Cin)))
    if stride == 1:
        xin = xpad
    else:
        # W-parity interleave (fused by XLA with the pad/cast) so the stride-2 kernel
        # only needs unit-stride slices for its column taps.
        xin = jnp.stack([xpad[:, :, 0::2, :], xpad[:, :, 1::2, :]], axis=2)

    w1 = _prep_w3x3(params["w1"], CPi, CPo, compute_dtype)
    w2 = _prep_w3x3(params["w2"], CPo, CPo, compute_dtype)
    g1, b1 = _pad_vec(params["g1"], CPo), _pad_vec(params["b1"], CPo)
    g2, b2 = _pad_vec(params["g2"], CPo), _pad_vec(params["b2"], CPo)

    # conv1 pass A: raw conv output (compute dtype) + global BN1 partial sums
    y1_raw, ps1 = _conv3x3_block(xin, w1, stride, R, out_dtype=compute_dtype)
    s1, t1 = _bn_scale_shift(ps1, M, g1, b1)

    # conv2 pass A, with BN1 scale/shift + ReLU fused onto the loaded conv1 rows
    y2_raw, ps2 = _conv3x3_fused(y1_raw, w2, jnp.stack([s1, t1]), R,
                                 out_dtype=compute_dtype)
    s2, t2 = _bn_scale_shift(ps2, M, g2, b2)

    # residual branch
    if stride == 1:
        res = jnp.pad(x, ((0, 0), (0, 0), (0, 0), (0, CPo - Cin))).reshape(M, CPo)  # identity, f32
        r_scale = jnp.ones((CPo,), f32)
        r_shift = jnp.zeros((CPo,), f32)
    else:
        xs = jnp.pad(xc[:, ::2, ::2, :],
                     ((0, 0), (0, 0), (0, 0), (0, CPi - Cin))).reshape(M, CPi)
        wd = _prep_w1x1(params["wd"], CPi, CPo, compute_dtype)
        res, psd = _matmul_stats(xs, wd, out_dtype=compute_dtype, tm_target=tm_target)
        r_scale, r_shift = _bn_scale_shift(psd, M, _pad_vec(params["gd"], CPo),
                                           _pad_vec(params["bd"], CPo))

    # pass B: BN2 + (BN_downsample residual | identity) + add + ReLU, all fused
    out = _affine(y2_raw.reshape(M, CPo), jnp.stack([s2, t2, r_scale, r_shift]),
                  residual=res, relu=True, out_dtype=f32, tm_target=tm_target)
    out = out.reshape(N, Ho, Wo, CPo)[..., :Cout]
    return jnp.transpose(out, (0, 3, 1, 2))                       # NCHW


# ------------------------------ init & reference ----------------------------- #

def init_basic_block(key, in_ch, out_ch):
    assert out_ch in (in_ch, 2 * in_ch), "BasicBlock requires out == in or out == 2*in"

    def kaiming(k, shape):  # kaiming_normal_, nonlinearity='relu', fan_in mode
        fan_in = shape[1] * shape[2] * shape[3]
        std = (2.0 / fan_in) ** 0.5
        return std * jax.random.normal(k, shape, dtype=jnp.float32)

    kc1, kc2, kd = jax.random.split(key, 3)
    p = {
        "w1": kaiming(kc1, (out_ch, in_ch, 3, 3)),
        "g1": jnp.ones((out_ch,), jnp.float32), "b1": jnp.zeros((out_ch,), jnp.float32),
        "w2": kaiming(kc2, (out_ch, out_ch, 3, 3)),
        "g2": jnp.ones((out_ch,), jnp.float32), "b2": jnp.zeros((out_ch,), jnp.float32),
    }
    if in_ch != out_ch:
        p["wd"] = kaiming(kd, (out_ch, in_ch, 1, 1))
        p["gd"] = jnp.ones((out_ch,), jnp.float32)
        p["bd"] = jnp.zeros((out_ch,), jnp.float32)
    return p


def basic_block_reference(x, params, matmul_dtype=jnp.float32):
    """Pure-JAX reference.  matmul_dtype quantizes every conv input/weight and each
    conv's raw output the same way the Pallas path does (bf16 MXU operands and bf16
    pass-A intermediates), so the fast path can be checked tightly; with float32 it
    is the exact module semantics."""
    f32 = jnp.float32
    q = lambda a: a.astype(matmul_dtype).astype(f32)
    x = x.astype(f32)
    out_ch = params["w1"].shape[0]
    in_ch = x.shape[1]
    stride = 1 if in_ch == out_ch else 2

    def conv(z, w, s, pad):
        return jax.lax.conv_general_dilated(
            q(z), q(w), (s, s), [(pad, pad), (pad, pad)],
            dimension_numbers=("NCHW", "OIHW", "NCHW"),
            precision=jax.lax.Precision.HIGHEST)

    def bn(y, g, b):
        mean = jnp.mean(y, axis=(0, 2, 3), keepdims=True)
        var = jnp.mean((y - mean) ** 2, axis=(0, 2, 3), keepdims=True)
        yhat = (y - mean) * jax.lax.rsqrt(var + EPS)
        return yhat * g.reshape(1, -1, 1, 1) + b.reshape(1, -1, 1, 1)

    y = jax.nn.relu(bn(q(conv(x, params["w1"], stride, 1)), params["g1"], params["b1"]))
    y = bn(q(conv(y, params["w2"], 1, 1)), params["g2"], params["b2"])
    if in_ch != out_ch:
        x = bn(q(conv(x, params["wd"], 2, 0)), params["gd"], params["bd"])
    return jax.nn.relu(y + x)


# ------------------------------------ main ----------------------------------- #

if __name__ == "__main__":
    key = jax.random.PRNGKey(0)
    kx1, kp1, kx2, kp2 = jax.random.split(key, 4)

    fwd = jax.jit(basic_block_forward, static_argnames=("compute_dtype",))

    cases = [
        ((2, 4, 16, 16), 4, 8, (2, 8, 8, 8), kx1, kp1),    # downsample path (stride 2)
        ((2, 4, 16, 16), 4, 4, (2, 4, 16, 16), kx2, kp2),  # identity residual path
    ]
    for xshape, cin, cout, oshape, kx, kp in cases:
        x = jax.random.normal(kx, xshape, dtype=jnp.float32)
        params = init_basic_block(kp, cin, cout)

        # 1) exact-semantics check: f32 matmuls / f32 intermediates vs pure f32 reference
        out_f32 = jax.block_until_ready(fwd(x, params, compute_dtype=jnp.float32))
        ref_f32 = basic_block_reference(x, params, matmul_dtype=jnp.float32)
        np.testing.assert_allclose(np.asarray(out_f32), np.asarray(ref_f32),
                                   rtol=1e-3, atol=1e-3)
        assert out_f32.shape == oshape

        # 2) fast path: bf16 MXU inputs + bf16 pass-A intermediates (f32 accumulation),
        #    checked against a matched-precision reference.
        out_bf = jax.block_until_ready(fwd(x, params, compute_dtype=jnp.bfloat16))
        ref_bf = basic_block_reference(x, params, matmul_dtype=jnp.bfloat16)
        np.testing.assert_allclose(np.asarray(out_bf), np.asarray(ref_bf),
                                   rtol=2e-2, atol=2e-2)
        assert out_bf.shape == oshape

    print("KERNEL_OK")
</pallas_src>

<mosaic_0001>
module attributes {stable_mosaic.version = 11 : i64} {
  func.func @kernel(%arg0: i32, %arg1: memref<2x8x2x9x128xf32, #tpu.memory_space<vmem>>, %arg2: memref<2x2x2x9x128xf32, #tpu.memory_space<vmem>>, %arg3: memref<9x128x128xf32, #tpu.memory_space<vmem>>, %arg4: memref<2x4x8x128xf32, #tpu.memory_space<vmem>>, %arg5: memref<1x2x128xf32, #tpu.memory_space<vmem>>, %arg6: memref<64x128xf32, #tpu.memory_space<vmem>>) attributes {dimension_semantics = [#tpu.dimension_semantics<parallel>], iteration_bounds = array<i64: 2>, scalar_prefetch = 0 : i64, scratch_operands = 1 : i64, tpu.core_type = #tpu.core_type<tc>, window_params = [{transform_indices = @transform_0, window_bounds = array<i64: 2, 8, 2, 9, 128>}, {transform_indices = @transform_1, window_bounds = array<i64: 2, 2, 2, 9, 128>}, {pipeline_mode = #tpu.pipeline_mode<synchronous>, transform_indices = @transform_2, window_bounds = array<i64: 9, 128, 128>}, {transform_indices = @transform_3, window_bounds = array<i64: 2, 4, 8, 128>}, {transform_indices = @transform_4, window_bounds = array<i64: 1, 2, 128>}]} {
    %c0 = arith.constant 0 : index
    %c0_0 = arith.constant 0 : index
    %c0_1 = arith.constant 0 : index
    %c0_2 = arith.constant 0 : index
    %c0_3 = arith.constant 0 : index
    %0 = vector.load %arg1[%c0, %c0_0, %c0_1, %c0_2, %c0_3] : memref<2x8x2x9x128xf32, #tpu.memory_space<vmem>>, vector<2x8x2x9x128xf32>
    %c0_4 = arith.constant 0 : index
    %c0_5 = arith.constant 0 : index
    %c0_6 = arith.constant 0 : index
    %c0_7 = arith.constant 0 : index
    %c0_8 = arith.constant 0 : index
    %1 = vector.load %arg2[%c0_4, %c0_5, %c0_6, %c0_7, %c0_8] : memref<2x2x2x9x128xf32, #tpu.memory_space<vmem>>, vector<2x2x2x9x128xf32>
    %2 = tpu.concatenate %0, %1 in 1 : vector<2x8x2x9x128xf32>, vector<2x2x2x9x128xf32> -> vector<2x10x2x9x128xf32>
    %3 = vector.extract_strided_slice %2 {offsets = [0, 0, 0, 0, 0], sizes = [2, 10, 1, 9, 128], strides = [1, 1, 1, 1, 1]} : vector<2x10x2x9x128xf32> to vector<2x10x1x9x128xf32>
    %4 = vector.shape_cast %3 : vector<2x10x1x9x128xf32> to vector<2x10x9x128xf32>
    %5 = vector.shape_cast %4 : vector<2x10x9x128xf32> to vector<2x5x2x9x128xf32>
    %6 = vector.extract_strided_slice %2 {offsets = [0, 0, 1, 0, 0], sizes = [2, 10, 1, 9, 128], strides = [1, 1, 1, 1, 1]} : vector<2x10x2x9x128xf32> to vector<2x10x1x9x128xf32>
    %7 = vector.shape_cast %6 : vector<2x10x1x9x128xf32> to vector<2x10x9x128xf32>
    %8 = vector.shape_cast %7 : vector<2x10x9x128xf32> to vector<2x5x2x9x128xf32>
    %9 = vector.extract_strided_slice %5 {offsets = [0, 0, 0, 0, 0], sizes = [2, 4, 1, 8, 128], strides = [1, 1, 1, 1, 1]} : vector<2x5x2x9x128xf32> to vector<2x4x1x8x128xf32>
    %10 = vector.shape_cast %9 : vector<2x4x1x8x128xf32> to vector<2x4x8x128xf32>
    %11 = vector.shape_cast %10 : vector<2x4x8x128xf32> to vector<64x128xf32>
    %c0_9 = arith.constant 0 : index
    %c0_10 = arith.constant 0 : index
    %c0_11 = arith.constant 0 : index
    %12 = vector.load %arg3[%c0_9, %c0_10, %c0_11] : memref<9x128x128xf32, #tpu.memory_space<vmem>>, vector<1x128x128xf32>
    %13 = vector.shape_cast %12 : vector<1x128x128xf32> to vector<128x128xf32>
    %cst = arith.constant dense<0.000000e+00> : vector<64x128xf32>
    %14 = tpu.matmul %11, %13, %cst {dimension_numbers = #tpu.dot_dimension_numbers<[1], [0], [0], [1], [0, 0, 1, 1], [], []>} : vector<64x128xf32>, vector<128x128xf32>, vector<64x128xf32> -> vector<64x128xf32>
    %c0_12 = arith.constant 0 : index
    %c0_13 = arith.constant 0 : index
    %15 = vector.load %arg6[%c0_12, %c0_13] : memref<64x128xf32, #tpu.memory_space<vmem>>, vector<64x128xf32>
    tpu.vector_store %arg6[%c0_12, %c0_13], %14 {strides = array<i32>} : memref<64x128xf32, #tpu.memory_space<vmem>>, vector<64x128xf32>,
    %16 = vector.extract_strided_slice %8 {offsets = [0, 0, 0, 0, 0], sizes = [2, 4, 1, 8, 128], strides = [1, 1, 1, 1, 1]} : vector<2x5x2x9x128xf32> to vector<2x4x1x8x128xf32>
    %17 = vector.shape_cast %16 : vector<2x4x1x8x128xf32> to vector<2x4x8x128xf32>
    %18 = vector.shape_cast %17 : vector<2x4x8x128xf32> to vector<64x128xf32>
    %c1 = arith.constant 1 : index
    %c0_14 = arith.constant 0 : index
    %c0_15 = arith.constant 0 : index
    %19 = vector.load %arg3[%c1, %c0_14, %c0_15] : memref<9x128x128xf32, #tpu.memory_space<vmem>>, vector<1x128x128xf32>
    %20 = vector.shape_cast %19 : vector<1x128x128xf32> to vector<128x128xf32>
    %cst_16 = arith.constant dense<0.000000e+00> : vector<64x128xf32>
    %21 = tpu.matmul %18, %20, %cst_16 {dimension_numbers = #tpu.dot_dimension_numbers<[1], [0], [0], [1], [0, 0, 1, 1], [], []>} : vector<64x128xf32>, vector<128x128xf32>, vector<64x128xf32> -> vector<64x128xf32>
    %c0_17 = arith.constant 0 : index
    %c0_18 = arith.constant 0 : index
    %22 = vector.load %arg6[%c0_17, %c0_18] : memref<64x128xf32, #tpu.memory_space<vmem>>, vector<64x128xf32>
    %23 = arith.addf %22, %21 : vector<64x128xf32>
    %c0_19 = arith.constant 0 : index
    %c0_20 = arith.constant 0 : index
    %24 = vector.load %arg6[%c0_19, %c0_20] : memref<64x128xf32, #tpu.memory_space<vmem>>, vector<64x128xf32>
    tpu.vector_store %arg6[%c0_19, %c0_20], %23 {strides = array<i32>} : memref<64x128xf32, #tpu.memory_space<vmem>>, vector<64x128xf32>,
    %25 = vector.extract_strided_slice %5 {offsets = [0, 0, 0, 1, 0], sizes = [2, 4, 1, 8, 128], strides = [1, 1, 1, 1, 1]} : vector<2x5x2x9x128xf32> to vector<2x4x1x8x128xf32>
    %26 = vector.shape_cast %25 : vector<2x4x1x8x128xf32> to vector<2x4x8x128xf32>
    %27 = vector.shape_cast %26 : vector<2x4x8x128xf32> to vector<64x128xf32>
    %c2 = arith.constant 2 : index
    %c0_21 = arith.constant 0 : index
    %c0_22 = arith.constant 0 : index
    %28 = vector.load %arg3[%c2, %c0_21, %c0_22] : memref<9x128x128xf32, #tpu.memory_space<vmem>>, vector<1x128x128xf32>
    %29 = vector.shape_cast %28 : vector<1x128x128xf32> to vector<128x128xf32>
    %cst_23 = arith.constant dense<0.000000e+00> : vector<64x128xf32>
    %30 = tpu.matmul %27, %29, %cst_23 {dimension_numbers = #tpu.dot_dimension_numbers<[1], [0], [0], [1], [0, 0, 1, 1], [], []>} : vector<64x128xf32>, vector<128x128xf32>, vector<64x128xf32> -> vector<64x128xf32>
    %c0_24 = arith.constant 0 : index
    %c0_25 = arith.constant 0 : index
    %31 = vector.load %arg6[%c0_24, %c0_25] : memref<64x128xf32, #tpu.memory_space<vmem>>, vector<64x128xf32>
    %32 = arith.addf %31, %30 : vector<64x128xf32>
    %c0_26 = arith.constant 0 : index
    %c0_27 = arith.constant 0 : index
    %33 = vector.load %arg6[%c0_26, %c0_27] : memref<64x128xf32, #tpu.memory_space<vmem>>, vector<64x128xf32>
    tpu.vector_store %arg6[%c0_26, %c0_27], %32 {strides = array<i32>} : memref<64x128xf32, #tpu.memory_space<vmem>>, vector<64x128xf32>,
    %34 = vector.extract_strided_slice %5 {offsets = [0, 0, 1, 0, 0], sizes = [2, 4, 1, 8, 128], strides = [1, 1, 1, 1, 1]} : vector<2x5x2x9x128xf32> to vector<2x4x1x8x128xf32>
    %35 = vector.shape_cast %34 : vector<2x4x1x8x128xf32> to vector<2x4x8x128xf32>
    %36 = vector.shape_cast %35 : vector<2x4x8x128xf32> to vector<64x128xf32>
    %c3 = arith.constant 3 : index
    %c0_28 = arith.constant 0 : index
    %c0_29 = arith.constant 0 : index
    %37 = vector.load %arg3[%c3, %c0_28, %c0_29] : memref<9x128x128xf32, #tpu.memory_space<vmem>>, vector<1x128x128xf32>
    %38 = vector.shape_cast %37 : vector<1x128x128xf32> to vector<128x128xf32>
    %cst_30 = arith.constant dense<0.000000e+00> : vector<64x128xf32>
    %39 = tpu.matmul %36, %38, %cst_30 {dimension_numbers = #tpu.dot_dimension_numbers<[1], [0], [0], [1], [0, 0, 1, 1], [], []>} : vector<64x128xf32>, vector<128x128xf32>, vector<64x128xf32> -> vector<64x128xf32>
    %c0_31 = arith.constant 0 : index
    %c0_32 = arith.constant 0 : index
    %40 = vector.load %arg6[%c0_31, %c0_32] : memref<64x128xf32, #tpu.memory_space<vmem>>, vector<64x128xf32>
    %41 = arith.addf %40, %39 : vector<64x128xf32>
    %c0_33 = arith.constant 0 : index
    %c0_34 = arith.constant 0 : index
    %42 = vector.load %arg6[%c0_33, %c0_34] : memref<64x128xf32, #tpu.memory_space<vmem>>, vector<64x128xf32>
    tpu.vector_store %arg6[%c0_33, %c0_34], %41 {strides = array<i32>} : memref<64x128xf32, #tpu.memory_space<vmem>>, vector<64x128xf32>,
    %43 = vector.extract_strided_slice %8 {offsets = [0, 0, 1, 0, 0], sizes = [2, 4, 1, 8, 128], strides = [1, 1, 1, 1, 1]} : vector<2x5x2x9x128xf32> to vector<2x4x1x8x128xf32>
    %44 = vector.shape_cast %43 : vector<2x4x1x8x128xf32> to vector<2x4x8x128xf32>
    %45 = vector.shape_cast %44 : vector<2x4x8x128xf32> to vector<64x128xf32>
    %c4 = arith.constant 4 : index
    %c0_35 = arith.constant 0 : index
    %c0_36 = arith.constant 0 : index
    %46 = vector.load %arg3[%c4, %c0_35, %c0_36] : memref<9x128x128xf32, #tpu.memory_space<vmem>>, vector<1x128x128xf32>
    %47 = vector.shape_cast %46 : vector<1x128x128xf32> to vector<128x128xf32>
    %cst_37 = arith.constant dense<0.000000e+00> : vector<64x128xf32>
    %48 = tpu.matmul %45, %47, %cst_37 {dimension_numbers = #tpu.dot_dimension_numbers<[1], [0], [0], [1], [0, 0, 1, 1], [], []>} : vector<64x128xf32>, vector<128x128xf32>, vector<64x128xf32> -> vector<64x128xf32>
    %c0_38 = arith.constant 0 : index
    %c0_39 = arith.constant 0 : index
    %49 = vector.load %arg6[%c0_38, %c0_39] : memref<64x128xf32, #tpu.memory_space<vmem>>, vector<64x128xf32>
    %50 = arith.addf %49, %48 : vector<64x128xf32>
    %c0_40 = arith.constant 0 : index
    %c0_41 = arith.constant 0 : index
    %51 = vector.load %arg6[%c0_40, %c0_41] : memref<64x128xf32, #tpu.memory_space<vmem>>, vector<64x128xf32>
    tpu.vector_store %arg6[%c0_40, %c0_41], %50 {strides = array<i32>} : memref<64x128xf32, #tpu.memory_space<vmem>>, vector<64x128xf32>,
    %52 = vector.extract_strided_slice %5 {offsets = [0, 0, 1, 1, 0], sizes = [2, 4, 1, 8, 128], strides = [1, 1, 1, 1, 1]} : vector<2x5x2x9x128xf32> to vector<2x4x1x8x128xf32>
    %53 = vector.shape_cast %52 : vector<2x4x1x8x128xf32> to vector<2x4x8x128xf32>
    %54 = vector.shape_cast %53 : vector<2x4x8x128xf32> to vector<64x128xf32>
    %c5 = arith.constant 5 : index
    %c0_42 = arith.constant 0 : index
    %c0_43 = arith.constant 0 : index
    %55 = vector.load %arg3[%c5, %c0_42, %c0_43] : memref<9x128x128xf32, #tpu.memory_space<vmem>>, vector<1x128x128xf32>
    %56 = vector.shape_cast %55 : vector<1x128x128xf32> to vector<128x128xf32>
    %cst_44 = arith.constant dense<0.000000e+00> : vector<64x128xf32>
    %57 = tpu.matmul %54, %56, %cst_44 {dimension_numbers = #tpu.dot_dimension_numbers<[1], [0], [0], [1], [0, 0, 1, 1], [], []>} : vector<64x128xf32>, vector<128x128xf32>, vector<64x128xf32> -> vector<64x128xf32>
    %c0_45 = arith.constant 0 : index
    %c0_46 = arith.constant 0 : index
    %58 = vector.load %arg6[%c0_45, %c0_46] : memref<64x128xf32, #tpu.memory_space<vmem>>, vector<64x128xf32>
    %59 = arith.addf %58, %57 : vector<64x128xf32>
    %c0_47 = arith.constant 0 : index
    %c0_48 = arith.constant 0 : index
    %60 = vector.load %arg6[%c0_47, %c0_48] : memref<64x128xf32, #tpu.memory_space<vmem>>, vector<64x128xf32>
    tpu.vector_store %arg6[%c0_47, %c0_48], %59 {strides = array<i32>} : memref<64x128xf32, #tpu.memory_space<vmem>>, vector<64x128xf32>,
    %61 = vector.extract_strided_slice %5 {offsets = [0, 1, 0, 0, 0], sizes = [2, 4, 1, 8, 128], strides = [1, 1, 1, 1, 1]} : vector<2x5x2x9x128xf32> to vector<2x4x1x8x128xf32>
    %62 = vector.shape_cast %61 : vector<2x4x1x8x128xf32> to vector<2x4x8x128xf32>
    %63 = vector.shape_cast %62 : vector<2x4x8x128xf32> to vector<64x128xf32>
    %c6 = arith.constant 6 : index
    %c0_49 = arith.constant 0 : index
    %c0_50 = arith.constant 0 : index
    %64 = vector.load %arg3[%c6, %c0_49, %c0_50] : memref<9x128x128xf32, #tpu.memory_space<vmem>>, vector<1x128x128xf32>
    %65 = vector.shape_cast %64 : vector<1x128x128xf32> to vector<128x128xf32>
    %cst_51 = arith.constant dense<0.000000e+00> : vector<64x128xf32>
    %66 = tpu.matmul %63, %65, %cst_51 {dimension_numbers = #tpu.dot_dimension_numbers<[1], [0], [0], [1], [0, 0, 1, 1], [], []>} : vector<64x128xf32>, vector<128x128xf32>, vector<64x128xf32> -> vector<64x128xf32>
    %c0_52 = arith.constant 0 : index
    %c0_53 = arith.constant 0 : index
    %67 = vector.load %arg6[%c0_52, %c0_53] : memref<64x128xf32, #tpu.memory_space<vmem>>, vector<64x128xf32>
    %68 = arith.addf %67, %66 : vector<64x128xf32>
    %c0_54 = arith.constant 0 : index
    %c0_55 = arith.constant 0 : index
    %69 = vector.load %arg6[%c0_54, %c0_55] : memref<64x128xf32, #tpu.memory_space<vmem>>, vector<64x128xf32>
    tpu.vector_store %arg6[%c0_54, %c0_55], %68 {strides = array<i32>} : memref<64x128xf32, #tpu.memory_space<vmem>>, vector<64x128xf32>,
    %70 = vector.extract_strided_slice %8 {offsets = [0, 1, 0, 0, 0], sizes = [2, 4, 1, 8, 128], strides = [1, 1, 1, 1, 1]} : vector<2x5x2x9x128xf32> to vector<2x4x1x8x128xf32>
    %71 = vector.shape_cast %70 : vector<2x4x1x8x128xf32> to vector<2x4x8x128xf32>
    %72 = vector.shape_cast %71 : vector<2x4x8x128xf32> to vector<64x128xf32>
    %c7 = arith.constant 7 : index
    %c0_56 = arith.constant 0 : index
    %c0_57 = arith.constant 0 : index
    %73 = vector.load %arg3[%c7, %c0_56, %c0_57] : memref<9x128x128xf32, #tpu.memory_space<vmem>>, vector<1x128x128xf32>
    %74 = vector.shape_cast %73 : vector<1x128x128xf32> to vector<128x128xf32>
    %cst_58 = arith.constant dense<0.000000e+00> : vector<64x128xf32>
    %75 = tpu.matmul %72, %74, %cst_58 {dimension_numbers = #tpu.dot_dimension_numbers<[1], [0], [0], [1], [0, 0, 1, 1], [], []>} : vector<64x128xf32>, vector<128x128xf32>, vector<64x128xf32> -> vector<64x128xf32>
    %c0_59 = arith.constant 0 : index
    %c0_60 = arith.constant 0 : index
    %76 = vector.load %arg6[%c0_59, %c0_60] : memref<64x128xf32, #tpu.memory_space<vmem>>, vector<64x128xf32>
    %77 = arith.addf %76, %75 : vector<64x128xf32>
    %c0_61 = arith.constant 0 : index
    %c0_62 = arith.constant 0 : index
    %78 = vector.load %arg6[%c0_61, %c0_62] : memref<64x128xf32, #tpu.memory_space<vmem>>, vector<64x128xf32>
    tpu.vector_store %arg6[%c0_61, %c0_62], %77 {strides = array<i32>} : memref<64x128xf32, #tpu.memory_space<vmem>>, vector<64x128xf32>,
    %79 = vector.extract_strided_slice %5 {offsets = [0, 1, 0, 1, 0], sizes = [2, 4, 1, 8, 128], strides = [1, 1, 1, 1, 1]} : vector<2x5x2x9x128xf32> to vector<2x4x1x8x128xf32>
    %80 = vector.shape_cast %79 : vector<2x4x1x8x128xf32> to vector<2x4x8x128xf32>
    %81 = vector.shape_cast %80 : vector<2x4x8x128xf32> to vector<64x128xf32>
    %c8 = arith.constant 8 : index
    %c0_63 = arith.constant 0 : index
    %c0_64 = arith.constant 0 : index
    %82 = vector.load %arg3[%c8, %c0_63, %c0_64] : memref<9x128x128xf32, #tpu.memory_space<vmem>>, vector<1x128x128xf32>
    %83 = vector.shape_cast %82 : vector<1x128x128xf32> to vector<128x128xf32>
    %cst_65 = arith.constant dense<0.000000e+00> : vector<64x128xf32>
    %84 = tpu.matmul %81, %83, %cst_65 {dimension_numbers = #tpu.dot_dimension_numbers<[1], [0], [0], [1], [0, 0, 1, 1], [], []>} : vector<64x128xf32>, vector<128x128xf32>, vector<64x128xf32> -> vector<64x128xf32>
    %c0_66 = arith.constant 0 : index
    %c0_67 = arith.constant 0 : index
    %85 = vector.load %arg6[%c0_66, %c0_67] : memref<64x128xf32, #tpu.memory_space<vmem>>, vector<64x128xf32>
    %86 = arith.addf %85, %84 : vector<64x128xf32>
    %c0_68 = arith.constant 0 : index
    %c0_69 = arith.constant 0 : index
    %87 = vector.load %arg6[%c0_68, %c0_69] : memref<64x128xf32, #tpu.memory_space<vmem>>, vector<64x128xf32>
    tpu.vector_store %arg6[%c0_68, %c0_69], %86 {strides = array<i32>} : memref<64x128xf32, #tpu.memory_space<vmem>>, vector<64x128xf32>,
    %c0_70 = arith.constant 0 : index
    %c0_71 = arith.constant 0 : index
    %88 = vector.load %arg6[%c0_70, %c0_71] : memref<64x128xf32, #tpu.memory_space<vmem>>, vector<64x128xf32>
    %89 = vector.shape_cast %88 : vector<64x128xf32> to vector<2x4x8x128xf32>
    %c0_72 = arith.constant 0 : index
    %c0_73 = arith.constant 0 : index
    %c0_74 = arith.constant 0 : index
    %c0_75 = arith.constant 0 : index
    %90 = vector.load %arg4[%c0_72, %c0_73, %c0_74, %c0_75] : memref<2x4x8x128xf32, #tpu.memory_space<vmem>>, vector<2x4x8x128xf32>
    tpu.vector_store %arg4[%c0_72, %c0_73, %c0_74, %c0_75], %89 {strides = array<i32>} : memref<2x4x8x128xf32, #tpu.memory_space<vmem>>, vector<2x4x8x128xf32>,
    %cst_76 = arith.constant dense<0.000000e+00> : vector<128xf32>
    %91 = vector.multi_reduction <add>, %88, %cst_76 [0] : vector<64x128xf32> to vector<128xf32>
    %92 = vector.shape_cast %91 : vector<128xf32> to vector<1x128xf32>
    %c0_77 = arith.constant 0 : index
    %c0_78 = arith.constant 0 : index
    %c0_79 = arith.constant 0 : index
    %93 = vector.load %arg5[%c0_77, %c0_78, %c0_79] : memref<1x2x128xf32, #tpu.memory_space<vmem>>, vector<1x1x128xf32>
    %94 = vector.shape_cast %93 : vector<1x1x128xf32> to vector<1x128xf32>
    %95 = vector.shape_cast %92 : vector<1x128xf32> to vector<1x1x128xf32>
    tpu.vector_store %arg5[%c0_77, %c0_78, %c0_79], %95 {strides = array<i32>} : memref<1x2x128xf32, #tpu.memory_space<vmem>>, vector<1x1x128xf32>,
    %96 = arith.mulf %88, %88 : vector<64x128xf32>
    %cst_80 = arith.constant dense<0.000000e+00> : vector<128xf32>
    %97 = vector.multi_reduction <add>, %96, %cst_80 [0] : vector<64x128xf32> to vector<128xf32>
    %98 = vector.shape_cast %97 : vector<128xf32> to vector<1x128xf32>
    %c0_81 = arith.constant 0 : index
    %c1_82 = arith.constant 1 : index
    %c0_83 = arith.constant 0 : index
    %99 = vector.load %arg5[%c0_81, %c1_82, %c0_83] : memref<1x2x128xf32, #tpu.memory_space<vmem>>, vector<1x1x128xf32>
    %100 = vector.shape_cast %99 : vector<1x1x128xf32> to vector<1x128xf32>
    %101 = vector.shape_cast %98 : vector<1x128xf32> to vector<1x1x128xf32>
    tpu.vector_store %arg5[%c0_81, %c1_82, %c0_83], %101 {strides = array<i32>} : memref<1x2x128xf32, #tpu.memory_space<vmem>>, vector<1x1x128xf32>,
    return
  }
  func.func @transform_0(%arg0: i32) -> (i32, i32, i32, i32, i32) {
    %c0_i32 = arith.constant 0 : i32
    %c0_i32_0 = arith.constant 0 : i32
    %c0_i32_1 = arith.constant 0 : i32
    %c0_i32_2 = arith.constant 0 : i32
    %c0_i32_3 = arith.constant 0 : i32
    return %c0_i32, %arg0, %c0_i32_0, %c0_i32_1, %c0_i32_2 : i32, i32, i32, i32, i32
  }
  func.func @transform_1(%arg0: i32) -> (i32, i32, i32, i32, i32) {
    %c1_i32 = arith.constant 1 : i32
    %0 = arith.addi %arg0, %c1_i32 : i32
    %c4_i32 = arith.constant 4 : i32
    %1 = arith.muli %0, %c4_i32 : i32
    %c0_i32 = arith.constant 0 : i32
    %c0_i32_0 = arith.constant 0 : i32
    %c0_i32_1 = arith.constant 0 : i32
    %c0_i32_2 = arith.constant 0 : i32
    %c0_i32_3 = arith.constant 0 : i32
    return %c0_i32, %1, %c0_i32_0, %c0_i32_1, %c0_i32_2 : i32, i32, i32, i32, i32
  }
  func.func @transform_2(%arg0: i32) -> (i32, i32, i32) {
    %c0_i32 = arith.constant 0 : i32
    %c0_i32_0 = arith.constant 0 : i32
    %c0_i32_1 = arith.constant 0 : i32
    %c0_i32_2 = arith.constant 0 : i32
    return %c0_i32, %c0_i32_0, %c0_i32_1 : i32, i32, i32
  }
  func.func @transform_3(%arg0: i32) -> (i32, i32, i32, i32) {
    %c0_i32 = arith.constant 0 : i32
    %c0_i32_0 = arith.constant 0 : i32
    %c0_i32_1 = arith.constant 0 : i32
    %c0_i32_2 = arith.constant 0 : i32
    return %c0_i32, %arg0, %c0_i32_0, %c0_i32_1 : i32, i32, i32, i32
  }
  func.func @transform_4(%arg0: i32) -> (i32, i32, i32) {
    %c0_i32 = arith.constant 0 : i32
    %c0_i32_0 = arith.constant 0 : i32
    %c0_i32_1 = arith.constant 0 : i32
    return %arg0, %c0_i32, %c0_i32_0 : i32, i32, i32
  }
}

module attributes {stable_mosaic.version = 11 : i64} {
  func.func @kernel(%arg0: i32, %arg1: memref<2x4x8x128xf32, #tpu.memory_space<vmem>>, %arg2: memref<2x1x8x128xf32, #tpu.memory_space<vmem>>, %arg3: memref<2x1x8x128xf32, #tpu.memory_space<vmem>>, %arg4: memref<9x128x128xf32, #tpu.memory_space<vmem>>, %arg5: memref<2x128xf32, #tpu.memory_space<vmem>>, %arg6: memref<2x4x8x128xf32, #tpu.memory_space<vmem>>, %arg7: memref<1x2x128xf32, #tpu.memory_space<vmem>>, %arg8: memref<64x128xf32, #tpu.memory_space<vmem>>) attributes {dimension_semantics = [#tpu.dimension_semantics<parallel>], iteration_bounds = array<i64: 2>, scalar_prefetch = 0 : i64, scratch_operands = 1 : i64, tpu.core_type = #tpu.core_type<tc>, window_params = [{transform_indices = @transform_0, window_bounds = array<i64: 2, 4, 8, 128>}, {transform_indices = @transform_1, window_bounds = array<i64: 2, 1, 8, 128>}, {transform_indices = @transform_2, window_bounds = array<i64: 2, 1, 8, 128>}, {pipeline_mode = #tpu.pipeline_mode<synchronous>, transform_indices = @transform_3, window_bounds = array<i64: 9, 128, 128>}, {pipeline_mode = #tpu.pipeline_mode<synchronous>, transform_indices = @transform_4, window_bounds = array<i64: 2, 128>}, {transform_indices = @transform_5, window_bounds = array<i64: 2, 4, 8, 128>}, {transform_indices = @transform_6, window_bounds = array<i64: 1, 2, 128>}]} {
    %c0 = arith.constant 0 : index
    %c0_0 = arith.constant 0 : index
    %0 = vector.load %arg5[%c0, %c0_0] : memref<2x128xf32, #tpu.memory_space<vmem>>, vector<1x128xf32>
    %1 = vector.shape_cast %0 : vector<1x128xf32> to vector<128xf32>
    %c1 = arith.constant 1 : index
    %c0_1 = arith.constant 0 : index
    %2 = vector.load %arg5[%c1, %c0_1] : memref<2x128xf32, #tpu.memory_space<vmem>>, vector<1x128xf32>
    %3 = vector.shape_cast %2 : vector<1x128xf32> to vector<128xf32>
    %c0_2 = arith.constant 0 : index
    %c0_3 = arith.constant 0 : index
    %c0_4 = arith.constant 0 : index
    %c0_5 = arith.constant 0 : index
    %4 = vector.load %arg2[%c0_2, %c0_3, %c0_4, %c0_5] : memref<2x1x8x128xf32, #tpu.memory_space<vmem>>, vector<2x1x8x128xf32>
    %5 = vector.shape_cast %1 : vector<128xf32> to vector<1x1x1x128xf32>
    %6 = vector.broadcast %5 : vector<1x1x1x128xf32> to vector<2x1x8x128xf32>
    %7 = arith.mulf %4, %6 : vector<2x1x8x128xf32>
    %8 = vector.shape_cast %3 : vector<128xf32> to vector<1x1x1x128xf32>
    %9 = vector.broadcast %8 : vector<1x1x1x128xf32> to vector<2x1x8x128xf32>
    %10 = arith.addf %7, %9 : vector<2x1x8x128xf32>
    %cst = arith.constant 0.000000e+00 : f32
    %11 = vector.broadcast %cst : f32 to vector<2x1x8x128xf32>
    %12 = arith.maximumf %10, %11 : vector<2x1x8x128xf32>
    %c0_i32 = arith.constant 0 : i32
    %13 = arith.cmpi eq, %arg0, %c0_i32 : i32
    %cst_6 = arith.constant 0.000000e+00 : f32
    %cst_7 = arith.constant 1.000000e+00 : f32
    %14 = arith.select %13, %cst_6, %cst_7 : f32
    %15 = vector.broadcast %14 : f32 to vector<2x1x8x128xf32>
    %16 = arith.mulf %12, %15 : vector<2x1x8x128xf32>
    %c0_8 = arith.constant 0 : index
    %c0_9 = arith.constant 0 : index
    %c0_10 = arith.constant 0 : index
    %c0_11 = arith.constant 0 : index
    %17 = vector.load %arg3[%c0_8, %c0_9, %c0_10, %c0_11] : memref<2x1x8x128xf32, #tpu.memory_space<vmem>>, vector<2x1x8x128xf32>
    %18 = vector.shape_cast %1 : vector<128xf32> to vector<1x1x1x128xf32>
    %19 = vector.broadcast %18 : vector<1x1x1x128xf32> to vector<2x1x8x128xf32>
    %20 = arith.mulf %17, %19 : vector<2x1x8x128xf32>
    %21 = vector.shape_cast %3 : vector<128xf32> to vector<1x1x1x128xf32>
    %22 = vector.broadcast %21 : vector<1x1x1x128xf32> to vector<2x1x8x128xf32>
    %23 = arith.addf %20, %22 : vector<2x1x8x128xf32>
    %cst_12 = arith.constant 0.000000e+00 : f32
    %24 = vector.broadcast %cst_12 : f32 to vector<2x1x8x128xf32>
    %25 = arith.maximumf %23, %24 : vector<2x1x8x128xf32>
    %c1_i32 = arith.constant 1 : i32
    %26 = arith.cmpi eq, %arg0, %c1_i32 : i32
    %cst_13 = arith.constant 0.000000e+00 : f32
    %cst_14 = arith.constant 1.000000e+00 : f32
    %27 = arith.select %26, %cst_13, %cst_14 : f32
    %28 = vector.broadcast %27 : f32 to vector<2x1x8x128xf32>
    %29 = arith.mulf %25, %28 : vector<2x1x8x128xf32>
    %c0_15 = arith.constant 0 : index
    %c0_16 = arith.constant 0 : index
    %c0_17 = arith.constant 0 : index
    %c0_18 = arith.constant 0 : index
    %30 = vector.load %arg1[%c0_15, %c0_16, %c0_17, %c0_18] : memref<2x4x8x128xf32, #tpu.memory_space<vmem>>, vector<2x4x8x128xf32>
    %31 = vector.shape_cast %1 : vector<128xf32> to vector<1x1x1x128xf32>
    %32 = vector.broadcast %31 : vector<1x1x1x128xf32> to vector<2x4x8x128xf32>
    %33 = arith.mulf %30, %32 : vector<2x4x8x128xf32>
    %34 = vector.shape_cast %3 : vector<128xf32> to vector<1x1x1x128xf32>
    %35 = vector.broadcast %34 : vector<1x1x1x128xf32> to vector<2x4x8x128xf32>
    %36 = arith.addf %33, %35 : vector<2x4x8x128xf32>
    %cst_19 = arith.constant 0.000000e+00 : f32
    %37 = vector.broadcast %cst_19 : f32 to vector<2x4x8x128xf32>
    %38 = arith.maximumf %36, %37 : vector<2x4x8x128xf32>
    %39 = tpu.concatenate %16, %38, %29 in 1 : vector<2x1x8x128xf32>, vector<2x4x8x128xf32>, vector<2x1x8x128xf32> -> vector<2x6x8x128xf32>
    %cst_20 = arith.constant 0.000000e+00 : f32
    %40 = vector.broadcast %cst_20 : f32 to vector<2x6x1x128xf32>
    %41 = tpu.concatenate %40, %39, %40 in 2 : vector<2x6x1x128xf32>, vector<2x6x8x128xf32>, vector<2x6x1x128xf32> -> vector<2x6x10x128xf32>
    %42 = vector.extract_strided_slice %41 {offsets = [0, 0, 0, 0], sizes = [2, 4, 8, 128], strides = [1, 1, 1, 1]} : vector<2x6x10x128xf32> to vector<2x4x8x128xf32>
    %43 = vector.shape_cast %42 : vector<2x4x8x128xf32> to vector<64x128xf32>
    %c0_21 = arith.constant 0 : index
    %c0_22 = arith.constant 0 : index
    %c0_23 = arith.constant 0 : index
    %44 = vector.load %arg4[%c0_21, %c0_22, %c0_23] : memref<9x128x128xf32, #tpu.memory_space<vmem>>, vector<1x128x128xf32>
    %45 = vector.shape_cast %44 : vector<1x128x128xf32> to vector<128x128xf32>
    %cst_24 = arith.constant dense<0.000000e+00> : vector<64x128xf32>
    %46 = tpu.matmul %43, %45, %cst_24 {dimension_numbers = #tpu.dot_dimension_numbers<[1], [0], [0], [1], [0, 0, 1, 1], [], []>} : vector<64x128xf32>, vector<128x128xf32>, vector<64x128xf32> -> vector<64x128xf32>
    %c0_25 = arith.constant 0 : index
    %c0_26 = arith.constant 0 : index
    %47 = vector.load %arg8[%c0_25, %c0_26] : memref<64x128xf32, #tpu.memory_space<vmem>>, vector<64x128xf32>
    tpu.vector_store %arg8[%c0_25, %c0_26], %46 {strides = array<i32>} : memref<64x128xf32, #tpu.memory_space<vmem>>, vector<64x128xf32>,
    %48 = vector.extract_strided_slice %41 {offsets = [0, 0, 1, 0], sizes = [2, 4, 8, 128], strides = [1, 1, 1, 1]} : vector<2x6x10x128xf32> to vector<2x4x8x128xf32>
    %49 = vector.shape_cast %48 : vector<2x4x8x128xf32> to vector<64x128xf32>
    %c1_27 = arith.constant 1 : index
    %c0_28 = arith.constant 0 : index
    %c0_29 = arith.constant 0 : index
    %50 = vector.load %arg4[%c1_27, %c0_28, %c0_29] : memref<9x128x128xf32, #tpu.memory_space<vmem>>, vector<1x128x128xf32>
    %51 = vector.shape_cast %50 : vector<1x128x128xf32> to vector<128x128xf32>
    %cst_30 = arith.constant dense<0.000000e+00> : vector<64x128xf32>
    %52 = tpu.matmul %49, %51, %cst_30 {dimension_numbers = #tpu.dot_dimension_numbers<[1], [0], [0], [1], [0, 0, 1, 1], [], []>} : vector<64x128xf32>, vector<128x128xf32>, vector<64x128xf32> -> vector<64x128xf32>
    %c0_31 = arith.constant 0 : index
    %c0_32 = arith.constant 0 : index
    %53 = vector.load %arg8[%c0_31, %c0_32] : memref<64x128xf32, #tpu.memory_space<vmem>>, vector<64x128xf32>
    %54 = arith.addf %53, %52 : vector<64x128xf32>
    %c0_33 = arith.constant 0 : index
    %c0_34 = arith.constant 0 : index
    %55 = vector.load %arg8[%c0_33, %c0_34] : memref<64x128xf32, #tpu.memory_space<vmem>>, vector<64x128xf32>
    tpu.vector_store %arg8[%c0_33, %c0_34], %54 {strides = array<i32>} : memref<64x128xf32, #tpu.memory_space<vmem>>, vector<64x128xf32>,
    %56 = vector.extract_strided_slice %41 {offsets = [0, 0, 2, 0], sizes = [2, 4, 8, 128], strides = [1, 1, 1, 1]} : vector<2x6x10x128xf32> to vector<2x4x8x128xf32>
    %57 = vector.shape_cast %56 : vector<2x4x8x128xf32> to vector<64x128xf32>
    %c2 = arith.constant 2 : index
    %c0_35 = arith.constant 0 : index
    %c0_36 = arith.constant 0 : index
    %58 = vector.load %arg4[%c2, %c0_35, %c0_36] : memref<9x128x128xf32, #tpu.memory_space<vmem>>, vector<1x128x128xf32>
    %59 = vector.shape_cast %58 : vector<1x128x128xf32> to vector<128x128xf32>
    %cst_37 = arith.constant dense<0.000000e+00> : vector<64x128xf32>
    %60 = tpu.matmul %57, %59, %cst_37 {dimension_numbers = #tpu.dot_dimension_numbers<[1], [0], [0], [1], [0, 0, 1, 1], [], []>} : vector<64x128xf32>, vector<128x128xf32>, vector<64x128xf32> -> vector<64x128xf32>
    %c0_38 = arith.constant 0 : index
    %c0_39 = arith.constant 0 : index
    %61 = vector.load %arg8[%c0_38, %c0_39] : memref<64x128xf32, #tpu.memory_space<vmem>>, vector<64x128xf32>
    %62 = arith.addf %61, %60 : vector<64x128xf32>
    %c0_40 = arith.constant 0 : index
    %c0_41 = arith.constant 0 : index
    %63 = vector.load %arg8[%c0_40, %c0_41] : memref<64x128xf32, #tpu.memory_space<vmem>>, vector<64x128xf32>
    tpu.vector_store %arg8[%c0_40, %c0_41], %62 {strides = array<i32>} : memref<64x128xf32, #tpu.memory_space<vmem>>, vector<64x128xf32>,
    %64 = vector.extract_strided_slice %41 {offsets = [0, 1, 0, 0], sizes = [2, 4, 8, 128], strides = [1, 1, 1, 1]} : vector<2x6x10x128xf32> to vector<2x4x8x128xf32>
    %65 = vector.shape_cast %64 : vector<2x4x8x128xf32> to vector<64x128xf32>
    %c3 = arith.constant 3 : index
    %c0_42 = arith.constant 0 : index
    %c0_43 = arith.constant 0 : index
    %66 = vector.load %arg4[%c3, %c0_42, %c0_43] : memref<9x128x128xf32, #tpu.memory_space<vmem>>, vector<1x128x128xf32>
    %67 = vector.shape_cast %66 : vector<1x128x128xf32> to vector<128x128xf32>
    %cst_44 = arith.constant dense<0.000000e+00> : vector<64x128xf32>
    %68 = tpu.matmul %65, %67, %cst_44 {dimension_numbers = #tpu.dot_dimension_numbers<[1], [0], [0], [1], [0, 0, 1, 1], [], []>} : vector<64x128xf32>, vector<128x128xf32>, vector<64x128xf32> -> vector<64x128xf32>
    %c0_45 = arith.constant 0 : index
    %c0_46 = arith.constant 0 : index
    %69 = vector.load %arg8[%c0_45, %c0_46] : memref<64x128xf32, #tpu.memory_space<vmem>>, vector<64x128xf32>
    %70 = arith.addf %69, %68 : vector<64x128xf32>
    %c0_47 = arith.constant 0 : index
    %c0_48 = arith.constant 0 : index
    %71 = vector.load %arg8[%c0_47, %c0_48] : memref<64x128xf32, #tpu.memory_space<vmem>>, vector<64x128xf32>
    tpu.vector_store %arg8[%c0_47, %c0_48], %70 {strides = array<i32>} : memref<64x128xf32, #tpu.memory_space<vmem>>, vector<64x128xf32>,
    %72 = vector.extract_strided_slice %41 {offsets = [0, 1, 1, 0], sizes = [2, 4, 8, 128], strides = [1, 1, 1, 1]} : vector<2x6x10x128xf32> to vector<2x4x8x128xf32>
    %73 = vector.shape_cast %72 : vector<2x4x8x128xf32> to vector<64x128xf32>
    %c4 = arith.constant 4 : index
    %c0_49 = arith.constant 0 : index
    %c0_50 = arith.constant 0 : index
    %74 = vector.load %arg4[%c4, %c0_49, %c0_50] : memref<9x128x128xf32, #tpu.memory_space<vmem>>, vector<1x128x128xf32>
    %75 = vector.shape_cast %74 : vector<1x128x128xf32> to vector<128x128xf32>
    %cst_51 = arith.constant dense<0.000000e+00> : vector<64x128xf32>
    %76 = tpu.matmul %73, %75, %cst_51 {dimension_numbers = #tpu.dot_dimension_numbers<[1], [0], [0], [1], [0, 0, 1, 1], [], []>} : vector<64x128xf32>, vector<128x128xf32>, vector<64x128xf32> -> vector<64x128xf32>
    %c0_52 = arith.constant 0 : index
    %c0_53 = arith.constant 0 : index
    %77 = vector.load %arg8[%c0_52, %c0_53] : memref<64x128xf32, #tpu.memory_space<vmem>>, vector<64x128xf32>
    %78 = arith.addf %77, %76 : vector<64x128xf32>
    %c0_54 = arith.constant 0 : index
    %c0_55 = arith.constant 0 : index
    %79 = vector.load %arg8[%c0_54, %c0_55] : memref<64x128xf32, #tpu.memory_space<vmem>>, vector<64x128xf32>
    tpu.vector_store %arg8[%c0_54, %c0_55], %78 {strides = array<i32>} : memref<64x128xf32, #tpu.memory_space<vmem>>, vector<64x128xf32>,
    %80 = vector.extract_strided_slice %41 {offsets = [0, 1, 2, 0], sizes = [2, 4, 8, 128], strides = [1, 1, 1, 1]} : vector<2x6x10x128xf32> to vector<2x4x8x128xf32>
    %81 = vector.shape_cast %80 : vector<2x4x8x128xf32> to vector<64x128xf32>
    %c5 = arith.constant 5 : index
    %c0_56 = arith.constant 0 : index
    %c0_57 = arith.constant 0 : index
    %82 = vector.load %arg4[%c5, %c0_56, %c0_57] : memref<9x128x128xf32, #tpu.memory_space<vmem>>, vector<1x128x128xf32>
    %83 = vector.shape_cast %82 : vector<1x128x128xf32> to vector<128x128xf32>
    %cst_58 = arith.constant dense<0.000000e+00> : vector<64x128xf32>
    %84 = tpu.matmul %81, %83, %cst_58 {dimension_numbers = #tpu.dot_dimension_numbers<[1], [0], [0], [1], [0, 0, 1, 1], [], []>} : vector<64x128xf32>, vector<128x128xf32>, vector<64x128xf32> -> vector<64x128xf32>
    %c0_59 = arith.constant 0 : index
    %c0_60 = arith.constant 0 : index
    %85 = vector.load %arg8[%c0_59, %c0_60] : memref<64x128xf32, #tpu.memory_space<vmem>>, vector<64x128xf32>
    %86 = arith.addf %85, %84 : vector<64x128xf32>
    %c0_61 = arith.constant 0 : index
    %c0_62 = arith.constant 0 : index
    %87 = vector.load %arg8[%c0_61, %c0_62] : memref<64x128xf32, #tpu.memory_space<vmem>>, vector<64x128xf32>
    tpu.vector_store %arg8[%c0_61, %c0_62], %86 {strides = array<i32>} : memref<64x128xf32, #tpu.memory_space<vmem>>, vector<64x128xf32>,
    %88 = vector.extract_strided_slice %41 {offsets = [0, 2, 0, 0], sizes = [2, 4, 8, 128], strides = [1, 1, 1, 1]} : vector<2x6x10x128xf32> to vector<2x4x8x128xf32>
    %89 = vector.shape_cast %88 : vector<2x4x8x128xf32> to vector<64x128xf32>
    %c6 = arith.constant 6 : index
    %c0_63 = arith.constant 0 : index
    %c0_64 = arith.constant 0 : index
    %90 = vector.load %arg4[%c6, %c0_63, %c0_64] : memref<9x128x128xf32, #tpu.memory_space<vmem>>, vector<1x128x128xf32>
    %91 = vector.shape_cast %90 : vector<1x128x128xf32> to vector<128x128xf32>
    %cst_65 = arith.constant dense<0.000000e+00> : vector<64x128xf32>
    %92 = tpu.matmul %89, %91, %cst_65 {dimension_numbers = #tpu.dot_dimension_numbers<[1], [0], [0], [1], [0, 0, 1, 1], [], []>} : vector<64x128xf32>, vector<128x128xf32>, vector<64x128xf32> -> vector<64x128xf32>
    %c0_66 = arith.constant 0 : index
    %c0_67 = arith.constant 0 : index
    %93 = vector.load %arg8[%c0_66, %c0_67] : memref<64x128xf32, #tpu.memory_space<vmem>>, vector<64x128xf32>
    %94 = arith.addf %93, %92 : vector<64x128xf32>
    %c0_68 = arith.constant 0 : index
    %c0_69 = arith.constant 0 : index
    %95 = vector.load %arg8[%c0_68, %c0_69] : memref<64x128xf32, #tpu.memory_space<vmem>>, vector<64x128xf32>
    tpu.vector_store %arg8[%c0_68, %c0_69], %94 {strides = array<i32>} : memref<64x128xf32, #tpu.memory_space<vmem>>, vector<64x128xf32>,
    %96 = vector.extract_strided_slice %41 {offsets = [0, 2, 1, 0], sizes = [2, 4, 8, 128], strides = [1, 1, 1, 1]} : vector<2x6x10x128xf32> to vector<2x4x8x128xf32>
    %97 = vector.shape_cast %96 : vector<2x4x8x128xf32> to vector<64x128xf32>
    %c7 = arith.constant 7 : index
    %c0_70 = arith.constant 0 : index
    %c0_71 = arith.constant 0 : index
    %98 = vector.load %arg4[%c7, %c0_70, %c0_71] : memref<9x128x128xf32, #tpu.memory_space<vmem>>, vector<1x128x128xf32>
    %99 = vector.shape_cast %98 : vector<1x128x128xf32> to vector<128x128xf32>
    %cst_72 = arith.constant dense<0.000000e+00> : vector<64x128xf32>
    %100 = tpu.matmul %97, %99, %cst_72 {dimension_numbers = #tpu.dot_dimension_numbers<[1], [0], [0], [1], [0, 0, 1, 1], [], []>} : vector<64x128xf32>, vector<128x128xf32>, vector<64x128xf32> -> vector<64x128xf32>
    %c0_73 = arith.constant 0 : index
    %c0_74 = arith.constant 0 : index
    %101 = vector.load %arg8[%c0_73, %c0_74] : memref<64x128xf32, #tpu.memory_space<vmem>>, vector<64x128xf32>
    %102 = arith.addf %101, %100 : vector<64x128xf32>
    %c0_75 = arith.constant 0 : index
    %c0_76 = arith.constant 0 : index
    %103 = vector.load %arg8[%c0_75, %c0_76] : memref<64x128xf32, #tpu.memory_space<vmem>>, vector<64x128xf32>
    tpu.vector_store %arg8[%c0_75, %c0_76], %102 {strides = array<i32>} : memref<64x128xf32, #tpu.memory_space<vmem>>, vector<64x128xf32>,
    %104 = vector.extract_strided_slice %41 {offsets = [0, 2, 2, 0], sizes = [2, 4, 8, 128], strides = [1, 1, 1, 1]} : vector<2x6x10x128xf32> to vector<2x4x8x128xf32>
    %105 = vector.shape_cast %104 : vector<2x4x8x128xf32> to vector<64x128xf32>
    %c8 = arith.constant 8 : index
    %c0_77 = arith.constant 0 : index
    %c0_78 = arith.constant 0 : index
    %106 = vector.load %arg4[%c8, %c0_77, %c0_78] : memref<9x128x128xf32, #tpu.memory_space<vmem>>, vector<1x128x128xf32>
    %107 = vector.shape_cast %106 : vector<1x128x128xf32> to vector<128x128xf32>
    %cst_79 = arith.constant dense<0.000000e+00> : vector<64x128xf32>
    %108 = tpu.matmul %105, %107, %cst_79 {dimension_numbers = #tpu.dot_dimension_numbers<[1], [0], [0], [1], [0, 0, 1, 1], [], []>} : vector<64x128xf32>, vector<128x128xf32>, vector<64x128xf32> -> vector<64x128xf32>
    %c0_80 = arith.constant 0 : index
    %c0_81 = arith.constant 0 : index
    %109 = vector.load %arg8[%c0_80, %c0_81] : memref<64x128xf32, #tpu.memory_space<vmem>>, vector<64x128xf32>
    %110 = arith.addf %109, %108 : vector<64x128xf32>
    %c0_82 = arith.constant 0 : index
    %c0_83 = arith.constant 0 : index
    %111 = vector.load %arg8[%c0_82, %c0_83] : memref<64x128xf32, #tpu.memory_space<vmem>>, vector<64x128xf32>
    tpu.vector_store %arg8[%c0_82, %c0_83], %110 {strides = array<i32>} : memref<64x128xf32, #tpu.memory_space<vmem>>, vector<64x128xf32>,
    %c0_84 = arith.constant 0 : index
    %c0_85 = arith.constant 0 : index
    %112 = vector.load %arg8[%c0_84, %c0_85] : memref<64x128xf32, #tpu.memory_space<vmem>>, vector<64x128xf32>
    %113 = vector.shape_cast %112 : vector<64x128xf32> to vector<2x4x8x128xf32>
    %c0_86 = arith.constant 0 : index
    %c0_87 = arith.constant 0 : index
    %c0_88 = arith.constant 0 : index
    %c0_89 = arith.constant 0 : index
    %114 = vector.load %arg6[%c0_86, %c0_87, %c0_88, %c0_89] : memref<2x4x8x128xf32, #tpu.memory_space<vmem>>, vector<2x4x8x128xf32>
    tpu.vector_store %arg6[%c0_86, %c0_87, %c0_88, %c0_89], %113 {strides = array<i32>} : memref<2x4x8x128xf32, #tpu.memory_space<vmem>>, vector<2x4x8x128xf32>,
    %cst_90 = arith.constant dense<0.000000e+00> : vector<128xf32>
    %115 = vector.multi_reduction <add>, %112, %cst_90 [0] : vector<64x128xf32> to vector<128xf32>
    %116 = vector.shape_cast %115 : vector<128xf32> to vector<1x128xf32>
    %c0_91 = arith.constant 0 : index
    %c0_92 = arith.constant 0 : index
    %c0_93 = arith.constant 0 : index
    %117 = vector.load %arg7[%c0_91, %c0_92, %c0_93] : memref<1x2x128xf32, #tpu.memory_space<vmem>>, vector<1x1x128xf32>
    %118 = vector.shape_cast %117 : vector<1x1x128xf32> to vector<1x128xf32>
    %119 = vector.shape_cast %116 : vector<1x128xf32> to vector<1x1x128xf32>
    tpu.vector_store %arg7[%c0_91, %c0_92, %c0_93], %119 {strides = array<i32>} : memref<1x2x128xf32, #tpu.memory_space<vmem>>, vector<1x1x128xf32>,
    %120 = arith.mulf %112, %112 : vector<64x128xf32>
    %cst_94 = arith.constant dense<0.000000e+00> : vector<128xf32>
    %121 = vector.multi_reduction <add>, %120, %cst_94 [0] : vector<64x128xf32> to vector<128xf32>
    %122 = vector.shape_cast %121 : vector<128xf32> to vector<1x128xf32>
    %c0_95 = arith.constant 0 : index
    %c1_96 = arith.constant 1 : index
    %c0_97 = arith.constant 0 : index
    %123 = vector.load %arg7[%c0_95, %c1_96, %c0_97] : memref<1x2x128xf32, #tpu.memory_space<vmem>>, vector<1x1x128xf32>
    %124 = vector.shape_cast %123 : vector<1x1x128xf32> to vector<1x128xf32>
    %125 = vector.shape_cast %122 : vector<1x128xf32> to vector<1x1x128xf32>
    tpu.vector_store %arg7[%c0_95, %c1_96, %c0_97], %125 {strides = array<i32>} : memref<1x2x128xf32, #tpu.memory_space<vmem>>, vector<1x1x128xf32>,
    return
  }
  func.func @transform_0(%arg0: i32) -> (i32, i32, i32, i32) {
    %c0_i32 = arith.constant 0 : i32
    %c0_i32_0 = arith.constant 0 : i32
    %c0_i32_1 = arith.constant 0 : i32
    %c0_i32_2 = arith.constant 0 : i32
    return %c0_i32, %arg0, %c0_i32_0, %c0_i32_1 : i32, i32, i32, i32
  }
  func.func @transform_1(%arg0: i32) -> (i32, i32, i32, i32) {
    %c4_i32 = arith.constant 4 : i32
    %0 = arith.muli %arg0, %c4_i32 : i32
    %c1_i32 = arith.constant 1 : i32
    %1 = arith.subi %0, %c1_i32 : i32
    %c0_i32 = arith.constant 0 : i32
    %2 = arith.maxsi %1, %c0_i32 : i32
    %c0_i32_0 = arith.constant 0 : i32
    %c0_i32_1 = arith.constant 0 : i32
    %c0_i32_2 = arith.constant 0 : i32
    %c0_i32_3 = arith.constant 0 : i32
    return %c0_i32_0, %2, %c0_i32_1, %c0_i32_2 : i32, i32, i32, i32
  }
  func.func @transform_2(%arg0: i32) -> (i32, i32, i32, i32) {
    %c4_i32 = arith.constant 4 : i32
    %0 = arith.muli %arg0, %c4_i32 : i32
    %c4_i32_0 = arith.constant 4 : i32
    %1 = arith.addi %0, %c4_i32_0 : i32
    %c7_i32 = arith.constant 7 : i32
    %2 = arith.minsi %1, %c7_i32 : i32
    %c0_i32 = arith.constant 0 : i32
    %c0_i32_1 = arith.constant 0 : i32
    %c0_i32_2 = arith.constant 0 : i32
    %c0_i32_3 = arith.constant 0 : i32
    return %c0_i32, %2, %c0_i32_1, %c0_i32_2 : i32, i32, i32, i32
  }
  func.func @transform_3(%arg0: i32) -> (i32, i32, i32) {
    %c0_i32 = arith.constant 0 : i32
    %c0_i32_0 = arith.constant 0 : i32
    %c0_i32_1 = arith.constant 0 : i32
    %c0_i32_2 = arith.constant 0 : i32
    return %c0_i32, %c0_i32_0, %c0_i32_1 : i32, i32, i32
  }
  func.func @transform_4(%arg0: i32) -> (i32, i32) {
    %c0_i32 = arith.constant 0 : i32
    %c0_i32_0 = arith.constant 0 : i32
    %c0_i32_1 = arith.constant 0 : i32
    return %c0_i32, %c0_i32_0 : i32, i32
  }
  func.func @transform_5(%arg0: i32) -> (i32, i32, i32, i32) {
    %c0_i32 = arith.constant 0 : i32
    %c0_i32_0 = arith.constant 0 : i32
    %c0_i32_1 = arith.constant 0 : i32
    %c0_i32_2 = arith.constant 0 : i32
    return %c0_i32, %arg0, %c0_i32_0, %c0_i32_1 : i32, i32, i32, i32
  }
  func.func @transform_6(%arg0: i32) -> (i32, i32, i32) {
    %c0_i32 = arith.constant 0 : i32
    %c0_i32_0 = arith.constant 0 : i32
    %c0_i32_1 = arith.constant 0 : i32
    return %arg0, %c0_i32, %c0_i32_0 : i32, i32, i32
  }
}

module attributes {stable_mosaic.version = 11 : i64} {
  func.func @kernel(%arg0: i32, %arg1: memref<128x128xf32, #tpu.memory_space<vmem>>, %arg2: memref<128x128xf32, #tpu.memory_space<vmem>>, %arg3: memref<4x128xf32, #tpu.memory_space<vmem>>, %arg4: memref<128x128xf32, #tpu.memory_space<vmem>>) attributes {dimension_semantics = [#tpu.dimension_semantics<parallel>], iteration_bounds = array<i64: 1>, scalar_prefetch = 0 : i64, scratch_operands = 0 : i64, tpu.core_type = #tpu.core_type<tc>, window_params = [{transform_indices = @transform_0, window_bounds = array<i64: 128, 128>}, {transform_indices = @transform_1, window_bounds = array<i64: 128, 128>}, {pipeline_mode = #tpu.pipeline_mode<synchronous>, transform_indices = @transform_2, window_bounds = array<i64: 4, 128>}, {transform_indices = @transform_3, window_bounds = array<i64: 128, 128>}]} {
    %c0 = arith.constant 0 : index
    %c0_0 = arith.constant 0 : index
    %0 = vector.load %arg1[%c0, %c0_0] : memref<128x128xf32, #tpu.memory_space<vmem>>, vector<128x128xf32>
    %c0_1 = arith.constant 0 : index
    %c0_2 = arith.constant 0 : index
    %1 = vector.load %arg3[%c0_1, %c0_2] : memref<4x128xf32, #tpu.memory_space<vmem>>, vector<1x128xf32>
    %2 = vector.broadcast %1 : vector<1x128xf32> to vector<128x128xf32>
    %3 = arith.mulf %0, %2 : vector<128x128xf32>
    %c1 = arith.constant 1 : index
    %c0_3 = arith.constant 0 : index
    %4 = vector.load %arg3[%c1, %c0_3] : memref<4x128xf32, #tpu.memory_space<vmem>>, vector<1x128xf32>
    %5 = vector.broadcast %4 : vector<1x128xf32> to vector<128x128xf32>
    %6 = arith.addf %3, %5 : vector<128x128xf32>
    %c0_4 = arith.constant 0 : index
    %c0_5 = arith.constant 0 : index
    %7 = vector.load %arg2[%c0_4, %c0_5] : memref<128x128xf32, #tpu.memory_space<vmem>>, vector<128x128xf32>
    %c2 = arith.constant 2 : index
    %c0_6 = arith.constant 0 : index
    %8 = vector.load %arg3[%c2, %c0_6] : memref<4x128xf32, #tpu.memory_space<vmem>>, vector<1x128xf32>
    %9 = vector.broadcast %8 : vector<1x128xf32> to vector<128x128xf32>
    %10 = arith.mulf %7, %9 : vector<128x128xf32>
    %11 = arith.addf %6, %10 : vector<128x128xf32>
    %c3 = arith.constant 3 : index
    %c0_7 = arith.constant 0 : index
    %12 = vector.load %arg3[%c3, %c0_7] : memref<4x128xf32, #tpu.memory_space<vmem>>, vector<1x128xf32>
    %13 = vector.broadcast %12 : vector<1x128xf32> to vector<128x128xf32>
    %14 = arith.addf %11, %13 : vector<128x128xf32>
    %cst = arith.constant 0.000000e+00 : f32
    %15 = vector.broadcast %cst : f32 to vector<128x128xf32>
    %16 = arith.maximumf %14, %15 : vector<128x128xf32>
    %c0_8 = arith.constant 0 : index
    %c0_9 = arith.constant 0 : index
    %17 = vector.load %arg4[%c0_8, %c0_9] : memref<128x128xf32, #tpu.memory_space<vmem>>, vector<128x128xf32>
    tpu.vector_store %arg4[%c0_8, %c0_9], %16 {strides = array<i32>} : memref<128x128xf32, #tpu.memory_space<vmem>>, vector<128x128xf32>,
    return
  }
  func.func @transform_0(%arg0: i32) -> (i32, i32) {
    %c0_i32 = arith.constant 0 : i32
    %c0_i32_0 = arith.constant 0 : i32
    return %arg0, %c0_i32 : i32, i32
  }
  func.func @transform_1(%arg0: i32) -> (i32, i32) {
    %c0_i32 = arith.constant 0 : i32
    %c0_i32_0 = arith.constant 0 : i32
    return %arg0, %c0_i32 : i32, i32
  }
  func.func @transform_2(%arg0: i32) -> (i32, i32) {
    %c0_i32 = arith.constant 0 : i32
    %c0_i32_0 = arith.constant 0 : i32
    %c0_i32_1 = arith.constant 0 : i32
    return %c0_i32, %c0_i32_0 : i32, i32
  }
  func.func @transform_3(%arg0: i32) -> (i32, i32) {
    %c0_i32 = arith.constant 0 : i32
    %c0_i32_0 = arith.constant 0 : i32
    return %arg0, %c0_i32 : i32, i32
  }
}

module attributes {stable_mosaic.version = 11 : i64} {
  func.func @_matmul_stats_kernel(%arg0: i32, %arg1: memref<128x128xf32, #tpu.memory_space<vmem>>, %arg2: memref<128x128xf32, #tpu.memory_space<vmem>>, %arg3: memref<128x128xf32, #tpu.memory_space<vmem>>, %arg4: memref<1x2x128xf32, #tpu.memory_space<vmem>>) attributes {dimension_semantics = [#tpu.dimension_semantics<parallel>], iteration_bounds = array<i64: 1>, scalar_prefetch = 0 : i64, scratch_operands = 0 : i64, tpu.core_type = #tpu.core_type<tc>, window_params = [{transform_indices = @transform_0, window_bounds = array<i64: 128, 128>}, {pipeline_mode = #tpu.pipeline_mode<synchronous>, transform_indices = @transform_1, window_bounds = array<i64: 128, 128>}, {transform_indices = @transform_2, window_bounds = array<i64: 128, 128>}, {transform_indices = @transform_3, window_bounds = array<i64: 1, 2, 128>}]} {
    %c0 = arith.constant 0 : index
    %c0_0 = arith.constant 0 : index
    %0 = vector.load %arg1[%c0, %c0_0] : memref<128x128xf32, #tpu.memory_space<vmem>>, vector<128x128xf32>
    %c0_1 = arith.constant 0 : index
    %c0_2 = arith.constant 0 : index
    %1 = vector.load %arg2[%c0_1, %c0_2] : memref<128x128xf32, #tpu.memory_space<vmem>>, vector<128x128xf32>
    %cst = arith.constant dense<0.000000e+00> : vector<128x128xf32>
    %2 = tpu.matmul %0, %1, %cst {dimension_numbers = #tpu.dot_dimension_numbers<[1], [0], [0], [1], [0, 0, 1, 1], [], []>} : vector<128x128xf32>, vector<128x128xf32>, vector<128x128xf32> -> vector<128x128xf32>
    %c0_3 = arith.constant 0 : index
    %c0_4 = arith.constant 0 : index
    %3 = vector.load %arg3[%c0_3, %c0_4] : memref<128x128xf32, #tpu.memory_space<vmem>>, vector<128x128xf32>
    tpu.vector_store %arg3[%c0_3, %c0_4], %2 {strides = array<i32>} : memref<128x128xf32, #tpu.memory_space<vmem>>, vector<128x128xf32>,
    %cst_5 = arith.constant dense<0.000000e+00> : vector<128xf32>
    %4 = vector.multi_reduction <add>, %2, %cst_5 [0] : vector<128x128xf32> to vector<128xf32>
    %5 = vector.shape_cast %4 : vector<128xf32> to vector<1x128xf32>
    %c0_6 = arith.constant 0 : index
    %c0_7 = arith.constant 0 : index
    %c0_8 = arith.constant 0 : index
    %6 = vector.load %arg4[%c0_6, %c0_7, %c0_8] : memref<1x2x128xf32, #tpu.memory_space<vmem>>, vector<1x1x128xf32>
    %7 = vector.shape_cast %6 : vector<1x1x128xf32> to vector<1x128xf32>
    %8 = vector.shape_cast %5 : vector<1x128xf32> to vector<1x1x128xf32>
    tpu.vector_store %arg4[%c0_6, %c0_7, %c0_8], %8 {strides = array<i32>} : memref<1x2x128xf32, #tpu.memory_space<vmem>>, vector<1x1x128xf32>,
    %9 = arith.mulf %2, %2 : vector<128x128xf32>
    %cst_9 = arith.constant dense<0.000000e+00> : vector<128xf32>
    %10 = vector.multi_reduction <add>, %9, %cst_9 [0] : vector<128x128xf32> to vector<128xf32>
    %11 = vector.shape_cast %10 : vector<128xf32> to vector<1x128xf32>
    %c0_10 = arith.constant 0 : index
    %c1 = arith.constant 1 : index
    %c0_11 = arith.constant 0 : index
    %12 = vector.load %arg4[%c0_10, %c1, %c0_11] : memref<1x2x128xf32, #tpu.memory_space<vmem>>, vector<1x1x128xf32>
    %13 = vector.shape_cast %12 : vector<1x1x128xf32> to vector<1x128xf32>
    %14 = vector.shape_cast %11 : vector<1x128xf32> to vector<1x1x128xf32>
    tpu.vector_store %arg4[%c0_10, %c1, %c0_11], %14 {strides = array<i32>} : memref<1x2x128xf32, #tpu.memory_space<vmem>>, vector<1x1x128xf32>,
    return
  }
  func.func @transform_0(%arg0: i32) -> (i32, i32) {
    %c0_i32 = arith.constant 0 : i32
    %c0_i32_0 = arith.constant 0 : i32
    return %arg0, %c0_i32 : i32, i32
  }
  func.func @transform_1(%arg0: i32) -> (i32, i32) {
    %c0_i32 = arith.constant 0 : i32
    %c0_i32_0 = arith.constant 0 : i32
    %c0_i32_1 = arith.constant 0 : i32
    return %c0_i32, %c0_i32_0 : i32, i32
  }
  func.func @transform_2(%arg0: i32) -> (i32, i32) {
    %c0_i32 = arith.constant 0 : i32
    %c0_i32_0 = arith.constant 0 : i32
    return %arg0, %c0_i32 : i32, i32
  }
  func.func @transform_3(%arg0: i32) -> (i32, i32, i32) {
    %c0_i32 = arith.constant 0 : i32
    %c0_i32_0 = arith.constant 0 : i32
    %c0_i32_1 = arith.constant 0 : i32
    return %arg0, %c0_i32, %c0_i32_0 : i32, i32, i32
  }
}

</mosaic_0001>

<bundles_post_ra>
// kernel: basic_block_forward.6
= control target key start
LH: loop header
LB: loop body
LE: loop exit
PB: predicated region body
PF: predicated region fallthrough
CT: control target
= control target key end

     0   :  { %s412_s1 = inlined_call_operand.vmem [shape: f32[128,128], index: 1, kind: input, shape index: {}]   ;;  %s413_s0 = inlined_call_operand.vmem [shape: f32[128,128], index: 0, kind: input, shape index: {}]   ;;  %s414_s2 = inlined_call_operand.vmem [shape: f32[128,128], index: 2, kind: output, shape index: {0}]   ;;  %s415_s3 = inlined_call_operand.vmem [shape: f32[1,2,128], index: 3, kind: output, shape index: {1}]  }
   0x1   :  { %v44_v0 = vld [vmem:[%s412_s1 + $0x78] sm:$0xff]  ;;  %v43_v1 = vld [vmem:[%s412_s1 + $0x70] sm:$0xff]  ;;  %v42_v2 = vld [vmem:[%s412_s1 + $0x68] sm:$0xff] }
   0x2   :  { %45 = vmatpush.msra.mxu0 %v44_v0  ;;  %194 = vmatpush.msra.mxu1 %v44_v0  ;;  %v41_v3 = vld [vmem:[%s412_s1 + $0x60] sm:$0xff]  ;;  %v40_v4 = vld [vmem:[%s412_s1 + $0x58] sm:$0xff]  ;;  %v39_v5 = vld [vmem:[%s412_s1 + $0x50] sm:$0xff] }
   0x3   :  { %195 = vmatpush.msra.mxu2 %v44_v0  ;;  %196 = vmatpush.msra.mxu3 %v44_v0  ;;  %v38_v6 = vld [vmem:[%s412_s1 + $0x48] sm:$0xff]  ;;  %v37_v7 = vld [vmem:[%s412_s1 + $0x40] sm:$0xff]  ;;  %v36_v8 = vld [vmem:[%s412_s1 + $0x38] sm:$0xff] }
   0x4   :  { %46 = vmatpush.msra.mxu0 %v43_v1  ;;  %197 = vmatpush.msra.mxu1 %v43_v1  ;;  %v35_v9 = vld [vmem:[%s412_s1 + $0x30] sm:$0xff]  ;;  %v34_v10 = vld [vmem:[%s412_s1 + $0x28] sm:$0xff]  ;;  %v33_v11 = vld [vmem:[%s412_s1 + $0x20] sm:$0xff] }
   0x5   :  { %198 = vmatpush.msra.mxu2 %v43_v1  ;;  %199 = vmatpush.msra.mxu3 %v43_v1  ;;  %v32_v12 = vld [vmem:[%s412_s1 + $0x18] sm:$0xff]  ;;  %v31_v13 = vld [vmem:[%s412_s1 + $0x10] sm:$0xff]  ;;  %v30_v14 = vld [vmem:[%s412_s1 + $0x8] sm:$0xff] }
   0x6   :  { %47 = vmatpush.msra.mxu0 %v42_v2  ;;  %200 = vmatpush.msra.mxu1 %v42_v2  ;;  %v29_v15 = vld [vmem:[%s412_s1] sm:$0xff]  ;;  %v14_v20 = vld [vmem:[%s413_s0 + $0x8] sm:$0xff]  ;;  %v15_v24 = vld [vmem:[%s413_s0 + $0x10] sm:$0xff] }
   0x7   :  { %201 = vmatpush.msra.mxu2 %v42_v2  ;;  %202 = vmatpush.msra.mxu3 %v42_v2  ;;  %v13_v16 = vld [vmem:[%s413_s0] sm:$0xff]  ;;  %v18_v21 = vld [vmem:[%s413_s0 + $0x28] sm:$0xff]  ;;  %v19_v25 = vld [vmem:[%s413_s0 + $0x30] sm:$0xff] }
   0x8   :  { %48 = vmatpush.msra.mxu0 %v41_v3  ;;  %203 = vmatpush.msra.mxu1 %v41_v3  ;;  %v17_v17 = vld [vmem:[%s413_s0 + $0x20] sm:$0xff]  ;;  %v22_v22 = vld [vmem:[%s413_s0 + $0x48] sm:$0xff]  ;;  %v23_v26 = vld [vmem:[%s413_s0 + $0x50] sm:$0xff] }
   0x9   :  { %204 = vmatpush.msra.mxu2 %v41_v3  ;;  %205 = vmatpush.msra.mxu3 %v41_v3  ;;  %v21_v18 = vld [vmem:[%s413_s0 + $0x40] sm:$0xff]  ;;  %v26_v23 = vld [vmem:[%s413_s0 + $0x68] sm:$0xff]  ;;  %v27_v27 = vld [vmem:[%s413_s0 + $0x70] sm:$0xff] }
   0xa   :  { %49 = vmatpush.msra.mxu0 %v40_v4  ;;  %206 = vmatpush.msra.mxu1 %v40_v4  ;;  %v25_v19 = vld [vmem:[%s413_s0 + $0x60] sm:$0xff]  ;;  %v16_v28 = vld [vmem:[%s413_s0 + $0x18] sm:$0xff] }
   0xb   :  { %207 = vmatpush.msra.mxu2 %v40_v4  ;;  %208 = vmatpush.msra.mxu3 %v40_v4  ;;  %v20_v29 = vld [vmem:[%s413_s0 + $0x38] sm:$0xff] }
   0xc   :  { %50 = vmatpush.msra.mxu0 %v39_v5  ;;  %209 = vmatpush.msra.mxu1 %v39_v5  ;;  %v24_v30 = vld [vmem:[%s413_s0 + $0x58] sm:$0xff] }
   0xd   :  { %210 = vmatpush.msra.mxu2 %v39_v5  ;;  %211 = vmatpush.msra.mxu3 %v39_v5  ;;  %v28_v31 = vld [vmem:[%s413_s0 + $0x78] sm:$0xff] }
   0xe   :  { %51 = vmatpush.msra.mxu0 %v38_v6  ;;  %212 = vmatpush.msra.mxu1 %v38_v6 }
   0xf   :  { %213 = vmatpush.msra.mxu2 %v38_v6  ;;  %214 = vmatpush.msra.mxu3 %v38_v6 }
  0x10   :  { %52 = vmatpush.msra.mxu0 %v37_v7  ;;  %215 = vmatpush.msra.mxu1 %v37_v7 }
  0x11   :  { %216 = vmatpush.msra.mxu2 %v37_v7  ;;  %217 = vmatpush.msra.mxu3 %v37_v7 }
  0x12   :  { %53 = vmatpush.msra.mxu0 %v36_v8  ;;  %218 = vmatpush.msra.mxu1 %v36_v8 }
  0x13   :  { %219 = vmatpush.msra.mxu2 %v36_v8  ;;  %220 = vmatpush.msra.mxu3 %v36_v8 }
  0x14   :  { %54 = vmatpush.msra.mxu0 %v35_v9  ;;  %221 = vmatpush.msra.mxu1 %v35_v9 }
  0x15   :  { %222 = vmatpush.msra.mxu2 %v35_v9  ;;  %223 = vmatpush.msra.mxu3 %v35_v9 }
  0x16   :  { %55 = vmatpush.msra.mxu0 %v34_v10  ;;  %224 = vmatpush.msra.mxu1 %v34_v10 }
  0x17   :  { %225 = vmatpush.msra.mxu2 %v34_v10  ;;  %226 = vmatpush.msra.mxu3 %v34_v10 }
  0x18   :  { %56 = vmatpush.msra.mxu0 %v33_v11  ;;  %227 = vmatpush.msra.mxu1 %v33_v11 }
  0x19   :  { %228 = vmatpush.msra.mxu2 %v33_v11  ;;  %229 = vmatpush.msra.mxu3 %v33_v11 }
  0x1a   :  { %57 = vmatpush.msra.mxu0 %v32_v12  ;;  %230 = vmatpush.msra.mxu1 %v32_v12 }
  0x1b   :  { %231 = vmatpush.msra.mxu2 %v32_v12  ;;  %232 = vmatpush.msra.mxu3 %v32_v12 }
  0x1c   :  { %58 = vmatpush.msra.mxu0 %v31_v13  ;;  %233 = vmatpush.msra.mxu1 %v31_v13 }
  0x1d   :  { %234 = vmatpush.msra.mxu2 %v31_v13  ;;  %235 = vmatpush.msra.mxu3 %v31_v13 }
  0x1e   :  { %59 = vmatpush.msra.mxu0 %v30_v14  ;;  %236 = vmatpush.msra.mxu1 %v30_v14 }
  0x1f   :  { %237 = vmatpush.msra.mxu2 %v30_v14  ;;  %238 = vmatpush.msra.mxu3 %v30_v14 }
  0x20   :  { %60 = vmatpush.msra.mxu0 %v29_v15  ;;  %239 = vmatpush.msra.mxu1 %v29_v15 }
  0x21   :  { %61 = vmatmul.f32.vlgmr.msra.gmra.mxu0 %v13_v16  ;;  %73 = vmatmul.f32.vlgmr.msra.gmra.mxu1 %v17_v17 }
  0x22   :  { %240 = vmatpush.msra.mxu2 %v29_v15  ;;  %241 = vmatpush.msra.mxu3 %v29_v15 }
  0x23   :  { %85 = vmatmul.f32.vlgmr.msra.gmra.mxu2 %v21_v18  ;;  %97 = vmatmul.f32.vlgmr.msra.gmra.mxu3 %v25_v19 }
  0x29   :  { %64 = vmatmul.f32.gmra.mxu0 %v14_v20  ;;  %76 = vmatmul.f32.gmra.mxu1 %v18_v21 }
  0x2b   :  { %88 = vmatmul.f32.gmra.mxu2 %v22_v22  ;;  %100 = vmatmul.f32.gmra.mxu3 %v26_v23 }
  0x31   :  { %67 = vmatmul.f32.gmra.mxu0 %v15_v24  ;;  %79 = vmatmul.f32.gmra.mxu1 %v19_v25 }
  0x33   :  { %91 = vmatmul.f32.gmra.mxu2 %v23_v26  ;;  %103 = vmatmul.f32.gmra.mxu3 %v27_v27 }
  0x39   :  { %70 = vmatmul.f32.gmra.mxu0 %v16_v28  ;;  %82 = vmatmul.f32.gmra.mxu1 %v20_v29 }
  0x3b   :  { %94 = vmatmul.f32.gmra.mxu2 %v24_v30  ;;  %106 = vmatmul.f32.gmra.mxu3 %v28_v31 }
  0x9e   :  { %v62_v32 = vpop.f32.mrf.mxu0  ;;  %v74_v33 = vpop.f32.mrf.mxu1 }
  0x9f   :  { %110 = vst [vmem:[%s414_s2] sm:$0xff] %v62_v32  ;;  %v148_v43 = vmul.f32 %v62_v32, %v62_v32  ;;  %v152_v55 = vmul.f32 %v74_v33, %v74_v33 }
  0xa0   :  { %114 = vst [vmem:[%s414_s2 + $0x20] sm:$0xff] %v74_v33 }
  0xa6   :  { %v65_v34 = vpop.f32.mrf.mxu0  ;;  %v77_v35 = vpop.f32.mrf.mxu1 }
  0xa7   :  { %111 = vst [vmem:[%s414_s2 + $0x8] sm:$0xff] %v65_v34  ;;  %v86_v36 = vpop.f32.mrf.mxu2  ;;  %v98_v37 = vpop.f32.mrf.mxu3  ;;  %v149_v42 = vmul.f32 %v65_v34, %v65_v34  ;;  %v126_v44 = vadd.f32 %v65_v34, %v62_v32  ;;  %v153_v58 = vmul.f32 %v77_v35, %v77_v35 }
  0xa8   :  { %115 = vst [vmem:[%s414_s2 + $0x28] sm:$0xff] %v77_v35  ;;  %v156_v5 = vmul.f32 %v86_v36, %v86_v36  ;;  %v160_v17 = vmul.f32 %v98_v37, %v98_v37 }
  0xa9   :  { %118 = vst [vmem:[%s414_s2 + $0x40] sm:$0xff] %v86_v36  ;;  %v164_v46 = vadd.f32 %v149_v42, %v148_v43 }
  0xaa   :  { %122 = vst [vmem:[%s414_s2 + $0x60] sm:$0xff] %v98_v37 }
  0xae   :  { %v68_v38 = vpop.f32.mrf.mxu0  ;;  %v80_v39 = vpop.f32.mrf.mxu1 }
  0xaf   :  { %112 = vst [vmem:[%s414_s2 + $0x10] sm:$0xff] %v68_v38  ;;  %v89_v40 = vpop.f32.mrf.mxu2  ;;  %v101_v41 = vpop.f32.mrf.mxu3  ;;  %v150_v45 = vmul.f32 %v68_v38, %v68_v38  ;;  %v127_v47 = vadd.f32 %v126_v44, %v68_v38  ;;  %v154_v62 = vmul.f32 %v80_v39, %v80_v39 }
  0xb0   :  { %116 = vst [vmem:[%s414_s2 + $0x30] sm:$0xff] %v80_v39  ;;  %v157_v8 = vmul.f32 %v89_v40, %v89_v40  ;;  %v161_v20 = vmul.f32 %v101_v41, %v101_v41 }
  0xb1   :  { %119 = vst [vmem:[%s414_s2 + $0x48] sm:$0xff] %v89_v40  ;;  %v165_v50 = vadd.f32 %v164_v46, %v150_v45 }
  0xb2   :  { %123 = vst [vmem:[%s414_s2 + $0x68] sm:$0xff] %v101_v41 }
  0xb6   :  { %v71_v48 = vpop.f32.mrf.mxu0  ;;  %v83_v49 = vpop.f32.mrf.mxu1 }
  0xb7   :  { %113 = vst [vmem:[%s414_s2 + $0x18] sm:$0xff] %v71_v48  ;;  %v128_v51 = vadd.f32 %v127_v47, %v71_v48  ;;  %v151_v52 = vmul.f32 %v71_v48, %v71_v48  ;;  %v92_v53 = vpop.f32.mrf.mxu2  ;;  %v104_v54 = vpop.f32.mrf.mxu3  ;;  %v155_v0 = vmul.f32 %v83_v49, %v83_v49 }
  0xb8   :  { %117 = vst [vmem:[%s414_s2 + $0x38] sm:$0xff] %v83_v49  ;;  %v158_v12 = vmul.f32 %v92_v53, %v92_v53  ;;  %v162_v24 = vmul.f32 %v104_v54, %v104_v54 }
  0xb9   :  { %v129_v56 = vadd.f32 %v128_v51, %v74_v33  ;;  %v166_v57 = vadd.f32 %v165_v50, %v151_v52  ;;  %120 = vst [vmem:[%s414_s2 + $0x50] sm:$0xff] %v92_v53 }
  0xba   :  { %124 = vst [vmem:[%s414_s2 + $0x70] sm:$0xff] %v104_v54 }
  0xbb   :  { %v167_v59 = vadd.f32 %v166_v57, %v152_v55  ;;  %v130_v60 = vadd.f32 %v129_v56, %v77_v35 }
  0xbd   :  { %v131_v61 = vadd.f32 %v130_v60, %v80_v39  ;;  %v168_v63 = vadd.f32 %v167_v59, %v153_v58 }
  0xbf   :  { %v169_v1 = vadd.f32 %v168_v63, %v154_v62  ;;  %v132_v2 = vadd.f32 %v131_v61, %v83_v49  ;;  %v95_v3 = vpop.f32.mrf.mxu2  ;;  %v107_v4 = vpop.f32.mrf.mxu3 }
  0xc0   :  { %121 = vst [vmem:[%s414_s2 + $0x58] sm:$0xff] %v95_v3  ;;  %v159_v14 = vmul.f32 %v95_v3, %v95_v3  ;;  %v163_v26 = vmul.f32 %v107_v4, %v107_v4 }
  0xc1   :  { %v133_v6 = vadd.f32 %v132_v2, %v86_v36  ;;  %v170_v7 = vadd.f32 %v169_v1, %v155_v0  ;;  %125 = vst [vmem:[%s414_s2 + $0x78] sm:$0xff] %v107_v4 }
  0xc3   :  { %v171_v9 = vadd.f32 %v170_v7, %v156_v5  ;;  %v134_v10 = vadd.f32 %v133_v6, %v89_v40 }
  0xc5   :  { %v135_v11 = vadd.f32 %v134_v10, %v92_v53  ;;  %v172_v13 = vadd.f32 %v171_v9, %v157_v8 }
  0xc7   :  { %v173_v15 = vadd.f32 %v172_v13, %v158_v12  ;;  %v136_v16 = vadd.f32 %v135_v11, %v95_v3 }
  0xc9   :  { %v137_v18 = vadd.f32 %v136_v16, %v98_v37  ;;  %v174_v19 = vadd.f32 %v173_v15, %v159_v14 }
  0xcb   :  { %v175_v21 = vadd.f32 %v174_v19, %v160_v17  ;;  %v138_v22 = vadd.f32 %v137_v18, %v101_v41 }
  0xcd   :  { %v139_v23 = vadd.f32 %v138_v22, %v104_v54  ;;  %v176_v25 = vadd.f32 %v175_v21, %v161_v20 }
  0xcf   :  { %v177_v27 = vadd.f32 %v176_v25, %v162_v24  ;;  %v140_v28 = vadd.f32 %v139_v23, %v107_v4 }
  0xd1   :  { %v141_v29 = vrot.slane %v140_v28, 4  ;;  %v178_v30 = vadd.f32 %v177_v27, %v163_v26 }
  0xd3   :  { %v142_v31 = vadd.f32 %v141_v29, %v140_v28  ;;  %v179_v32 = vrot.slane %v178_v30, 4 }
  0xd5   :  { %v143_v33 = vrot.slane %v142_v31, 2  ;;  %v180_v34 = vadd.f32 %v179_v32, %v178_v30 }
  0xd7   :  { %v144_v35 = vadd.f32 %v143_v33, %v142_v31  ;;  %v181_v36 = vrot.slane %v180_v34, 2 }
  0xd9   :  { %v145_v38 = vrot.slane %v144_v35, 1  ;;  %v182_v37 = vadd.f32 %v181_v36, %v180_v34 }
  0xdb   :  { %v146_v39 = vadd.f32 %v145_v38, %v144_v35  ;;  %v183_v40 = vrot.slane %v182_v37, 1 }
  0xdd   :  { %147 = vst [vmem:[%s415_s3] sm:$0x1] %v146_v39  ;;  %v184_v41 = vadd.f32 %v183_v40, %v182_v37 }
  0xdf   :  { %185 = vst [vmem:[%s415_s3 + $0x1] sm:$0x1] %v184_v41 }

// kernel: basic_block_forward.7
= control target key start
LH: loop header
LB: loop body
LE: loop exit
PB: predicated region body
PF: predicated region fallthrough
CT: control target
= control target key end

     0   :  { %s422_s0 = inlined_call_operand.vmem [shape: f32[128,128], index: 0, kind: input, shape index: {}]   ;;  %s423_s1 = inlined_call_operand.vmem [shape: f32[128,128], index: 1, kind: input, shape index: {}]   ;;  %s424_s2 = inlined_call_operand.vmem [shape: f32[4,128], index: 2, kind: input, shape index: {}]   ;;  %s425_s3 = inlined_call_operand.vmem [shape: f32[128,128], index: 3, kind: output, shape index: {}]  }
   0x1   :  { %v14_v0 = vld [vmem:[%s422_s0] sm:$0xff]  ;;  %v15_v7 = vld [vmem:[%s422_s0 + $0x8] sm:$0xff]  ;;  %v16_v13 = vld [vmem:[%s422_s0 + $0x10] sm:$0xff] }
   0x2   :  { %v200_v1 = vld [vmem:[%s424_s2] ss:$0 sm:$0xff]  ;;  %v205_v2 = vld [vmem:[%s424_s2 + $0x1] ss:$0 sm:$0xff]  ;;  %v214_v5 = vld [vmem:[%s424_s2 + $0x2] ss:$0 sm:$0xff] }
   0x3   :  { %v66_v3 = vld [vmem:[%s423_s1] sm:$0xff]  ;;  %v32_v4 = vmul.f32 %v200_v1, %v14_v0  ;;  %v67_v8 = vld [vmem:[%s423_s1 + $0x8] sm:$0xff]  ;;  %v33_v11 = vmul.f32 %v200_v1, %v15_v7  ;;  %v68_v14 = vld [vmem:[%s423_s1 + $0x10] sm:$0xff]  ;;  %v34_v16 = vmul.f32 %v200_v1, %v16_v13 }
   0x4   :  { %v219_v6 = vld [vmem:[%s424_s2 + $0x3] ss:$0 sm:$0xff]  ;;  %v84_v10 = vmul.f32 %v214_v5, %v66_v3  ;;  %v85_v12 = vmul.f32 %v214_v5, %v67_v8  ;;  %v17_v15 = vld [vmem:[%s422_s0 + $0x18] sm:$0xff]  ;;  %v86_v17 = vmul.f32 %v214_v5, %v68_v14  ;;  %v19_v26 = vld [vmem:[%s422_s0 + $0x28] sm:$0xff] }
   0x5   :  { %v50_v9 = vadd.f32 %v205_v2, %v32_v4  ;;  %v35_v18 = vmul.f32 %v200_v1, %v17_v15  ;;  %v69_v19 = vld [vmem:[%s423_s1 + $0x18] sm:$0xff]  ;;  %v18_v20 = vld [vmem:[%s422_s0 + $0x20] sm:$0xff]  ;;  %v51_v23 = vadd.f32 %v205_v2, %v33_v11  ;;  %v71_v27 = vld [vmem:[%s423_s1 + $0x28] sm:$0xff]  ;;  %v52_v29 = vadd.f32 %v205_v2, %v34_v16 }
   0x6   :  { %v70_v21 = vld [vmem:[%s423_s1 + $0x20] sm:$0xff]  ;;  %v87_v24 = vmul.f32 %v214_v5, %v69_v19  ;;  %v36_v25 = vmul.f32 %v200_v1, %v18_v20  ;;  %v20_v28 = vld [vmem:[%s422_s0 + $0x30] sm:$0xff]  ;;  %v37_v32 = vmul.f32 %v200_v1, %v19_v26  ;;  %v89_v37 = vmul.f32 %v214_v5, %v71_v27  ;;  %v21_v42 = vld [vmem:[%s422_s0 + $0x38] sm:$0xff] }
   0x7   :  { %v100_v22 = vadd.f32 %v84_v10, %v50_v9  ;;  %v53_v30 = vadd.f32 %v205_v2, %v35_v18  ;;  %v88_v31 = vmul.f32 %v214_v5, %v70_v21  ;;  %v72_v33 = vld [vmem:[%s423_s1 + $0x30] sm:$0xff]  ;;  %v101_v35 = vadd.f32 %v85_v12, %v51_v23  ;;  %v73_v43 = vld [vmem:[%s423_s1 + $0x38] sm:$0xff]  ;;  %v22_v52 = vld [vmem:[%s422_s0 + $0x40] sm:$0xff] }
   0x8   :  { %v54_v36 = vadd.f32 %v205_v2, %v36_v25  ;;  %v102_v38 = vadd.f32 %v86_v17, %v52_v29  ;;  %v55_v40 = vadd.f32 %v205_v2, %v37_v32  ;;  %v38_v41 = vmul.f32 %v200_v1, %v20_v28  ;;  %v74_v53 = vld [vmem:[%s423_s1 + $0x40] sm:$0xff]  ;;  %v23_v58 = vld [vmem:[%s422_s0 + $0x48] sm:$0xff]  ;;  %v24_v0 = vld [vmem:[%s422_s0 + $0x50] sm:$0xff] }
   0x9   :  { %v118_v34 = vadd.f32 %v219_v6, %v100_v22  ;;  %v103_v39 = vadd.f32 %v87_v24, %v53_v30  ;;  %v119_v45 = vadd.f32 %v219_v6, %v101_v35  ;;  %v90_v47 = vmul.f32 %v214_v5, %v72_v33  ;;  %v75_v59 = vld [vmem:[%s423_s1 + $0x48] sm:$0xff]  ;;  %v76_v3 = vld [vmem:[%s423_s1 + $0x50] sm:$0xff]  ;;  %v25_v10 = vld [vmem:[%s422_s0 + $0x58] sm:$0xff] }
   0xa   :  { %v104_v46 = vadd.f32 %v88_v31, %v54_v36  ;;  %v120_v48 = vadd.f32 %v219_v6, %v102_v38  ;;  %v105_v50 = vadd.f32 %v89_v37, %v55_v40  ;;  %v56_v51 = vadd.f32 %v205_v2, %v38_v41  ;;  %v77_v11 = vld [vmem:[%s423_s1 + $0x58] sm:$0xff]  ;;  %v26_v16 = vld [vmem:[%s422_s0 + $0x60] sm:$0xff]  ;;  %v27_v22 = vld [vmem:[%s422_s0 + $0x68] sm:$0xff] }
   0xb   :  { %v134_v44 = vmax.f32 %v118_v34, 0.0  ;;  %v121_v49 = vadd.f32 %v219_v6, %v103_v39  ;;  %v135_v54 = vmax.f32 %v119_v45, 0.0  ;;  %v39_v56 = vmul.f32 %v200_v1, %v21_v42  ;;  %v78_v21 = vld [vmem:[%s423_s1 + $0x60] sm:$0xff]  ;;  %v79_v31 = vld [vmem:[%s423_s1 + $0x68] sm:$0xff]  ;;  %v28_v36 = vld [vmem:[%s422_s0 + $0x70] sm:$0xff] }
   0xc   :  { %v122_v55 = vadd.f32 %v219_v6, %v104_v46  ;;  %v91_v57 = vmul.f32 %v214_v5, %v73_v43  ;;  %v136_v60 = vmax.f32 %v120_v48, 0.0  ;;  %v123_v62 = vadd.f32 %v219_v6, %v105_v50  ;;  %v80_v41 = vld [vmem:[%s423_s1 + $0x70] sm:$0xff]  ;;  %v29_v46 = vld [vmem:[%s422_s0 + $0x78] sm:$0xff] }
   0xd   :  { %150 = vst [vmem:[%s425_s3] sm:$0xff] %v134_v44  ;;  %v137_v61 = vmax.f32 %v121_v49, 0.0  ;;  %v106_v63 = vadd.f32 %v90_v47, %v56_v51  ;;  %v57_v7 = vadd.f32 %v205_v2, %v39_v56  ;;  %v40_v8 = vmul.f32 %v200_v1, %v22_v52  ;;  %v81_v51 = vld [vmem:[%s423_s1 + $0x78] sm:$0xff] }
   0xe   :  { %151 = vst [vmem:[%s425_s3 + $0x8] sm:$0xff] %v135_v54  ;;  %v138_v4 = vmax.f32 %v122_v55, 0.0  ;;  %v92_v9 = vmul.f32 %v214_v5, %v74_v53  ;;  %v139_v12 = vmax.f32 %v123_v62, 0.0  ;;  %v41_v14 = vmul.f32 %v200_v1, %v23_v58 }
   0xf   :  { %152 = vst [vmem:[%s425_s3 + $0x10] sm:$0xff] %v136_v60  ;;  %v124_v13 = vadd.f32 %v219_v6, %v106_v63  ;;  %v93_v15 = vmul.f32 %v214_v5, %v75_v59  ;;  %v107_v17 = vadd.f32 %v91_v57, %v57_v7  ;;  %v58_v18 = vadd.f32 %v205_v2, %v40_v8 }
  0x10   :  { %153 = vst [vmem:[%s425_s3 + $0x18] sm:$0xff] %v137_v61  ;;  %v42_v19 = vmul.f32 %v200_v1, %v24_v0  ;;  %v94_v20 = vmul.f32 %v214_v5, %v76_v3  ;;  %v59_v24 = vadd.f32 %v205_v2, %v41_v14  ;;  %v43_v25 = vmul.f32 %v200_v1, %v25_v10 }
  0x11   :  { %154 = vst [vmem:[%s425_s3 + $0x20] sm:$0xff] %v138_v4  ;;  %v140_v23 = vmax.f32 %v124_v13, 0.0  ;;  %v95_v26 = vmul.f32 %v214_v5, %v77_v11  ;;  %v125_v27 = vadd.f32 %v219_v6, %v107_v17  ;;  %v108_v28 = vadd.f32 %v92_v9, %v58_v18 }
  0x12   :  { %155 = vst [vmem:[%s425_s3 + $0x28] sm:$0xff] %v139_v12  ;;  %v60_v29 = vadd.f32 %v205_v2, %v42_v19  ;;  %v44_v30 = vmul.f32 %v200_v1, %v26_v16  ;;  %v109_v32 = vadd.f32 %v93_v15, %v59_v24  ;;  %v61_v33 = vadd.f32 %v205_v2, %v43_v25 }
  0x13   :  { %156 = vst [vmem:[%s425_s3 + $0x30] sm:$0xff] %v140_v23  ;;  %v96_v34 = vmul.f32 %v214_v5, %v78_v21  ;;  %v45_v35 = vmul.f32 %v200_v1, %v27_v22  ;;  %v141_v37 = vmax.f32 %v125_v27, 0.0  ;;  %v126_v38 = vadd.f32 %v219_v6, %v108_v28 }
  0x14   :  { %v110_v39 = vadd.f32 %v94_v20, %v60_v29  ;;  %v62_v40 = vadd.f32 %v205_v2, %v44_v30  ;;  %v127_v42 = vadd.f32 %v219_v6, %v109_v32  ;;  %v111_v43 = vadd.f32 %v95_v26, %v61_v33 }
  0x15   :  { %v63_v44 = vadd.f32 %v205_v2, %v45_v35  ;;  %v97_v45 = vmul.f32 %v214_v5, %v79_v31  ;;  %157 = vst [vmem:[%s425_s3 + $0x38] sm:$0xff] %v141_v37  ;;  %v142_v47 = vmax.f32 %v126_v38, 0.0  ;;  %v46_v50 = vmul.f32 %v200_v1, %v28_v36 }
  0x16   :  { %v128_v48 = vadd.f32 %v219_v6, %v110_v39  ;;  %v112_v49 = vadd.f32 %v96_v34, %v62_v40  ;;  %v143_v52 = vmax.f32 %v127_v42, 0.0  ;;  %v129_v53 = vadd.f32 %v219_v6, %v111_v43 }
  0x17   :  { %v113_v54 = vadd.f32 %v97_v45, %v63_v44  ;;  %v98_v55 = vmul.f32 %v214_v5, %v80_v41  ;;  %158 = vst [vmem:[%s425_s3 + $0x40] sm:$0xff] %v142_v47  ;;  %v64_v58 = vadd.f32 %v205_v2, %v46_v50  ;;  %v47_v59 = vmul.f32 %v200_v1, %v29_v46 }
  0x18   :  { %v144_v56 = vmax.f32 %v128_v48, 0.0  ;;  %v130_v57 = vadd.f32 %v219_v6, %v112_v49  ;;  %159 = vst [vmem:[%s425_s3 + $0x48] sm:$0xff] %v143_v52  ;;  %v145_v60 = vmax.f32 %v129_v53, 0.0  ;;  %v99_v62 = vmul.f32 %v214_v5, %v81_v51 }
  0x19   :  { %v131_v61 = vadd.f32 %v219_v6, %v113_v54  ;;  %v114_v0 = vadd.f32 %v98_v55, %v64_v58  ;;  %v65_v3 = vadd.f32 %v205_v2, %v47_v59 }
  0x1a   :  { %160 = vst [vmem:[%s425_s3 + $0x50] sm:$0xff] %v144_v56  ;;  %v146_v63 = vmax.f32 %v130_v57, 0.0 }
  0x1b   :  { %161 = vst [vmem:[%s425_s3 + $0x58] sm:$0xff] %v145_v60  ;;  %v147_v1 = vmax.f32 %v131_v61, 0.0  ;;  %v132_v4 = vadd.f32 %v219_v6, %v114_v0  ;;  %v115_v5 = vadd.f32 %v99_v62, %v65_v3 }
  0x1c   :  { %162 = vst [vmem:[%s425_s3 + $0x60] sm:$0xff] %v146_v63 }
  0x1d   :  { %163 = vst [vmem:[%s425_s3 + $0x68] sm:$0xff] %v147_v1  ;;  %v148_v7 = vmax.f32 %v132_v4, 0.0  ;;  %v133_v8 = vadd.f32 %v219_v6, %v115_v5 }
  0x1f   :  { %164 = vst [vmem:[%s425_s3 + $0x70] sm:$0xff] %v148_v7  ;;  %v149_v2 = vmax.f32 %v133_v8, 0.0 }
  0x21   :  { %165 = vst [vmem:[%s425_s3 + $0x78] sm:$0xff] %v149_v2 }

// kernel: basic_block_forward.5
= control target key start
LH: loop header
LB: loop body
LE: loop exit
PB: predicated region body
PF: predicated region fallthrough
CT: control target
= control target key end

     0   :  { %s3117_s0 = inlined_call_operand.vmem [shape: f32[2,8,8,128], index: 0, kind: input, shape index: {}, may-alias: {0,1,2}]   ;;  %s3118_s1 = inlined_call_operand.vmem [shape: f32[2,8,8,128], index: 1, kind: input, shape index: {}, may-alias: {0,1,2}]   ;;  %s3119_s2 = inlined_call_operand.vmem [shape: f32[2,8,8,128], index: 2, kind: input, shape index: {}, may-alias: {0,1,2}]   ;;  %s3120_s3 = inlined_call_operand.vmem [shape: f32[9,128,128], index: 3, kind: input, shape index: {}]   ;;  %s3121_s4 = inlined_call_operand.vmem [shape: f32[2,128], index: 4, kind: input, shape index: {}]   ;;  %s3122_s5 = inlined_call_operand.vmem [shape: f32[2,8,8,128], index: 5, kind: output, shape index: {0}]   ;;  %s3123_s6 = inlined_call_operand.vmem [shape: f32[2,2,128], index: 6, kind: output, shape index: {1}]  }
   0x1   :  { %3125 = sst [smem:[#allocation9_spill]] %s3117_s0 }
   0x2   :  { %s2079_s21 = smov 0   ;;  %s2081_s22 = smov 0  }
   0x3   :  { %s2083_s23 = smov 0   ;;  %s2085_s24 = smov 0  }
   0x4   :  { %s2087_s25 = smov 0   ;;  %s2089_s26 = smov 0  }
   0x5   :  { %s2091_s27 = smov 0  }
   0x6 LB: > { %3126 = sst [smem:[#allocation7_spill]] %s2038_s26  ;;  %s2115_s28 = sadd.s32 1, %s2042_s27   ;;  %s2042_s27 = sphi %s2091_s27, %s3141_s27   ;;  %s2038_s26 = sphi %s2089_s26, %s3136_s26   ;;  %s2034_s25 = sphi %s2087_s25, %s3135_s25   ;;  %s2030_s24 = sphi %s2085_s24, %s3140_s24   ;;  %s2026_s23 = sphi %s2083_s23, %s3139_s23   ;;  %s2022_s22 = sphi %s2081_s22, %s3138_s22   ;;  %s2018_s21 = sphi %s2079_s21, %s3137_s21  }
   0x7   : > { %s21_s29 = ssub.s32 %s2042_s27, %s2115_s28  ;;  %s24_s30 = sadd.s32 1, %s2038_s26 }
   0x8   : > { %p22_p0 = scmp.eq.s32.totalorder %s21_s29, 0  ;;  %p31_p1 = scmp.ne.s32.totalorder %s2038_s26, %s2034_s25 }
   0x9   : > { %p32_p2 = scmp.eq.s32.totalorder %s2042_s27, 0  ;;  %s1687_s7 = sshll.u32 %s2042_s27, 2 }
   0xa   : > { %s2125_s8 = scalar_select %p22_p0, %s2038_s26, %s24_s30  }
   0xb   : > { %p2132_p3 = por %p32_p2, %p31_p1  ;;  %s1688_s10 = sadd.s32 4294967295, %s1687_s7 }
   0xc   : > { %3127 = sst [smem:[#allocation8_spill]] %s2125_s8  ;;  %p49_p4 = scmp.gt.s32.totalorder %s1688_s10, 0 }
   0xd   : > { %s1893_s11 = sadd.s32 4, %s1687_s7  ;;  %s2137_s12 = sadd.s32 4294967295, %s2042_s27  }
   0xe   : > { %s1690_s13 = sadd.s32 4294967295, %s1893_s11  ;;  %s3143_s10 = smov (!%p49_p4, %s1688_s10), 0 }
   0xf   : > { %p53_p5 = scmp.gt.s32.totalorder %s1690_s13, 0  ;;  %p65_p6 = scmp.ne.s32.totalorder %s2030_s24, %s2026_s23 }
  0x10   : > { %p83_p7 = scmp.lt.s32.totalorder %s1893_s11, 7  ;;  %s86_s14 = sadd.s32 4, %s1893_s11 }
  0x11   : > { %s3145_s13 = smov (!%p53_p5, %s1690_s13), 0  ;;  %s58_s15 = sadd.s32 1, %s2030_s24 }
  0x12   : > { %p2146_p8 = por %p65_p6, %p32_p2  ;;  %s55_s17 = ssub.s32 %s3143_s10, %s3145_s13 }
  0x13   : > { %p87_p9 = scmp.lt.s32.totalorder %s86_s14, 7  ;;  %p56_p10 = scmp.eq.s32.totalorder %s55_s17, 0 }
  0x14   : > { %p99_p11 = scmp.ne.s32.totalorder %s2022_s22, %s2018_s21  ;;  %s3147_s11 = smov (!%p83_p7, %s1893_s11), 7 }
  0x15   : > { %s2156_s18 = scalar_select %p56_p10, %s2030_s24, %s58_s15  }
  0x16   : > { %s3149_s14 = smov (!%p87_p9, %s86_s14), 7  ;;  %p2160_p12 = por %p99_p11, %p32_p2 }
  0x17   : > { %p171_p13 = scmp.eq.s32.totalorder %s2137_s12, 1  ;;  %s89_s20 = ssub.s32 %s3147_s11, %s3149_s14 }
  0x18   : > { %s92_s29 = sadd.s32 1, %s2022_s22  ;;  %p90_p0 = scmp.eq.s32.totalorder %s89_s20, 0 }
  0x19   : > { %p2172_p4 = por %p171_p13, %p31_p1  ;;  %p1694_p5 = scmp.ge.s32.totalorder %s2042_s27, 2 }
  0x1a   : > { %s2177_s7 = scalar_select %p90_p0, %s2022_s22, %s92_s29  }
  0x1b   : > { %225 = sbr.rel (%p1694_p5) target bundleno = 62 (0x3e), region = 24 }
  0x20   : > { %228 = sbr.rel (!%p2132_p3) target bundleno = 50 (0x32), region = 28  ;;  %s230_s13 = sand.u32 (%p2132_p3), 1, %s2038_s26  }
  0x21   : > { %s1896_s14 = sshll.u32 (%p2132_p3), %s2042_s27, 5  ;;  %s1695_s15 = sshll.u32 (%p2132_p3), %s230_s13, 6 }
  0x22   : > { %s3132_s0 = sld [smem:[#allocation9_spill]] (%p2132_p3)  ;;  %s232_s29 = scalar_lea.vmem (%p2132_p3), [#allocation3], %s1695_s15 }
  0x28   : > { %s235_s8 = scalar_lea.vmem %s3132_s0, %s1896_s14 }
  0x29   : > { %v278_v0 = vld [vmem:[%s235_s8] sm:$0xff]  ;;  %v280_v1 = vld [vmem:[%s235_s8 + $0x8] sm:$0xff]  ;;  %v282_v2 = vld [vmem:[%s235_s8 + $0x10] sm:$0xff] }
  0x2a   : > { %279 = vst [vmem:[%s232_s29] sm:$0xff] %v278_v0  ;;  %v284_v3 = vld [vmem:[%s235_s8 + $0x18] sm:$0xff]  ;;  %v286_v4 = vld [vmem:[%s235_s8 + $0x40] sm:$0xff]  ;;  %v288_v5 = vld [vmem:[%s235_s8 + $0x48] sm:$0xff] }
  0x2b   : > { %281 = vst [vmem:[%s232_s29 + $0x8] sm:$0xff] %v280_v1  ;;  %v290_v6 = vld [vmem:[%s235_s8 + $0x50] sm:$0xff]  ;;  %v292_v7 = vld [vmem:[%s235_s8 + $0x58] sm:$0xff] }
  0x2c   : > { %283 = vst [vmem:[%s232_s29 + $0x10] sm:$0xff] %v282_v2 }
  0x2d   : > { %285 = vst [vmem:[%s232_s29 + $0x18] sm:$0xff] %v284_v3 }
  0x2e   : > { %287 = vst [vmem:[%s232_s29 + $0x20] sm:$0xff] %v286_v4 }
  0x2f   : > { %289 = vst [vmem:[%s232_s29 + $0x28] sm:$0xff] %v288_v5 }
  0x30   : > { %291 = vst [vmem:[%s232_s29 + $0x30] sm:$0xff] %v290_v6 }
  0x31   : > { %293 = vst [vmem:[%s232_s29 + $0x38] sm:$0xff] %v292_v7 }
  0x32 PF: > { %299 = sbr.rel (!%p2146_p8) target bundleno = 56 (0x38), region = 66  ;;  %s301_s9 = sand.u32 (%p2146_p8), 1, %s2030_s24  }
  0x33   : > { %s1701_s13 = sshll.u32 (%p2146_p8), %s3143_s10, 3  ;;  %s1698_s14 = sshll.u32 (%p2146_p8), %s301_s9, 4 }
  0x34   : > { %s309_s20 = scalar_lea.vmem (%p2146_p8), %s3118_s1, %s1701_s13  ;;  %s303_s0 = scalar_lea.vmem (%p2146_p8), [#allocation4], %s1698_s14 }
  0x35   : > { %v340_v8 = vld [vmem:[%s309_s20] sm:$0xff] (%p2146_p8) }
  0x36   : > { %v342_v9 = vld [vmem:[%s309_s20 + $0x40] sm:$0xff] (%p2146_p8)  ;;  %341 = vst [vmem:[%s303_s0] sm:$0xff] (%p2146_p8), %v340_v8 }
  0x37   : > { %343 = vst [vmem:[%s303_s0 + $0x8] sm:$0xff] %v342_v9 }
  0x38 PF: > { %349 = sbr.rel (!%p2160_p12) target bundleno = 62 (0x3e), region = 104  ;;  %s351_s8 = sand.u32 (%p2160_p12), 1, %s2022_s22  }
  0x39   : > { %s1704_s16 = sshll.u32 (%p2160_p12), %s3147_s11, 3  ;;  %s1702_s29 = sshll.u32 (%p2160_p12), %s351_s8, 4 }
  0x3a   : > { %s359_s26 = scalar_lea.vmem (%p2160_p12), %s3119_s2, %s1704_s16  ;;  %s353_s13 = scalar_lea.vmem (%p2160_p12), [#allocation5], %s1702_s29 }
  0x3b   : > { %v390_v10 = vld [vmem:[%s359_s26] sm:$0xff] (%p2160_p12) }
  0x3c   : > { %v392_v11 = vld [vmem:[%s359_s26 + $0x40] sm:$0xff] (%p2160_p12)  ;;  %391 = vst [vmem:[%s353_s13] sm:$0xff] (%p2160_p12), %v390_v10 }
  0x3d   : > { %393 = vst [vmem:[%s353_s13 + $0x8] sm:$0xff] %v392_v11 }
  0x3e PF: > { %p1705_p1 = scmp.ge.s32.totalorder %s2042_s27, 1  ;;  %p398_p2 = scmp.lt.s32.totalorder %s2042_s27, 3 }
  0x40   : > { %p399_p3 = pnand %p1705_p1, %p398_p2 }
  0x41   : > { %s412_s26 = sand.u32 (!%p399_p3), 1, %s2026_s23   ;;  %s405_s8 = sand.u32 (!%p399_p3), 1, %s2034_s25  }
  0x42   : > { %402 = sbr.rel (%p399_p3) target bundleno = 406 (0x196), region = 142  ;;  %s2219_s29 = sshll.u32 (!%p399_p3), %s412_s26, 4 }
  0x43   : > { %s414_s16 = scalar_lea.vmem (!%p399_p3), [#allocation4], %s2219_s29  ;;  %p485_p6 = scmp.eq.s32.totalorder (!%p399_p3), %s2137_s12, 0 }
  0x44   : > { %p469_p7 = scmp.lt.s32.totalorder (!%p399_p3), %s2137_s12, 1 }
  0x47   : > { %v611_v12 = vld [vmem:[%s3120_s3 + $0x78] sm:$0xff]  ;;  %v610_v13 = vld [vmem:[%s3120_s3 + $0x70] sm:$0xff]  ;;  %v609_v14 = vld [vmem:[%s3120_s3 + $0x68] sm:$0xff]  ;;  %s2296_s17 = scalar_select %p485_p6, 0.0, 1.0  ;;  %vm571_vm0 = vcmask 1040384  }
  0x48   : > { %1898 = vmatpush.msra.mxu1 %v611_v12  ;;  %612 = vmatpush.msra.mxu0 %v611_v12  ;;  %v1758_v15 = vld [vmem:[%s3120_s3 + $0x178] sm:$0xff]  ;;  %v1757_v16 = vld [vmem:[%s3120_s3 + $0x170] sm:$0xff]  ;;  %v608_v17 = vld [vmem:[%s3120_s3 + $0x60] sm:$0xff]  ;;  %vm792_vm2 = vcmask 1045504   ;;  %vm677_vm3 = vcmask 1046528   ;;  %s1897_s13 = sshll.u32 (%p2172_p4), %s2137_s12, 5 }
  0x49   : > { %842 = vmatpush.msra.mxu2 %v1758_v15  ;;  %v1756_v18 = vld [vmem:[%s3120_s3 + $0x168] sm:$0xff]  ;;  %v607_v19 = vld [vmem:[%s3120_s3 + $0x58] sm:$0xff]  ;;  %v606_v20 = vld [vmem:[%s3120_s3 + $0x50] sm:$0xff]  ;;  %v487_v52 = vstv %s2296_s17  ;;  %s1504_s25 = scalar_lea.vmem (%p2172_p4), %s3122_s5, %s1897_s13 }
  0x4a   : > { %1899 = vmatpush.msra.mxu1 %v610_v13  ;;  %613 = vmatpush.msra.mxu0 %v610_v13  ;;  %v1755_v21 = vld [vmem:[%s3120_s3 + $0x160] sm:$0xff]  ;;  %v1774_v22 = vld [vmem:[%s3120_s3 + $0x1f8] sm:$0xff]  ;;  %v605_v26 = vld [vmem:[%s3120_s3 + $0x48] sm:$0xff] }
  0x4b   : > { %843 = vmatpush.msra.mxu2 %v1757_v16  ;;  %v1754_v23 = vld [vmem:[%s3120_s3 + $0x158] sm:$0xff]  ;;  %v2246_v25 = vld [vmem:[%s3121_s4] ss:$0 sm:$0xff]  ;;  %924 = vmatpush.msra.mxu3 %v1774_v22  ;;  %v1753_v27 = vld [vmem:[%s3120_s3 + $0x150] sm:$0xff] }
  0x4c   : > { %1900 = vmatpush.msra.mxu1 %v609_v14  ;;  %614 = vmatpush.msra.mxu0 %v609_v14  ;;  %v476_v24 = vld [vmem:[%s414_s16 + $0x8] sm:$0xff]  ;;  %v1773_v28 = vld [vmem:[%s3120_s3 + $0x1f0] sm:$0xff]  ;;  %v604_v29 = vld [vmem:[%s3120_s3 + $0x40] sm:$0xff] }
  0x4d   : > { %844 = vmatpush.msra.mxu2 %v1756_v18  ;;  %v479_v30 = vmul.f32 %v2246_v25, %v476_v24  ;;  %v2264_v31 = vld [vmem:[%s3121_s4 + $0x1] ss:$0 sm:$0xff]  ;;  %925 = vmatpush.msra.mxu3 %v1773_v28  ;;  %v1772_v32 = vld [vmem:[%s3120_s3 + $0x1e8] sm:$0xff]  ;;  %v603_v36 = vld [vmem:[%s3120_s3 + $0x38] sm:$0xff] }
  0x4e   : > { %1901 = vmatpush.msra.mxu1 %v608_v17  ;;  %615 = vmatpush.msra.mxu0 %v608_v17  ;;  %v1752_v33 = vld [vmem:[%s3120_s3 + $0x148] sm:$0xff]  ;;  %v1771_v34 = vld [vmem:[%s3120_s3 + $0x1e0] sm:$0xff]  ;;  %v1770_v39 = vld [vmem:[%s3120_s3 + $0x1d8] sm:$0xff] }
  0x4f   : > { %845 = vmatpush.msra.mxu2 %v1755_v21  ;;  %v475_v35 = vld [vmem:[%s414_s16] sm:$0xff]  ;;  %926 = vmatpush.msra.mxu3 %v1772_v32  ;;  %s2287_s16 = sshll.u32 %s405_s8, 6  ;;  %v482_v41 = vadd.f32 %v2264_v31, %v479_v30  ;;  %v1750_v43 = vld [vmem:[%s3120_s3 + $0x138] sm:$0xff]  ;;  %v601_v45 = vld [vmem:[%s3120_s3 + $0x28] sm:$0xff]  ;;  %s419_s8 = sand.u32 1, %s2018_s21  }
  0x50   : > { %1902 = vmatpush.msra.mxu1 %v607_v19  ;;  %616 = vmatpush.msra.mxu0 %v607_v19  ;;  %v478_v37 = vmul.f32 %v2246_v25, %v475_v35  ;;  %v1751_v38 = vld [vmem:[%s3120_s3 + $0x140] sm:$0xff]  ;;  %v602_v40 = vld [vmem:[%s3120_s3 + $0x30] sm:$0xff]  ;;  %v1768_v48 = vld [vmem:[%s3120_s3 + $0x1c8] sm:$0xff]  ;;  %s2314_s29 = scalar_lea.vmem [#allocation3], %s2287_s16  ;;  %s2916_s0 = sshll.u32 %s419_s8, 4 }
  0x51   : > { %846 = vmatpush.msra.mxu2 %v1754_v23  ;;  %927 = vmatpush.msra.mxu3 %v1771_v34  ;;  %v1769_v44 = vld [vmem:[%s3120_s3 + $0x1d0] sm:$0xff]  ;;  %v503_v49 = vld [vmem:[%s2314_s29] sm:$0xff]  ;;  %v484_v51 = vmax.f32 %v482_v41, 0.0  ;;  %v1748_v53 = vld [vmem:[%s3120_s3 + $0x128] sm:$0xff]  ;;  %s421_s14 = scalar_lea.vmem [#allocation5], %s2916_s0  ;;  %s3052_s10 = scalar_lea.vmem [#allocation6], %s2287_s16 }
  0x52   : > { %1903 = vmatpush.msra.mxu1 %v606_v20  ;;  %617 = vmatpush.msra.mxu0 %v606_v20  ;;  %v481_v42 = vadd.f32 %v2264_v31, %v478_v37  ;;  %v1749_v47 = vld [vmem:[%s3120_s3 + $0x130] sm:$0xff]  ;;  %v600_v50 = vld [vmem:[%s3120_s3 + $0x20] sm:$0xff]  ;;  %v599_v56 = vld [vmem:[%s3120_s3 + $0x18] sm:$0xff]  ;;  %v511_v58 = vmul.f32 %v2246_v25, %v503_v49  ;;  %s2969_s8 = scalar_select %p171_p13, 0.0, 1.0 }
  0x53   : > { %847 = vmatpush.msra.mxu2 %v1753_v27  ;;  %928 = vmatpush.msra.mxu3 %v1770_v39  ;;  %v507_v54 = vld [vmem:[%s2314_s29 + $0x20] sm:$0xff]  ;;  %v1766_v60 = vld [vmem:[%s3120_s3 + $0x1b8] sm:$0xff]  ;;  %v598_v61 = vld [vmem:[%s3120_s3 + $0x10] sm:$0xff]  ;;  %v489_v62 = vmul.f32 %v487_v52, %v484_v51  ;;  %s470_s16 = scalar_select %p469_p7, %s2137_s12, 1 }
  0x54   : > { %1904 = vmatpush.msra.mxu1 %v605_v26  ;;  %618 = vmatpush.msra.mxu0 %v605_v26  ;;  %v483_v46 = vmax.f32 %v481_v42, 0.0  ;;  %v1767_v55 = vld [vmem:[%s3120_s3 + $0x1c0] sm:$0xff]  ;;  %v515_v63 = vmul.f32 %v2246_v25, %v507_v54  ;;  %v1746_v0 = vld [vmem:[%s3120_s3 + $0x118] sm:$0xff]  ;;  %v1765_v1 = vld [vmem:[%s3120_s3 + $0x1b0] sm:$0xff]  ;;  %v519_v4 = vadd.f32 %v2264_v31, %v511_v58 }
  0x55   : > { %848 = vmatpush.msra.mxu2 %v1752_v33  ;;  %929 = vmatpush.msra.mxu3 %v1769_v44  ;;  %v1747_v59 = vld [vmem:[%s3120_s3 + $0x120] sm:$0xff]  ;;  %v597_v2 = vld [vmem:[%s3120_s3 + $0x8] sm:$0xff]  ;;  %v1745_v5 = vld [vmem:[%s3120_s3 + $0x110] sm:$0xff]  ;;  %v2362_v9 = vrot.slane %v489_v62, 7  ;;  %s1710_s17 = sshll.u32 %s470_s16, 1 }
  0x56   : > { %1905 = vmatpush.msra.mxu1 %v604_v29  ;;  %619 = vmatpush.msra.mxu0 %v604_v29  ;;  %v488_v57 = vmul.f32 %v487_v52, %v483_v46  ;;  %v1764_v6 = vld [vmem:[%s3120_s3 + $0x1a8] sm:$0xff]  ;;  %v596_v8 = vld [vmem:[%s3120_s3] sm:$0xff]  ;;  %v523_v10 = vadd.f32 %v2264_v31, %v515_v63  ;;  %vm2372_vm1 = vmneg %vm571_vm0  ;;  %v527_v17 = vmax.f32 %v519_v4, 0.0  ;;  %s472_s21 = scalar_lea.vmem %s3123_s6, %s1710_s17 }
  0x57   : > { %849 = vmatpush.msra.mxu2 %v1751_v38  ;;  %930 = vmatpush.msra.mxu3 %v1768_v48  ;;  %v504_v7 = vld [vmem:[%s2314_s29 + $0x8] sm:$0xff]  ;;  %v1742_v15 = vld [vmem:[%s3120_s3 + $0xf8] sm:$0xff]  ;;  %v1763_v22 = vld [vmem:[%s3120_s3 + $0x1a0] sm:$0xff] }
  0x58   : > { %1906 = vmatpush.msra.mxu1 %v603_v36  ;;  %620 = vmatpush.msra.mxu0 %v603_v36  ;;  %v547_v3 = vrot.slane %v488_v57, 7  ;;  %v508_v14 = vld [vmem:[%s2314_s29 + $0x28] sm:$0xff]  ;;  %v1806_v16 = vld [vmem:[%s3120_s3 + $0x278] sm:$0xff]  ;;  %v512_v18 = vmul.f32 %v2246_v25, %v504_v7  ;;  %v1741_v23 = vld [vmem:[%s3120_s3 + $0xf0] sm:$0xff]  ;;  %v531_v24 = vmax.f32 %v523_v10, 0.0  ;;  %v2416_v33 = vrot.slane %v527_v17, 7 }
  0x59   : > { %850 = vmatpush.msra.mxu2 %v1750_v43  ;;  %931 = vmatpush.msra.mxu3 %v1767_v55  ;;  %v1744_v19 = vld [vmem:[%s3120_s3 + $0x108] sm:$0xff]  ;;  %v1805_v26 = vld [vmem:[%s3120_s3 + $0x270] sm:$0xff]  ;;  %v516_v27 = vmul.f32 %v2246_v25, %v508_v14  ;;  %v1743_v28 = vld [vmem:[%s3120_s3 + $0x100] sm:$0xff] }
  0x5a   : > { %1907 = vmatpush.msra.mxu1 %v602_v40  ;;  %621 = vmatpush.msra.mxu0 %v602_v40  ;;  %v2366_v11 = vsel %vm571_vm0, 0.0, %v547_v3  ;;  %v2369_v12 = vsel %vm571_vm0, %v547_v3, 0.0  ;;  %v1762_v29 = vld [vmem:[%s3120_s3 + $0x198] sm:$0xff]  ;;  %v1740_v30 = vld [vmem:[%s3120_s3 + $0xe8] sm:$0xff]  ;;  %v520_v34 = vadd.f32 %v2264_v31, %v512_v18  ;;  %v1761_v36 = vld [vmem:[%s3120_s3 + $0x190] sm:$0xff]  ;;  %v2427_v39 = vrot.slane %v531_v24, 7 }
  0x5b   : > { %851 = vmatpush.msra.mxu2 %v1749_v47  ;;  %932 = vmatpush.msra.mxu3 %v1766_v60  ;;  %v793_v20 = vrot.slane %v2366_v11, 2  ;;  %v794_v21 = vrot.slane %v2369_v12, 2  ;;  %v1804_v32 = vld [vmem:[%s3120_s3 + $0x268] sm:$0xff]  ;;  %v505_v37 = vld [vmem:[%s2314_s29 + $0x10] sm:$0xff]  ;;  %v1739_v38 = vld [vmem:[%s3120_s3 + $0xe0] sm:$0xff]  ;;  %v524_v41 = vadd.f32 %v2264_v31, %v516_v27  ;;  %v2435_v42 = vsel %vm571_vm0, 0.0, %v2416_v33 }
  0x5c   : > { %1908 = vmatpush.msra.mxu1 %v601_v45  ;;  %622 = vmatpush.msra.mxu0 %v601_v45  ;;  %v1803_v40 = vld [vmem:[%s3120_s3 + $0x260] sm:$0xff]  ;;  %v2439_v43 = vsel %vm571_vm0, %v2416_v33, 0.0  ;;  %v509_v44 = vld [vmem:[%s2314_s29 + $0x30] sm:$0xff]  ;;  %v1738_v45 = vld [vmem:[%s3120_s3 + $0xd8] sm:$0xff]  ;;  %v528_v47 = vmax.f32 %v520_v34, 0.0  ;;  %v513_v48 = vmul.f32 %v2246_v25, %v505_v37 }
  0x5d   : > { %852 = vmatpush.msra.mxu2 %v1748_v53  ;;  %933 = vmatpush.msra.mxu3 %v1765_v1  ;;  %v795_v35 = vsel %vm792_vm2, %v793_v20, %v794_v21  ;;  %v1802_v46 = vld [vmem:[%s3120_s3 + $0x258] sm:$0xff]  ;;  %v797_v51 = vrot.slane %v2439_v43, 2  ;;  %v1760_v52 = vld [vmem:[%s3120_s3 + $0x188] sm:$0xff]  ;;  %v1737_v53 = vld [vmem:[%s3120_s3 + $0xd0] sm:$0xff]  ;;  %v532_v54 = vmax.f32 %v524_v41, 0.0 }
  0x5e   : > { %1909 = vmatpush.msra.mxu1 %v600_v50  ;;  %623 = vmatpush.msra.mxu0 %v600_v50  ;;  %v1838_v49 = vld [vmem:[%s3120_s3 + $0x378] sm:$0xff]  ;;  %v796_v50 = vrot.slane %v2435_v42, 2  ;;  %v1801_v55 = vld [vmem:[%s3120_s3 + $0x250] sm:$0xff]  ;;  %v1759_v58 = vld [vmem:[%s3120_s3 + $0x180] sm:$0xff]  ;;  %v521_v62 = vadd.f32 %v2264_v31, %v513_v48 }
  0x5f   : > { %853 = vmatpush.msra.mxu2 %v1747_v59  ;;  %934 = vmatpush.msra.mxu3 %v1764_v6  ;;  %v1837_v57 = vld [vmem:[%s3120_s3 + $0x370] sm:$0xff]  ;;  %v1736_v59 = vld [vmem:[%s3120_s3 + $0xc8] sm:$0xff]  ;;  %v2491_v1 = vrot.slane %v532_v54, 7  ;;  %v1734_v6 = vld [vmem:[%s3120_s3 + $0xb8] sm:$0xff]  ;;  %v2628_v54 = vsel %vm571_vm0, 0.0, %v2362_v9 }
  0x60   : > { %1910 = vmatpush.msra.mxu1 %v599_v56  ;;  %624 = vmatpush.msra.mxu0 %v599_v56  ;;  %v517_v56 = vmul.f32 %v2246_v25, %v509_v44  ;;  %v1800_v60 = vld [vmem:[%s3120_s3 + $0x248] sm:$0xff]  ;;  %v2486_v63 = vsel %vm792_vm2, %v796_v50, %v797_v51  ;;  %v1798_v7 = vld [vmem:[%s3120_s3 + $0x238] sm:$0xff]  ;;  %v1733_v17 = vld [vmem:[%s3120_s3 + $0xb0] sm:$0xff]  ;;  %v682_v50 = vrot.slane %v2439_v43, 1 }
  0x61   : > { %854 = vmatpush.msra.mxu2 %v1746_v0  ;;  %935 = vmatpush.msra.mxu3 %v1763_v22  ;;  %v1735_v0 = vld [vmem:[%s3120_s3 + $0xc0] sm:$0xff]  ;;  %v1836_v10 = vld [vmem:[%s3120_s3 + $0x368] sm:$0xff]  ;;  %v1870_v14 = vld [vmem:[%s3120_s3 + $0x3f8] sm:$0xff] }
  0x62   : > { %1911 = vmatpush.msra.mxu1 %v598_v61  ;;  %625 = vmatpush.msra.mxu0 %v598_v61  ;;  %v2482_v61 = vrot.slane %v528_v47, 7  ;;  %v1835_v20 = vld [vmem:[%s3120_s3 + $0x360] sm:$0xff]  ;;  %v1869_v21 = vld [vmem:[%s3120_s3 + $0x3f0] sm:$0xff]  ;;  %v1732_v22 = vld [vmem:[%s3120_s3 + $0xa8] sm:$0xff]  ;;  %v679_v47 = vrot.slane %v2369_v12, 1 }
  0x63   : > { %855 = vmatpush.msra.mxu2 %v1745_v5  ;;  %936 = vmatpush.msra.mxu3 %v1762_v29  ;;  %v506_v27 = vld [vmem:[%s2314_s29 + $0x18] sm:$0xff]  ;;  %v1729_v44 = vld [vmem:[%s3120_s3 + $0x90] sm:$0xff]  ;;  %v1867_v51 = vld [vmem:[%s3120_s3 + $0x3e0] sm:$0xff] }
  0x64   : > { %1912 = vmatpush.msra.mxu1 %v597_v2  ;;  %626 = vmatpush.msra.mxu0 %v597_v2  ;;  %v1799_v2 = vld [vmem:[%s3120_s3 + $0x240] sm:$0xff]  ;;  %v2499_v4 = vsel %vm571_vm0, 0.0, %v2482_v61  ;;  %v2503_v5 = vsel %vm571_vm0, %v2482_v61, 0.0  ;;  %v1730_v34 = vld [vmem:[%s3120_s3 + $0x98] sm:$0xff]  ;;  %v1833_v48 = vld [vmem:[%s3120_s3 + $0x350] sm:$0xff] }
  0x65   : > { %856 = vmatpush.msra.mxu2 %v1744_v19  ;;  %937 = vmatpush.msra.mxu3 %v1761_v36  ;;  %v1797_v19 = vld [vmem:[%s3120_s3 + $0x230] sm:$0xff]  ;;  %v514_v36 = vmul.f32 %v2246_v25, %v506_v27  ;;  %v1834_v37 = vld [vmem:[%s3120_s3 + $0x358] sm:$0xff]  ;;  %v1727_v43 = vld [vmem:[%s3120_s3 + $0x80] sm:$0xff] }
  0x66   : > { %1913 = vmatpush.msra.mxu1 %v596_v8  ;;  %627 = vmatpush.msra.mxu0 %v596_v8  ;;  %v529_v8 = vmax.f32 %v521_v62, 0.0  ;;  %v805_v62 = vrot.slane %v2628_v54, 2 }
  0x67   : > { %1720 = vmatmul.msk.f32.vlgmr.msra.gmra.mxu1 %vm2372_vm1, %v2362_v9  ;;  %1712 = vmatmul.msk.f32.vlgmr.msra.gmra.mxu0 %vm2372_vm1, %v547_v3  ;;  %v525_v3 = vadd.f32 %v2264_v31, %v517_v56  ;;  %v522_v12 = vadd.f32 %v2264_v31, %v514_v36  ;;  %v1863_v36 = vld [vmem:[%s3120_s3 + $0x3c0] sm:$0xff] }
  0x68   : > { %727 = vmatpush.msrb.mxu1 %v1742_v15  ;;  %1018 = vmatpush.msrb.mxu0 %v1806_v16  ;;  %v799_v15 = vrot.slane %v2499_v4, 2  ;;  %v800_v16 = vrot.slane %v2503_v5, 2  ;;  %v2547_v24 = vrot.slane %v529_v8, 7  ;;  %v685_v8 = vrot.slane %v2503_v5, 1 }
  0x69   : > { %857 = vmatpush.msra.mxu2 %v1743_v28  ;;  %938 = vmatpush.msra.mxu3 %v1760_v52  ;;  %v533_v18 = vmax.f32 %v525_v3, 0.0  ;;  %v1731_v28 = vld [vmem:[%s3120_s3 + $0xa0] sm:$0xff]  ;;  %v1728_v52 = vld [vmem:[%s3120_s3 + $0x88] sm:$0xff]  ;;  %v1821_v3 = vld [vmem:[%s3120_s3 + $0x2f0] sm:$0xff] }
  0x6a   : > { %728 = vmatpush.msrb.mxu1 %v1741_v23  ;;  %1019 = vmatpush.msrb.mxu0 %v1805_v26  ;;  %v1796_v23 = vld [vmem:[%s3120_s3 + $0x228] sm:$0xff]  ;;  %v2550_v26 = vsel %vm792_vm2, %v799_v15, %v800_v16 }
  0x6b   : > { %858 = vmatmul.f32.vlgmr.msra.gmra.mxu2 %v795_v35  ;;  %939 = vmatpush.msra.mxu3 %v1759_v58  ;;  %v2556_v29 = vrot.slane %v533_v18, 7  ;;  %v1794_v35 = vld [vmem:[%s3120_s3 + $0x218] sm:$0xff]  ;;  %v1820_v15 = vld [vmem:[%s3120_s3 + $0x2e8] sm:$0xff]  ;;  %v1829_v18 = vld [vmem:[%s3120_s3 + $0x330] sm:$0xff] }
  0x6c   : > { %729 = vmatpush.msrb.mxu1 %v1740_v30  ;;  %1020 = vmatpush.msrb.mxu0 %v1804_v32  ;;  %v1795_v30 = vld [vmem:[%s3120_s3 + $0x220] sm:$0xff]  ;;  %v2563_v32 = vsel %vm571_vm0, 0.0, %v2547_v24  ;;  %v1822_v58 = vld [vmem:[%s3120_s3 + $0x2f8] sm:$0xff] }
  0x6d   : > { %1190 = vmatpush.msrb.mxu2 %v1838_v49  ;;  %1776 = vmatmul.msk.f32.vlgmr.msra.gmra.mxu3 %vm2372_vm1, %v2416_v33  ;;  %v681_v49 = vrot.slane %v2435_v42, 1 }
  0x6e   : > { %730 = vmatpush.msrb.mxu1 %v1739_v38  ;;  %1021 = vmatpush.msrb.mxu0 %v1803_v40  ;;  %v1868_v38 = vld [vmem:[%s3120_s3 + $0x3e8] sm:$0xff]  ;;  %v802_v40 = vrot.slane %v2563_v32, 2 }
  0x6f   : > { %1722 = vmatmul.msk.f32.gmra.mxu1 %vm2372_vm1, %v2427_v39  ;;  %1714 = vmatmul.msk.f32.gmra.mxu0 %vm2372_vm1, %v2416_v33  ;;  %v2567_v33 = vsel %vm571_vm0, %v2547_v24, 0.0 }
  0x70   : > { %731 = vmatpush.msrb.mxu1 %v1738_v45  ;;  %1022 = vmatpush.msrb.mxu0 %v1802_v46  ;;  %v803_v41 = vrot.slane %v2567_v33, 2  ;;  %v1793_v45 = vld [vmem:[%s3120_s3 + $0x210] sm:$0xff]  ;;  %v678_v46 = vrot.slane %v2366_v11, 1  ;;  %v1792_v11 = vld [vmem:[%s3120_s3 + $0x208] sm:$0xff] }
  0x71   : > { %1191 = vmatpush.msrb.mxu2 %v1837_v57  ;;  %1284 = vmatpush.msrb.mxu3 %v1870_v14  ;;  %v683_v57 = vsel %vm677_vm3, %v681_v49, %v682_v50  ;;  %v2670_v14 = vld [vmem:[%s3120_s3 + $0x470] sm:$0xff] }
  0x72   : > { %732 = vmatpush.msrb.mxu1 %v1737_v53  ;;  %1023 = vmatpush.msrb.mxu0 %v1801_v55  ;;  %v2618_v42 = vsel %vm792_vm2, %v802_v40, %v803_v41  ;;  %v1791_v53 = vld [vmem:[%s3120_s3 + $0x200] sm:$0xff]  ;;  %v2632_v55 = vsel %vm571_vm0, %v2362_v9, 0.0  ;;  %v680_v56 = vsel %vm677_vm3, %v678_v46, %v679_v47  ;;  %v530_v9 = vmax.f32 %v522_v12, 0.0 }
  0x73   : > { %861 = vmatmul.f32.gmra.mxu2 %v2486_v63  ;;  %1285 = vmatpush.msrb.mxu3 %v1869_v21  ;;  %v1827_v40 = vld [vmem:[%s3120_s3 + $0x320] sm:$0xff]  ;;  %v2752_v46 = vsel %vm571_vm0, 0.0, %v2491_v1  ;;  %v2756_v47 = vsel %vm571_vm0, %v2491_v1, 0.0 }
  0x74   : > { %733 = vmatpush.msrb.mxu1 %v1736_v59  ;;  %1024 = vmatpush.msrb.mxu0 %v1800_v60  ;;  %v1832_v59 = vld [vmem:[%s3120_s3 + $0x348] sm:$0xff]  ;;  %v1866_v60 = vld [vmem:[%s3120_s3 + $0x3d8] sm:$0xff]  ;;  %v2679_v5 = vrot.slane %v530_v9, 7  ;;  %v2734_v41 = vld [vmem:[%s3120_s3 + $0x460] sm:$0xff]  ;;  %v811_v12 = vrot.slane %v2752_v46, 2 }
  0x75   : > { %1192 = vmatpush.msrb.mxu2 %v1836_v10  ;;  %1778 = vmatmul.msk.f32.gmra.mxu3 %vm2372_vm1, %v2482_v61  ;;  %v1865_v10 = vld [vmem:[%s3120_s3 + $0x3d0] sm:$0xff] }
  0x76   : > { %734 = vmatpush.msrb.mxu1 %v1735_v0  ;;  %1025 = vmatpush.msrb.mxu0 %v1799_v2  ;;  %v806_v0 = vrot.slane %v2632_v55, 2  ;;  %v2654_v2 = vld [vmem:[%s3120_s3 + $0x478] sm:$0xff]  ;;  %v2770_v50 = vsel %vm571_vm0, 0.0, %v2679_v5  ;;  %v2805_v9 = vld [vmem:[%s3120_s3 + $0x450] sm:$0xff] }
  0x77   : > { %1724 = vmatmul.msk.f32.gmra.mxu1 %vm2372_vm1, %v2491_v1  ;;  %1716 = vmatmul.msk.f32.gmra.mxu0 %vm2372_vm1, %v2482_v61 }
  0x78   : > { %735 = vmatpush.msrb.mxu1 %v1734_v6  ;;  %1026 = vmatpush.msrb.mxu0 %v1798_v7  ;;  %v1831_v6 = vld [vmem:[%s3120_s3 + $0x340] sm:$0xff]  ;;  %v684_v7 = vrot.slane %v2499_v4, 1  ;;  %v1830_v4 = vld [vmem:[%s3120_s3 + $0x338] sm:$0xff]  ;;  %v807_v16 = vsel %vm792_vm2, %v805_v62, %v806_v0  ;;  %v1812_v62 = vld [vmem:[%s3120_s3 + $0x2a8] sm:$0xff] }
  0x79   : > { %1193 = vmatpush.msrb.mxu2 %v1835_v20  ;;  %1286 = vmatpush.msrb.mxu3 %v1868_v38  ;;  %v2695_v20 = vsel %vm571_vm0, %v2427_v39, 0.0  ;;  %v688_v38 = vrot.slane %v2567_v33, 1  ;;  %v1859_v0 = vld [vmem:[%s3120_s3 + $0x3a0] sm:$0xff] }
  0x7a   : > { %736 = vmatpush.msrb.mxu1 %v1733_v17  ;;  %1027 = vmatpush.msrb.mxu0 %v1797_v19  ;;  %v1819_v17 = vld [vmem:[%s3120_s3 + $0x2e0] sm:$0xff]  ;;  %v2691_v19 = vsel %vm571_vm0, 0.0, %v2427_v39  ;;  %v2698_v21 = vsel %vm677_vm3, %v684_v7, %v685_v8  ;;  %v2824_v7 = vsel %vm571_vm0, 0.0, %v2556_v29  ;;  %v2828_v8 = vsel %vm571_vm0, %v2556_v29, 0.0 }
  0x7b   : > { %864 = vmatmul.f32.gmra.mxu2 %v2550_v26  ;;  %1287 = vmatpush.msrb.mxu3 %v1867_v51  ;;  %v808_v27 = vrot.slane %v2691_v19, 2  ;;  %v2774_v51 = vsel %vm571_vm0, %v2679_v5, 0.0 }
  0x7c   : > { %737 = vmatpush.msrb.mxu1 %v1732_v22  ;;  %1028 = vmatpush.msrb.mxu0 %v1796_v23  ;;  %v1818_v22 = vld [vmem:[%s3120_s3 + $0x2d8] sm:$0xff]  ;;  %v1864_v23 = vld [vmem:[%s3120_s3 + $0x3c8] sm:$0xff] }
  0x7d   : > { %1194 = vmatpush.msrb.mxu2 %v1834_v37  ;;  %1780 = vmatmul.msk.f32.gmra.mxu3 %vm2372_vm1, %v2547_v24  ;;  %v687_v37 = vrot.slane %v2563_v32, 1  ;;  %v1862_v32 = vld [vmem:[%s3120_s3 + $0x3b8] sm:$0xff] }
  0x7e   : > { %738 = vmatpush.msrb.mxu1 %v1731_v28  ;;  %1029 = vmatpush.msrb.mxu0 %v1795_v30  ;;  %v809_v28 = vrot.slane %v2695_v20, 2  ;;  %v1828_v30 = vld [vmem:[%s3120_s3 + $0x328] sm:$0xff] }
  0x7f   : > { %1726 = vmatmul.msk.f32.gmra.mxu1 %vm2372_vm1, %v2556_v29  ;;  %1718 = vmatmul.msk.f32.gmra.mxu0 %vm2372_vm1, %v2547_v24  ;;  %v2762_v49 = vsel %vm677_vm3, %v687_v37, %v688_v38  ;;  %v693_v37 = vrot.slane %v2691_v19, 1  ;;  %v694_v38 = vrot.slane %v2695_v20, 1  ;;  %v1877_v20 = vld [vmem:[%s3120_s3 + $0x430] sm:$0xff] }
  0x80   : > { %739 = vmatpush.msrb.mxu1 %v1730_v34  ;;  %1030 = vmatpush.msrb.mxu0 %v1794_v35  ;;  %v2717_v34 = vld [vmem:[%s3120_s3 + $0x468] sm:$0xff]  ;;  %v1817_v35 = vld [vmem:[%s3120_s3 + $0x2d0] sm:$0xff]  ;;  %v2744_v33 = vsel %vm792_vm2, %v808_v27, %v809_v28  ;;  %v2858_v27 = vld [vmem:[%s3120_s3 + $0x440] sm:$0xff] }
  0x81   : > { %1195 = vmatpush.msrb.mxu2 %v1833_v48  ;;  %1288 = vmatpush.msrb.mxu3 %v1866_v60  ;;  %v1826_v48 = vld [vmem:[%s3120_s3 + $0x318] sm:$0xff]  ;;  %v1824_v60 = vld [vmem:[%s3120_s3 + $0x308] sm:$0xff] }
  0x82   : > { %740 = vmatpush.msrb.mxu1 %v1729_v44  ;;  %1031 = vmatpush.msrb.mxu0 %v1793_v45  ;;  %v1816_v44 = vld [vmem:[%s3120_s3 + $0x2c8] sm:$0xff]  ;;  %v1815_v45 = vld [vmem:[%s3120_s3 + $0x2c0] sm:$0xff]  ;;  %v1810_v28 = vld [vmem:[%s3120_s3 + $0x298] sm:$0xff] }
  0x83   : > { %867 = vmatmul.f32.gmra.mxu2 %v2618_v42  ;;  %1289 = vmatpush.msrb.mxu3 %v1865_v10  ;;  %v2833_v10 = vld [vmem:[%s3120_s3 + $0x448] sm:$0xff] }
  0x84   : > { %741 = vmatpush.msrb.mxu1 %v1728_v52  ;;  %1032 = vmatpush.msrb.mxu0 %v1792_v11  ;;  %v1814_v52 = vld [vmem:[%s3120_s3 + $0x2b8] sm:$0xff]  ;;  %v1861_v11 = vld [vmem:[%s3120_s3 + $0x3b0] sm:$0xff] }
  0x85   : > { %1196 = vmatpush.msrb.mxu2 %v1832_v59  ;;  %1782 = vmatmul.msk.f32.gmra.mxu3 %vm2372_vm1, %v2679_v5  ;;  %v994_v59 = vrot.slane %v2774_v51, 1 }
  0x86   : > { %742 = vmatpush.msrb.mxu1 %v1727_v43  ;;  %1033 = vmatpush.msrb.mxu0 %v1791_v53  ;;  %v2787_v43 = vld [vmem:[%s3120_s3 + $0x458] sm:$0xff]  ;;  %v1825_v53 = vld [vmem:[%s3120_s3 + $0x310] sm:$0xff] }
  0x87   : > { %743 = vmatmul.f32.vlgmr.msrb.gmra.mxu1 %v680_v56  ;;  %1034 = vmatmul.f32.vlgmr.msrb.gmra.mxu0 %v683_v57  ;;  %v1813_v56 = vld [vmem:[%s3120_s3 + $0x2b0] sm:$0xff] }
  0x88   : > { %1108 = vmatpush.msra.mxu1 %v1822_v58  ;;  %1374 = vmatpush.msra.mxu0 %v2654_v2  ;;  %v993_v58 = vrot.slane %v2770_v50, 1 }
  0x89   : > { %1197 = vmatpush.msrb.mxu2 %v1831_v6  ;;  %1290 = vmatpush.msrb.mxu3 %v1864_v23  ;;  %v510_v6 = vld [vmem:[%s2314_s29 + $0x38] sm:$0xff]  ;;  %v815_v23 = vrot.slane %v2828_v8, 2 }
  0x8a   : > { %1109 = vmatpush.msra.mxu1 %v1821_v3  ;;  %1375 = vmatpush.msra.mxu0 %v2670_v14 }
  0x8b   : > { %1198 = vmatpush.msrb.mxu2 %v1830_v4  ;;  %1291 = vmatpush.msrb.mxu3 %v1863_v36  ;;  %v2839_v4 = vsel %vm677_vm3, %v993_v58, %v994_v59  ;;  %v691_v36 = vrot.slane %v2632_v55, 1  ;;  %v1856_v55 = vld [vmem:[%s3120_s3 + $0x388] sm:$0xff]  ;;  %v1871_v58 = vld [vmem:[%s3120_s3 + $0x400] sm:$0xff] }
  0x8c   : > { %1110 = vmatpush.msra.mxu1 %v1820_v15  ;;  %870 = vmatmul.f32.gmra.mxu2 %v807_v16  ;;  %v1811_v15 = vld [vmem:[%s3120_s3 + $0x2a0] sm:$0xff] }
  0x8d   : > { %1199 = vmatpush.msrb.mxu2 %v1829_v18  ;;  %1376 = vmatpush.msra.mxu0 %v2717_v34  ;;  %v1823_v16 = vld [vmem:[%s3120_s3 + $0x300] sm:$0xff]  ;;  %v518_v18 = vmul.f32 %v2246_v25, %v510_v6 }
  0x8e   : > { %1111 = vmatpush.msra.mxu1 %v1819_v17  ;;  %1292 = vmatpush.msrb.mxu3 %v1862_v32  ;;  %v1858_v17 = vld [vmem:[%s3120_s3 + $0x398] sm:$0xff]  ;;  %v1808_v32 = vld [vmem:[%s3120_s3 + $0x288] sm:$0xff] }
  0x8f   : > { %746 = vmatmul.f32.gmra.mxu1 %v683_v57  ;;  %1037 = vmatmul.f32.gmra.mxu0 %v2698_v21  ;;  %v1860_v57 = vld [vmem:[%s3120_s3 + $0x3a8] sm:$0xff] }
  0x90   : > { %1112 = vmatpush.msra.mxu1 %v1818_v22  ;;  %1200 = vmatpush.msrb.mxu2 %v1828_v30  ;;  %v814_v22 = vrot.slane %v2824_v7, 2  ;;  %v1857_v30 = vld [vmem:[%s3120_s3 + $0x390] sm:$0xff] }
  0x91   : > { %1377 = vmatpush.msra.mxu0 %v2734_v41  ;;  %1784 = vmatmul.msk.f32.gmra.mxu3 %vm2372_vm1, %v2427_v39  ;;  %v812_v39 = vrot.slane %v2756_v47, 2 }
  0x92   : > { %1113 = vmatpush.msra.mxu1 %v1817_v35  ;;  %1201 = vmatpush.msrb.mxu2 %v1827_v40  ;;  %v690_v35 = vrot.slane %v2628_v54, 1  ;;  %v1878_v40 = vld [vmem:[%s3120_s3 + $0x438] sm:$0xff]  ;;  %v526_v54 = vadd.f32 %v2264_v31, %v518_v18  ;;  %v2884_v19 = vsel %vm792_vm2, %v814_v22, %v815_v23  ;;  %v1084_v23 = vrot.slane %v2774_v51, 2 }
  0x93   : > { %1293 = vmatpush.msrb.mxu3 %v1861_v11  ;;  %1378 = vmatpush.msra.mxu0 %v2787_v43  ;;  %v2818_v3 = vsel %vm792_vm2, %v811_v12, %v812_v39  ;;  %v1876_v11 = vld [vmem:[%s3120_s3 + $0x428] sm:$0xff]  ;;  %v696_v12 = vrot.slane %v2752_v46, 1  ;;  %v697_v39 = vrot.slane %v2756_v47, 1  ;;  %v490_v47 = vld [vmem:[%s421_s14] sm:$0xff] }
  0x94   : > { %1114 = vmatpush.msra.mxu1 %v1816_v44  ;;  %873 = vmatmul.f32.gmra.mxu2 %v2744_v33  ;;  %v1809_v44 = vld [vmem:[%s3120_s3 + $0x290] sm:$0xff]  ;;  %v492_v59 = vmul.f32 %v2246_v25, %v490_v47  ;;  %v491_v22 = vld [vmem:[%s421_s14 + $0x8] sm:$0xff] }
  0x95   : > { %1202 = vmatpush.msrb.mxu2 %v1826_v48  ;;  %1294 = vmatpush.msrb.mxu3 %v1860_v57  ;;  %v695_v48 = vsel %vm677_vm3, %v693_v37, %v694_v38  ;;  %v2925_v46 = vsel %vm677_vm3, %v696_v12, %v697_v39  ;;  %v700_v57 = vrot.slane %v2828_v8, 1  ;;  %v500_v8 = vstv %s2969_s8 }
  0x96   : > { %1115 = vmatpush.msra.mxu1 %v1815_v45  ;;  %1379 = vmatpush.msra.mxu0 %v2805_v9  ;;  %v692_v45 = vsel %vm677_vm3, %v690_v35, %v691_v36 }
  0x97   : > { %749 = vmatmul.f32.gmra.mxu1 %v2698_v21  ;;  %1040 = vmatmul.f32.gmra.mxu0 %v2762_v49 }
  0x98   : > { %1116 = vmatpush.msra.mxu1 %v1814_v52  ;;  %1203 = vmatpush.msrb.mxu2 %v1825_v53  ;;  %v1855_v52 = vld [vmem:[%s3120_s3 + $0x380] sm:$0xff] }
  0x99   : > { %1295 = vmatpush.msrb.mxu3 %v1859_v0  ;;  %1380 = vmatpush.msra.mxu0 %v2833_v10  ;;  %v1875_v53 = vld [vmem:[%s3120_s3 + $0x420] sm:$0xff]  ;;  %v494_v0 = vadd.f32 %v2264_v31, %v492_v59 }
  0x9a   : > { %1117 = vmatpush.msra.mxu1 %v1813_v56  ;;  %1204 = vmatpush.msrb.mxu2 %v1824_v60 }
  0x9b   : > { %1786 = vmatmul.msk.f32.gmra.mxu3 %vm2372_vm1, %v2491_v1  ;;  %1381 = vmatpush.msra.mxu0 %v2858_v27 }
  0x9c   : > { %1118 = vmatpush.msra.mxu1 %v1812_v62  ;;  %876 = vmatmul.f32.gmra.mxu2 %v2818_v3 }
  0x9d   : > { %1205 = vmatpush.msrb.mxu2 %v1823_v16  ;;  %1296 = vmatpush.msrb.mxu3 %v1858_v17 }
  0x9e   : > { %1119 = vmatpush.msra.mxu1 %v1811_v15  ;;  %1382 = vmatpush.msra.mxu0 %v1878_v40 }
  0x9f   : > { %752 = vmatmul.f32.gmra.mxu1 %v2762_v49  ;;  %1043 = vmatmul.f32.gmra.mxu0 %v2839_v4 }
  0xa0   : > { %1120 = vmatpush.msra.mxu1 %v1810_v28  ;;  %1914 = vmatpush.msra.mxu2 %v2654_v2  ;;  %v534_v2 = vmax.f32 %v526_v54, 0.0 }
  0xa1   : > { %1297 = vmatpush.msrb.mxu3 %v1857_v30  ;;  %1383 = vmatpush.msra.mxu0 %v1877_v20 }
  0xa2   : > { %1121 = vmatpush.msra.mxu1 %v1809_v44  ;;  %1915 = vmatpush.msra.mxu2 %v2670_v14  ;;  %v1807_v14 = vld [vmem:[%s3120_s3 + $0x280] sm:$0xff]  ;;  %v2918_v56 = vrot.slane %v534_v2, 7 }
  0xa3   : > { %1298 = vmatpush.msrb.mxu3 %v1856_v55  ;;  %1384 = vmatpush.msra.mxu0 %v1876_v11 }
  0xa4   : > { %879 = vmatmul.f32.gmra.mxu2 %v2884_v19  ;;  %1788 = vmatmul.msk.f32.gmra.mxu3 %vm2372_vm1, %v2556_v29  ;;  %v2959_v60 = vsel %vm571_vm0, 0.0, %v2918_v56  ;;  %v2963_v62 = vsel %vm571_vm0, %v2918_v56, 0.0 }
  0xa5   : > { %1122 = vmatpush.msra.mxu1 %v1808_v32  ;;  %1916 = vmatpush.msra.mxu2 %v2717_v34  ;;  %v1874_v34 = vld [vmem:[%s3120_s3 + $0x418] sm:$0xff]  ;;  %v997_v6 = vrot.slane %v2963_v62, 1  ;;  %v1086_v36 = vrot.slane %v2959_v60, 2  ;;  %v1087_v37 = vrot.slane %v2963_v62, 2 }
  0xa6   : > { %1299 = vmatpush.msrb.mxu3 %v1855_v52  ;;  %1385 = vmatpush.msra.mxu0 %v1875_v53 }
  0xa7   : > { %755 = vmatmul.f32.gmra.mxu1 %v692_v45  ;;  %1046 = vmatmul.f32.gmra.mxu0 %v695_v48  ;;  %v1088_v44 = vsel %vm792_vm2, %v1086_v36, %v1087_v37 }
  0xa8   : > { %1123 = vmatpush.msra.mxu1 %v1807_v14  ;;  %1917 = vmatpush.msra.mxu2 %v2734_v41  ;;  %v1873_v41 = vld [vmem:[%s3120_s3 + $0x410] sm:$0xff] }
  0xa9   : > { %1386 = vmatpush.msra.mxu0 %v1874_v34 }
  0xaa   : > { %1918 = vmatpush.msra.mxu2 %v2787_v43  ;;  %v699_v43 = vrot.slane %v2824_v7, 1  ;;  %v496_v7 = vmax.f32 %v494_v0, 0.0 }
  0xab   : > { %1387 = vmatpush.msra.mxu0 %v1873_v41 }
  0xac   : > { %1840 = vmatmul.msk.f32.vlgmr.msrb.gmra.mxu2 %vm2372_vm1, %v2482_v61  ;;  %1790 = vmatmul.msk.f32.gmra.mxu3 %vm2372_vm1, %v2918_v56  ;;  %v1872_v61 = vld [vmem:[%s3120_s3 + $0x408] sm:$0xff] }
  0xad   : > { %1919 = vmatpush.msra.mxu2 %v2805_v9  ;;  %1388 = vmatpush.msra.mxu0 %v1872_v61  ;;  %v701_v9 = vsel %vm677_vm3, %v699_v43, %v700_v57 }
  0xaf   : > { %758 = vmatmul.f32.gmra.mxu1 %v695_v48  ;;  %1049 = vmatmul.f32.gmra.mxu0 %v2925_v46 }
  0xb0   : > { %1920 = vmatpush.msra.mxu2 %v2833_v10  ;;  %1389 = vmatpush.msra.mxu0 %v1871_v58  ;;  %v501_v10 = vmul.f32 %v500_v8, %v496_v7 }
  0xb2   : > { %1921 = vmatpush.msra.mxu2 %v2858_v27  ;;  %v552_v15 = vrot.slane %v501_v10, 7 }
  0xb4   : > { %1922 = vmatpush.msra.mxu2 %v1878_v40  ;;  %1300 = vmatmul.f32.vlgmr.msrb.gmra.mxu3 %v2698_v21  ;;  %v577_v16 = vsel %vm571_vm0, 0.0, %v552_v15  ;;  %v589_v17 = vsel %vm571_vm0, %v552_v15, 0.0 }
  0xb5   : > { %1842 = vmatmul.msk.f32.gmra.mxu2 %vm2372_vm1, %v2547_v24  ;;  %v996_v24 = vrot.slane %v2959_v60, 1  ;;  %v1260_v18 = vrot.slane %v589_v17, 1  ;;  %v1350_v28 = vrot.slane %v589_v17, 2 }
  0xb6   : > { %1923 = vmatpush.msra.mxu2 %v1877_v20 }
  0xb7   : > { %761 = vmatmul.f32.gmra.mxu1 %v2925_v46  ;;  %1052 = vmatmul.f32.gmra.mxu0 %v701_v9  ;;  %v998_v21 = vsel %vm677_vm3, %v996_v24, %v997_v6 }
  0xb8   : > { %1924 = vmatpush.msra.mxu2 %v1876_v11 }
  0xba   : > { %1925 = vmatpush.msra.mxu2 %v1875_v53 }
  0xbc   : > { %1926 = vmatpush.msra.mxu2 %v1874_v34  ;;  %1303 = vmatmul.f32.gmra.mxu3 %v2762_v49 }
  0xbd   : > { %1844 = vmatmul.msk.f32.gmra.mxu2 %vm2372_vm1, %v2679_v5  ;;  %v1259_v5 = vrot.slane %v577_v16, 1 }
  0xbe   : > { %1927 = vmatpush.msra.mxu2 %v1873_v41 }
  0xbf   : > { %764 = vmatmul.f32.gmra.mxu1 %v701_v9  ;;  %1055 = vmatmul.f32.gmra.mxu0 %v998_v21  ;;  %v1261_v49 = vsel %vm677_vm3, %v1259_v5, %v1260_v18 }
  0xc0   : > { %1928 = vmatpush.msra.mxu2 %v1872_v61 }
  0xc2   : > { %1929 = vmatpush.msra.mxu2 %v1871_v58 }
  0xc4   : > { %1306 = vmatmul.f32.gmra.mxu3 %v2839_v4  ;;  %v1083_v4 = vrot.slane %v2770_v50, 2 }
  0xc5   : > { %1846 = vmatmul.msk.f32.gmra.mxu2 %vm2372_vm1, %v552_v15 }
  0xc6   : > { %v1085_v27 = vsel %vm792_vm2, %v1083_v4, %v1084_v23 }
  0xc7   : > { %1124 = vmatmul.f32.vlgmr.msra.gmra.mxu1 %v2486_v63  ;;  %1390 = vmatmul.f32.vlgmr.msra.gmra.mxu0 %v2550_v26  ;;  %v493_v63 = vmul.f32 %v2246_v25, %v491_v22 }
  0xcc   : > { %1309 = vmatmul.f32.gmra.mxu3 %v1261_v49 }
  0xcd   : > { %1848 = vmatmul.msk.f32.gmra.mxu2 %vm2372_vm1, %v2491_v1  ;;  %v495_v1 = vadd.f32 %v2264_v31, %v493_v63 }
  0xcf   : > { %1127 = vmatmul.f32.gmra.mxu1 %v2550_v26  ;;  %1393 = vmatmul.f32.gmra.mxu0 %v2618_v42  ;;  %v1349_v26 = vrot.slane %v577_v16, 2  ;;  %v497_v50 = vmax.f32 %v495_v1, 0.0 }
  0xd1   : > { %v1351_v51 = vsel %vm792_vm2, %v1349_v26, %v1350_v28  ;;  %v502_v25 = vmul.f32 %v500_v8, %v497_v50 }
  0xd4   : > { %1312 = vmatmul.f32.gmra.mxu3 %v2925_v46 }
  0xd5   : > { %1850 = vmatmul.msk.f32.gmra.mxu2 %vm2372_vm1, %v2556_v29  ;;  %v558_v29 = vrot.slane %v502_v25, 7 }
  0xd7   : > { %1130 = vmatmul.f32.gmra.mxu1 %v2618_v42  ;;  %1396 = vmatmul.f32.gmra.mxu0 %v1085_v27  ;;  %v583_v30 = vsel %vm571_vm0, 0.0, %v558_v29  ;;  %v595_v31 = vsel %vm571_vm0, %v558_v29, 0.0 }
  0xd8   : > { %v1262_v38 = vrot.slane %v583_v30, 1  ;;  %v1263_v40 = vrot.slane %v595_v31, 1  ;;  %v1352_v13 = vrot.slane %v583_v30, 2  ;;  %v1353_v32 = vrot.slane %v595_v31, 2 }
  0xda   : > { %v1264_v54 = vsel %vm677_vm3, %v1262_v38, %v1263_v40  ;;  %v1354_v48 = vsel %vm792_vm2, %v1352_v13, %v1353_v32 }
  0xdc   : > { %1315 = vmatmul.f32.gmra.mxu3 %v701_v9 }
  0xdd   : > { %1852 = vmatmul.msk.f32.gmra.mxu2 %vm2372_vm1, %v2918_v56 }
  0xdf   : > { %1133 = vmatmul.f32.gmra.mxu1 %v1085_v27  ;;  %1399 = vmatmul.f32.gmra.mxu0 %v1351_v51 }
  0xe4   : > { %v641_v42 = vpop.f32.mrf.mxu1  ;;  %v629_v35 = vpop.f32.mrf.mxu0  ;;  %1318 = vmatmul.f32.gmra.mxu3 %v998_v21 }
  0xe5   : > { %1854 = vmatmul.msk.f32.gmra.mxu2 %vm2372_vm1, %v558_v29 }
  0xe7   : > { %1136 = vmatmul.f32.gmra.mxu1 %v2744_v33  ;;  %1402 = vmatmul.f32.gmra.mxu0 %v2818_v3 }
  0xec   : > { %v644_v55 = vpop.f32.mrf.mxu1  ;;  %v632_v20 = vpop.f32.mrf.mxu0  ;;  %1321 = vmatmul.f32.gmra.mxu3 %v1264_v54 }
  0xed   : > { %1408 = vmatmul.f32.vlgmr.msra.gmra.mxu2 %v1088_v44 }
  0xee   : > { %v859_v45 = vpop.f32.mrf.mxu2 }
  0xef   : > { %1139 = vmatmul.f32.gmra.mxu1 %v2818_v3  ;;  %1405 = vmatmul.f32.gmra.mxu0 %v2884_v19 }
  0xf0   : > { %v941_v11 = vpop.f32.mrf.mxu3 }
  0xf4   : > { %v647_v33 = vpop.f32.mrf.mxu1  ;;  %v635_v2 = vpop.f32.mrf.mxu0 }
  0xf5   : > { %1411 = vmatmul.f32.gmra.mxu2 %v1354_v48 }
  0xf6   : > { %v862_v52 = vpop.f32.mrf.mxu2 }
  0xf7   : > { %1142 = vmatmul.f32.gmra.mxu1 %v2884_v19 }
  0xf8   : > { %v944_v53 = vpop.f32.mrf.mxu3 }
  0xfc   : > { %v650_v14 = vpop.f32.mrf.mxu1  ;;  %v638_v12 = vpop.f32.mrf.mxu0 }
  0xfe   : > { %v865_v39 = vpop.f32.mrf.mxu2 }
  0xff   : > { %1145 = vmatmul.f32.gmra.mxu1 %v1088_v44 }
 0x100   : > { %v947_v47 = vpop.f32.mrf.mxu3 }
 0x104   : > { %v744_v56 = vpop.f32.mrf.mxu1  ;;  %v1035_v34 = vpop.f32.mrf.mxu0 }
 0x105   : > { %v776_v3 = vadd.f32 %v744_v56, %v629_v35 }
 0x106   : > { %v868_v41 = vpop.f32.mrf.mxu2 }
 0x107   : > { %v891_v46 = vadd.f32 %v859_v45, %v776_v3 }
 0x108   : > { %v3023_v9 = vpop.f32.mrf.mxu3 }
 0x109   : > { %v973_v37 = vadd.f32 %v941_v11, %v891_v46 }
 0x10b   : > { %v1067_v54 = vadd.f32 %v1035_v34, %v973_v37 }
 0x10c   : > { %v747_v61 = vpop.f32.mrf.mxu1  ;;  %v1038_v43 = vpop.f32.mrf.mxu0 }
 0x10d   : > { %v777_v57 = vadd.f32 %v747_v61, %v632_v20 }
 0x10f   : > { %v892_v58 = vadd.f32 %v862_v52, %v777_v57  ;;  %v871_v59 = vpop.f32.mrf.mxu2 }
 0x111   : > { %v974_v32 = vadd.f32 %v944_v53, %v892_v58 }
 0x114   : > { %v750_v19 = vpop.f32.mrf.mxu1  ;;  %v1041_v60 = vpop.f32.mrf.mxu0 }
 0x115   : > { %v778_v62 = vadd.f32 %v750_v19, %v635_v2  ;;  %v3025_v6 = vpop.f32.mrf.mxu3  ;;  %v1068_v2 = vadd.f32 %v1038_v43, %v974_v32 }
 0x117   : > { %v893_v0 = vadd.f32 %v865_v39, %v778_v62  ;;  %v874_v24 = vpop.f32.mrf.mxu2 }
 0x11c   : > { %v753_v7 = vpop.f32.mrf.mxu1  ;;  %v3027_v8 = vpop.f32.mrf.mxu0 }
 0x11d   : > { %v779_v21 = vadd.f32 %v753_v7, %v638_v12 }
 0x11e   : > { %v3029_v16 = vpop.f32.mrf.mxu3 }
 0x11f   : > { %v894_v10 = vadd.f32 %v868_v41, %v779_v21  ;;  %v877_v15 = vpop.f32.mrf.mxu2 }
 0x124   : > { %v756_v17 = vpop.f32.mrf.mxu1  ;;  %v3031_v5 = vpop.f32.mrf.mxu0 }
 0x125   : > { %v780_v18 = vadd.f32 %v756_v17, %v641_v42 }
 0x127   : > { %v3033_v49 = vadd.f32 %v871_v59, %v780_v18  ;;  %v880_v22 = vpop.f32.mrf.mxu2  ;;  %v3035_v4 = vpop.f32.mrf.mxu3 }
 0x12c   : > { %v759_v23 = vpop.f32.mrf.mxu1  ;;  %v3037_v63 = vpop.f32.mrf.mxu0 }
 0x12d   : > { %v781_v27 = vadd.f32 %v759_v23, %v644_v55 }
 0x12f   : > { %v3039_v1 = vadd.f32 %v874_v24, %v781_v27  ;;  %v1207_v26 = vpop.f32.mrf.mxu2  ;;  %v3041_v28 = vpop.f32.mrf.mxu3  ;;  %v976_v24 = vadd.f32 %v3023_v9, %v894_v10 }
 0x134   : > { %v762_v50 = vpop.f32.mrf.mxu1  ;;  %v3043_v51 = vpop.f32.mrf.mxu0 }
 0x135   : > { %v782_v25 = vadd.f32 %v762_v50, %v647_v33 }
 0x137   : > { %v3045_v29 = vadd.f32 %v877_v15, %v782_v25  ;;  %v1301_v31 = vpop.f32.mrf.mxu3 }
 0x138   : > { %v1210_v30 = vpop.f32.mrf.mxu2 }
 0x13c   : > { %v765_v42 = vpop.f32.mrf.mxu1  ;;  %v3047_v35 = vpop.f32.mrf.mxu0 }
 0x13d   : > { %v783_v36 = vadd.f32 %v765_v42, %v650_v14  ;;  %v975_v14 = vadd.f32 %v947_v47, %v893_v0  ;;  %v1070_v0 = vadd.f32 %v3027_v8, %v976_v24 }
 0x13f   : > { %v3049_v38 = vadd.f32 %v880_v22, %v783_v36  ;;  %v1304_v44 = vpop.f32.mrf.mxu3  ;;  %v1069_v41 = vadd.f32 %v1041_v60, %v975_v14 }
 0x140   : > { %v1213_v40 = vpop.f32.mrf.mxu2 }
 0x144   : > { %v1125_v55 = vpop.f32.mrf.mxu1  ;;  %v1391_v20 = vpop.f32.mrf.mxu0 }
 0x145   : > { %v1157_v13 = vadd.f32 %v1125_v55, %v1067_v54  ;;  %v978_v54 = vadd.f32 %v3029_v16, %v3039_v1 }
 0x147   : > { %v1239_v45 = vadd.f32 %v1207_v26, %v1157_v13  ;;  %v1307_v12 = vpop.f32.mrf.mxu3  ;;  %v977_v26 = vadd.f32 %v3025_v6, %v3033_v49  ;;  %v1072_v13 = vadd.f32 %v3037_v63, %v978_v54 }
 0x148   : > { %v1216_v48 = vpop.f32.mrf.mxu2 }
 0x149   : > { %v1333_v33 = vadd.f32 %v1301_v31, %v1239_v45  ;;  %v1071_v31 = vadd.f32 %v3031_v5, %v977_v26 }
 0x14b   : > { %v1423_v52 = vadd.f32 %v1391_v20, %v1333_v33 }
 0x14c   : > { %v1128_v39 = vpop.f32.mrf.mxu1  ;;  %v1394_v56 = vpop.f32.mrf.mxu0 }
 0x14d   : > { %1447 = vst [vmem:[%s3052_s10] sm:$0xff] %v1423_v52  ;;  %v1158_v11 = vadd.f32 %v1128_v39, %v1068_v2  ;;  %v1469_v43 = vmul.f32 %v1423_v52, %v1423_v52 }
 0x14f   : > { %v1240_v34 = vadd.f32 %v1210_v30, %v1158_v11  ;;  %v1310_v62 = vpop.f32.mrf.mxu3 }
 0x150   : > { %v1219_v3 = vpop.f32.mrf.mxu2 }
 0x151   : > { %v1334_v46 = vadd.f32 %v1304_v44, %v1240_v34 }
 0x153   : > { %v1424_v53 = vadd.f32 %v1394_v56, %v1334_v46 }
 0x154   : > { %v1131_v61 = vpop.f32.mrf.mxu1  ;;  %v1397_v57 = vpop.f32.mrf.mxu0 }
 0x155   : > { %1448 = vst [vmem:[%s3052_s10 + $0x8] sm:$0xff] %v1424_v53  ;;  %v1455_v58 = vadd.f32 %v1424_v53, %v1423_v52  ;;  %v1470_v59 = vmul.f32 %v1424_v53, %v1424_v53  ;;  %v1159_v19 = vadd.f32 %v1131_v61, %v1069_v41  ;;  %v979_v52 = vadd.f32 %v3035_v4, %v3045_v29 }
 0x156   : > { %v980_v53 = vadd.f32 %v3041_v28, %v3049_v38 }
 0x157   : > { %v1477_v7 = vadd.f32 %v1470_v59, %v1469_v43  ;;  %v1241_v21 = vadd.f32 %v1213_v40, %v1159_v19  ;;  %v1313_v9 = vpop.f32.mrf.mxu3  ;;  %v1073_v56 = vadd.f32 %v3043_v51, %v979_v52 }
 0x158   : > { %v1222_v15 = vpop.f32.mrf.mxu2 }
 0x159   : > { %v1335_v47 = vadd.f32 %v1307_v12, %v1241_v21 }
 0x15b   : > { %v1425_v17 = vadd.f32 %v1397_v57, %v1335_v47  ;;  %v1074_v57 = vadd.f32 %v3047_v35, %v980_v53 }
 0x15c   : > { %v1134_v60 = vpop.f32.mrf.mxu1  ;;  %v1400_v18 = vpop.f32.mrf.mxu0 }
 0x15d   : > { %1449 = vst [vmem:[%s3052_s10 + $0x10] sm:$0xff] %v1425_v17  ;;  %v1456_v22 = vadd.f32 %v1455_v58, %v1425_v17  ;;  %v1471_v23 = vmul.f32 %v1425_v17, %v1425_v17  ;;  %v1160_v27 = vadd.f32 %v1134_v60, %v1070_v0 }
 0x15f   : > { %v1478_v50 = vadd.f32 %v1477_v7, %v1471_v23  ;;  %v1242_v25 = vadd.f32 %v1216_v48, %v1160_v27  ;;  %v1316_v20 = vpop.f32.mrf.mxu3 }
 0x160   : > { %v1225_v30 = vpop.f32.mrf.mxu2 }
 0x161   : > { %v1336_v10 = vadd.f32 %v1310_v62, %v1242_v25 }
 0x163   : > { %v1426_v42 = vadd.f32 %v1400_v18, %v1336_v10 }
 0x164   : > { %v1137_v8 = vpop.f32.mrf.mxu1  ;;  %v1403_v44 = vpop.f32.mrf.mxu0 }
 0x165   : > { %1450 = vst [vmem:[%s3052_s10 + $0x18] sm:$0xff] %v1426_v42  ;;  %v1457_v36 = vadd.f32 %v1456_v22, %v1426_v42  ;;  %v1472_v37 = vmul.f32 %v1426_v42, %v1426_v42  ;;  %v1161_v40 = vadd.f32 %v1137_v8, %v1071_v31  ;;  %v1549_v31 = vld [vmem:[%s3052_s10 + $0x8] sm:$0xff] (%p2172_p4)  ;;  %v1551_v42 = vld [vmem:[%s3052_s10 + $0x10] sm:$0xff] (%p2172_p4) }
 0x166   : > { %1550 = vst [vmem:[%s1504_s25 + $0x8] sm:$0xff] (%p2172_p4), %v1549_v31 }
 0x167   : > { %v1479_v55 = vadd.f32 %v1478_v50, %v1472_v37  ;;  %v1243_v6 = vadd.f32 %v1219_v3, %v1161_v40  ;;  %v1319_v14 = vpop.f32.mrf.mxu3  ;;  %1552 = vst [vmem:[%s1504_s25 + $0x10] sm:$0xff] (%p2172_p4), %v1551_v42 }
 0x168   : > { %v1228_v45 = vpop.f32.mrf.mxu2 }
 0x169   : > { %v1337_v49 = vadd.f32 %v1313_v9, %v1243_v6 }
 0x16b   : > { %v1427_v32 = vadd.f32 %v1403_v44, %v1337_v49 }
 0x16c   : > { %v1140_v5 = vpop.f32.mrf.mxu1  ;;  %v1406_v16 = vpop.f32.mrf.mxu0  ;;  %v1553_v8 = vld [vmem:[%s3052_s10 + $0x18] sm:$0xff] (%p2172_p4) }
 0x16d   : > { %1451 = vst [vmem:[%s3052_s10 + $0x20] sm:$0xff] %v1427_v32  ;;  %v1458_v48 = vadd.f32 %v1457_v36, %v1427_v32  ;;  %v1473_v33 = vmul.f32 %v1427_v32, %v1427_v32  ;;  %v1162_v2 = vadd.f32 %v1140_v5, %v1072_v13 }
 0x16e   : > { %1554 = vst [vmem:[%s1504_s25 + $0x18] sm:$0xff] (%p2172_p4), %v1553_v8 }
 0x16f   : > { %v1480_v12 = vadd.f32 %v1479_v55, %v1473_v33  ;;  %v1244_v39 = vadd.f32 %v1222_v15, %v1162_v2  ;;  %v1322_v62 = vpop.f32.mrf.mxu3 }
 0x170   : > { %v1409_v41 = vpop.f32.mrf.mxu2 }
 0x171   : > { %v1338_v1 = vadd.f32 %v1316_v20, %v1244_v39 }
 0x173   : > { %v1428_v11 = vadd.f32 %v1406_v16, %v1338_v1 }
 0x174   : > { %v1143_v63 = vpop.f32.mrf.mxu1  ;;  %v1555_v36 = vld [vmem:[%s3052_s10 + $0x20] sm:$0xff] (%p2172_p4) }
 0x175   : > { %1452 = vst [vmem:[%s3052_s10 + $0x28] sm:$0xff] %v1428_v11  ;;  %v1459_v34 = vadd.f32 %v1458_v48, %v1428_v11  ;;  %v1474_v3 = vmul.f32 %v1428_v11, %v1428_v11  ;;  %v1163_v46 = vadd.f32 %v1143_v63, %v1073_v56 }
 0x176   : > { %1556 = vst [vmem:[%s1504_s25 + $0x40] sm:$0xff] (%p2172_p4), %v1555_v36 }
 0x177   : > { %v1481_v61 = vadd.f32 %v1480_v12, %v1474_v3  ;;  %v1245_v4 = vadd.f32 %v1225_v30, %v1163_v46  ;;  %v1547_v30 = vld [vmem:[%s3052_s10] sm:$0xff] (%p2172_p4) }
 0x178   : > { %v1412_v21 = vpop.f32.mrf.mxu2  ;;  %1548 = vst [vmem:[%s1504_s25] sm:$0xff] (%p2172_p4), %v1547_v30 }
 0x179   : > { %v1339_v29 = vadd.f32 %v1319_v14, %v1245_v4 }
 0x17b   : > { %v1429_v51 = vadd.f32 %v1409_v41, %v1339_v29 }
 0x17c   : > { %v1146_v43 = vpop.f32.mrf.mxu1  ;;  %v1557_v37 = vld [vmem:[%s3052_s10 + $0x28] sm:$0xff] (%p2172_p4) }
 0x17d   : > { %1453 = vst [vmem:[%s3052_s10 + $0x30] sm:$0xff] %v1429_v51  ;;  %v1460_v58 = vadd.f32 %v1459_v34, %v1429_v51  ;;  %v1475_v59 = vmul.f32 %v1429_v51, %v1429_v51  ;;  %v1164_v19 = vadd.f32 %v1146_v43, %v1074_v57 }
 0x17e   : > { %1558 = vst [vmem:[%s1504_s25 + $0x48] sm:$0xff] (%p2172_p4), %v1557_v37 }
 0x17f   : > { %v1482_v24 = vadd.f32 %v1481_v61, %v1475_v59  ;;  %v1246_v7 = vadd.f32 %v1228_v45, %v1164_v19 }
 0x181   : > { %v1340_v15 = vadd.f32 %v1322_v62, %v1246_v7 }
 0x183   : > { %v1430_v28 = vadd.f32 %v1412_v21, %v1340_v15 }
 0x184   : > { %v1559_v40 = vld [vmem:[%s3052_s10 + $0x30] sm:$0xff] (%p2172_p4) }
 0x185   : > { %1454 = vst [vmem:[%s3052_s10 + $0x38] sm:$0xff] %v1430_v28  ;;  %v1461_v38 = vadd.f32 %v1460_v58, %v1430_v28  ;;  %v1476_v47 = vmul.f32 %v1430_v28, %v1430_v28 }
 0x186   : > { %1560 = vst [vmem:[%s1504_s25 + $0x50] sm:$0xff] (%p2172_p4), %v1559_v40 }
 0x187   : > { %v1462_v0 = vrot.slane %v1461_v38, 4  ;;  %v1483_v17 = vadd.f32 %v1482_v24, %v1476_v47 }
 0x189   : > { %v1463_v35 = vadd.f32 %v1462_v0, %v1461_v38  ;;  %v1484_v60 = vrot.slane %v1483_v17, 4 }
 0x18b   : > { %v1464_v18 = vrot.slane %v1463_v35, 2  ;;  %v1485_v22 = vadd.f32 %v1484_v60, %v1483_v17 }
 0x18c   : > { %v1561_v44 = vld [vmem:[%s3052_s10 + $0x38] sm:$0xff] (%p2172_p4) }
 0x18d   : > { %v1465_v23 = vadd.f32 %v1464_v18, %v1463_v35  ;;  %v1486_v27 = vrot.slane %v1485_v22, 2  ;;  %1562 = vst [vmem:[%s1504_s25 + $0x58] sm:$0xff] (%p2172_p4), %v1561_v44 }
 0x18f   : > { %v1466_v26 = vrot.slane %v1465_v23, 1  ;;  %v1487_v50 = vadd.f32 %v1486_v27, %v1485_v22 }
 0x191   : > { %v1467_v25 = vadd.f32 %v1466_v26, %v1465_v23  ;;  %v1488_v9 = vrot.slane %v1487_v50, 1  ;;  %1501 = sbr.rel (!%p2172_p4) target bundleno = 406 (0x196), region = 158 }
 0x193   : > { %1468 = vst [vmem:[%s472_s21] sm:$0x1] %v1467_v25  ;;  %v1489_v10 = vadd.f32 %v1488_v9, %v1487_v50 }
 0x195   : > { %1490 = vst [vmem:[%s472_s21 + $0x1] sm:$0x1] %v1489_v10 }
 0x196 PF: > { %s3135_s25 = sld [smem:[#allocation7_spill]]  ;;  %p14_p8 = scmp.ge.s32.totalorder %s2115_s28, 4  }
 0x197   : > { %s3136_s26 = sld [smem:[#allocation8_spill]]  ;;  %s3137_s21 = smov %s2022_s22 }
 0x198   : > { %s3138_s22 = smov %s2177_s7  ;;  %s3139_s23 = smov %s2030_s24 }
 0x199   : > { %s3140_s24 = smov %s2156_s18  ;;  %s3141_s27 = smov %s2115_s28 }
 0x19a   :  { %16 = sbr.rel (!%p14_p8) target bundleno = 6 (0x6), region = 263 }

// kernel: basic_block_forward.4
= control target key start
LH: loop header
LB: loop body
LE: loop exit
PB: predicated region body
PF: predicated region fallthrough
CT: control target
= control target key end

     0   :  { %s3167_s0 = inlined_call_operand.vmem [shape: f32[2,18,2,9,128], index: 0, kind: input, shape index: {}, may-alias: {0,1}]   ;;  %s3168_s1 = inlined_call_operand.vmem [shape: f32[2,18,2,9,128], index: 1, kind: input, shape index: {}, may-alias: {0,1}]   ;;  %s3169_s2 = inlined_call_operand.vmem [shape: f32[9,128,128], index: 2, kind: input, shape index: {}]   ;;  %s3170_s3 = inlined_call_operand.vmem [shape: f32[2,8,8,128], index: 3, kind: output, shape index: {0}]   ;;  %s3171_s4 = inlined_call_operand.vmem [shape: f32[2,2,128], index: 4, kind: output, shape index: {1}]  }
   0x1   :  { %3172 = sst [smem:[#allocation6_spill]] %s3167_s0 }
   0x2   :  { %s2199_s15 = smov 0   ;;  %s2201_s16 = smov 0  }
   0x3   :  { %s2203_s17 = smov 0   ;;  %s2205_s18 = smov 0  }
   0x4   :  { %s2207_s19 = smov 0  }
   0x5 LB: > { %s2225_s20 = sadd.s32 4294967295, %s2140_s19   ;;  %s2228_s21 = sadd.s32 1, %s2140_s19   ;;  %s2140_s19 = sphi %s2207_s19, %s3185_s19   ;;  %s2136_s18 = sphi %s2205_s18, %s3184_s18   ;;  %s2132_s17 = sphi %s2203_s17, %s3183_s17   ;;  %s2128_s16 = sphi %s2201_s16, %s3182_s16   ;;  %s2124_s15 = sphi %s2199_s15, %s3181_s15  }
   0x6   : > { %s19_s22 = ssub.s32 %s2140_s19, %s2228_s21  ;;  %s22_s23 = sadd.s32 1, %s2136_s18 }
   0x7   : > { %p20_p0 = scmp.eq.s32.totalorder %s19_s22, 0  ;;  %p29_p1 = scmp.ne.s32.totalorder %s2136_s18, %s2132_s17 }
   0x8   : > { %p30_p2 = scmp.eq.s32.totalorder %s2140_s19, 0  ;;  %s1921_s24 = sshll.u32 %s2140_s19, 2 }
   0x9   : > { %s2238_s25 = scalar_select %p20_p0, %s2136_s18, %s22_s23  }
   0xa   : > { %p31_p3 = por %p30_p2, %p29_p1  ;;  %s1922_s26 = sadd.s32 4, %s1921_s24 }
   0xb   : > { %s1924_s27 = sadd.s32 4, %s1922_s26  ;;  %s52_s28 = sadd.s32 1, %s2128_s16 }
   0xc   : > { %s49_s29 = ssub.s32 %s1922_s26, %s1924_s27  ;;  %p59_p4 = scmp.ne.s32.totalorder %s2128_s16, %s2124_s15 }
   0xd   : > { %p50_p5 = scmp.eq.s32.totalorder %s49_s29, 0  ;;  %p110_p6 = scmp.eq.s32.totalorder %s2225_s20, 1 }
   0xe   : > { %p2247_p7 = por %p59_p4, %p30_p2  ;;  %p1745_p9 = scmp.ge.s32.totalorder %s2140_s19, 2 }
   0xf   : > { %s2252_s5 = scalar_select %p50_p5, %s2128_s16, %s52_s28  }
  0x10   : > { %p2257_p8 = por %p110_p6, %p29_p1  ;;  %161 = sbr.rel (%p1745_p9) target bundleno = 110 (0x6e), region = 20 }
  0x15   : > { %164 = sbr.rel (!%p31_p3) target bundleno = 90 (0x5a), region = 24  ;;  %s166_s7 = sand.u32 (%p31_p3), 1, %s2136_s18  }
  0x16   : > { %s1747_s8 = sshll.u32 (%p31_p3), %s2140_s19, 3  ;;  %s1746_s9 = sshll.u32 (%p31_p3), %s166_s7, 9 }
  0x17   : > { %s170_s10 = ssub.s32 (%p31_p3), 18, %s1747_s8  ;;  %s1928_s11 = sshll.u32 (%p31_p3), %s2140_s19, 8 }
  0x18   : > { %p171_p10 = scmp.lt.s32.totalorder (%p31_p3), %s170_s10, 8  ;;  %s3175_s0 = sld [smem:[#allocation6_spill]] (%p31_p3) }
  0x19   : > { %s2274_s24 = scalar_lea.vmem (%p31_p3), [#allocation3], %s1746_s9  }
  0x1a   : > { %s3187_s10 = smov (!%p171_p10, %s170_s10), 8 }
  0x1b   : > { %s1926_s22 = sshll.u32 %s3187_s10, 6  ;;  %s1754_s23 = sshll.u32 %s3187_s10, 2 }
  0x1c   : > { %p1755_p11 = scmp.eq.s32.totalorder %s1926_s22, 0 }
  0x1d   : > { %s2278_s26 = sshrl.u32 (!%p1755_p11), %s1754_s23, 4 }
  0x1e   : > { %s2270_s14 = scalar_lea.vmem %s3175_s0, %s1928_s11   ;;  %183 = sbr.rel (%p1755_p11) target bundleno = 90 (0x5a), region = 28 }
  0x1f   : > { %p1756_p12 = scmp.le.s32.totalorder (!%p1755_p11), %s2278_s26, 0 }
  0x23   : > { %1682 = sbr.rel (%p1756_p12) target bundleno = 73 (0x49), region = 225  ;;  %s3176_s27 = smov (!%p1756_p12), %s2274_s24 }
  0x24   : > { %s3177_s28 = smov (!%p1756_p12), %s2270_s14  ;;  %s2287_s29 = smov (!%p1756_p12), 0  }
  0x25   : > { %s2289_s7 = smov (!%p1756_p12), 0  }
  0x28 LB: >> { %v310_v0 = vld [vmem:[%s2148_s28] sm:$0xff]  ;;  %v312_v1 = vld [vmem:[%s2148_s28 + $0x8] sm:$0xff]  ;;  %v314_v2 = vld [vmem:[%s2148_s28 + $0x10] sm:$0xff]  ;;  %s374_s8 = sadd.s32 1, %s2152_s29  ;;  %s304_s7 = sadd.s32 1, %s2156_s7   ;;  %s2156_s7 = sphi %s2289_s7, %s304_s7   ;;  %s2152_s29 = sphi %s2287_s29, %s3180_s29   ;;  %s2148_s28 = sphi %s3177_s28, %s3179_s28   ;;  %s2144_s27 = sphi %s3176_s27, %s3178_s27  }
  0x29   : >> { %311 = vst [vmem:[%s2144_s27] sm:$0xff] %v310_v0  ;;  %v316_v3 = vld [vmem:[%s2148_s28 + $0x18] sm:$0xff]  ;;  %p375_p13 = scmp.ge.s32.totalorder %s374_s8, %s2278_s26  ;;  %v318_v4 = vld [vmem:[%s2148_s28 + $0x20] sm:$0xff]  ;;  %v320_v5 = vld [vmem:[%s2148_s28 + $0x28] sm:$0xff]  ;;  %p303_p0 = scmp.ge.s32.totalorder %s304_s7, %s2278_s26 }
  0x2a   : >> { %313 = vst [vmem:[%s2144_s27 + $0x8] sm:$0xff] %v312_v1  ;;  %v322_v6 = vld [vmem:[%s2148_s28 + $0x30] sm:$0xff]  ;;  %v324_v7 = vld [vmem:[%s2148_s28 + $0x38] sm:$0xff]  ;;  %v326_v8 = vld [vmem:[%s2148_s28 + $0x40] sm:$0xff] }
  0x2b   : >> { %315 = vst [vmem:[%s2144_s27 + $0x10] sm:$0xff] %v314_v2  ;;  %s3189_s8 = smov (%p375_p13, %s374_s8), 0  ;;  %v328_v9 = vld [vmem:[%s2148_s28 + $0x48] sm:$0xff]  ;;  %v330_v10 = vld [vmem:[%s2148_s28 + $0x50] sm:$0xff]  ;;  %v332_v11 = vld [vmem:[%s2148_s28 + $0x58] sm:$0xff] }
  0x2c   : >> { %317 = vst [vmem:[%s2144_s27 + $0x18] sm:$0xff] %v316_v3  ;;  %s1757_s9 = sshll.u32 %s3189_s8, 7  ;;  %v334_v12 = vld [vmem:[%s2148_s28 + $0x60] sm:$0xff]  ;;  %v336_v13 = vld [vmem:[%s2148_s28 + $0x68] sm:$0xff]  ;;  %v338_v14 = vld [vmem:[%s2148_s28 + $0x70] sm:$0xff]  ;;  %s3180_s29 = smov %s3189_s8 }
  0x2d   : >> { %319 = vst [vmem:[%s2144_s27 + $0x20] sm:$0xff] %v318_v4  ;;  %s2321_s11 = scalar_lea.vmem %s2270_s14, %s1757_s9   ;;  %s2324_s12 = scalar_lea.vmem %s2274_s24, %s1757_s9 [#allocation3]   ;;  %v340_v15 = vld [vmem:[%s2148_s28 + $0x78] sm:$0xff]  ;;  %v342_v16 = vld [vmem:[%s2148_s28 + $0x240] sm:$0xff]  ;;  %v344_v17 = vld [vmem:[%s2148_s28 + $0x248] sm:$0xff] }
  0x2e   : >> { %321 = vst [vmem:[%s2144_s27 + $0x28] sm:$0xff] %v320_v5  ;;  %v346_v18 = vld [vmem:[%s2148_s28 + $0x250] sm:$0xff]  ;;  %v348_v19 = vld [vmem:[%s2148_s28 + $0x258] sm:$0xff]  ;;  %v350_v20 = vld [vmem:[%s2148_s28 + $0x260] sm:$0xff] }
  0x2f   : >> { %323 = vst [vmem:[%s2144_s27 + $0x30] sm:$0xff] %v322_v6  ;;  %v352_v21 = vld [vmem:[%s2148_s28 + $0x268] sm:$0xff]  ;;  %v354_v22 = vld [vmem:[%s2148_s28 + $0x270] sm:$0xff]  ;;  %v356_v23 = vld [vmem:[%s2148_s28 + $0x278] sm:$0xff] }
  0x30   : >> { %325 = vst [vmem:[%s2144_s27 + $0x38] sm:$0xff] %v324_v7  ;;  %v358_v24 = vld [vmem:[%s2148_s28 + $0x280] sm:$0xff]  ;;  %v360_v25 = vld [vmem:[%s2148_s28 + $0x288] sm:$0xff]  ;;  %v362_v26 = vld [vmem:[%s2148_s28 + $0x290] sm:$0xff] }
  0x31   : >> { %327 = vst [vmem:[%s2144_s27 + $0x40] sm:$0xff] %v326_v8  ;;  %v364_v27 = vld [vmem:[%s2148_s28 + $0x298] sm:$0xff]  ;;  %v366_v28 = vld [vmem:[%s2148_s28 + $0x2a0] sm:$0xff]  ;;  %v368_v29 = vld [vmem:[%s2148_s28 + $0x2a8] sm:$0xff] }
  0x32   : >> { %329 = vst [vmem:[%s2144_s27 + $0x48] sm:$0xff] %v328_v9  ;;  %v370_v30 = vld [vmem:[%s2148_s28 + $0x2b0] sm:$0xff]  ;;  %v372_v31 = vld [vmem:[%s2148_s28 + $0x2b8] sm:$0xff]  ;;  %s3179_s28 = smov %s2321_s11 }
  0x33   : >> { %331 = vst [vmem:[%s2144_s27 + $0x50] sm:$0xff] %v330_v10 }
  0x34   : >> { %333 = vst [vmem:[%s2144_s27 + $0x58] sm:$0xff] %v332_v11 }
  0x35   : >> { %335 = vst [vmem:[%s2144_s27 + $0x60] sm:$0xff] %v334_v12 }
  0x36   : >> { %337 = vst [vmem:[%s2144_s27 + $0x68] sm:$0xff] %v336_v13 }
  0x37   : >> { %339 = vst [vmem:[%s2144_s27 + $0x70] sm:$0xff] %v338_v14 }
  0x38   : >> { %341 = vst [vmem:[%s2144_s27 + $0x78] sm:$0xff] %v340_v15 }
  0x39   : >> { %343 = vst [vmem:[%s2144_s27 + $0x100] sm:$0xff] %v342_v16 }
  0x3a   : >> { %345 = vst [vmem:[%s2144_s27 + $0x108] sm:$0xff] %v344_v17 }
  0x3b   : >> { %347 = vst [vmem:[%s2144_s27 + $0x110] sm:$0xff] %v346_v18 }
  0x3c   : >> { %349 = vst [vmem:[%s2144_s27 + $0x118] sm:$0xff] %v348_v19 }
  0x3d   : >> { %351 = vst [vmem:[%s2144_s27 + $0x120] sm:$0xff] %v350_v20 }
  0x3e   : >> { %353 = vst [vmem:[%s2144_s27 + $0x128] sm:$0xff] %v352_v21 }
  0x3f   : >> { %355 = vst [vmem:[%s2144_s27 + $0x130] sm:$0xff] %v354_v22 }
  0x40   : >> { %357 = vst [vmem:[%s2144_s27 + $0x138] sm:$0xff] %v356_v23 }
  0x41   : >> { %359 = vst [vmem:[%s2144_s27 + $0x140] sm:$0xff] %v358_v24 }
  0x42   : >> { %361 = vst [vmem:[%s2144_s27 + $0x148] sm:$0xff] %v360_v25 }
  0x43   : >> { %363 = vst [vmem:[%s2144_s27 + $0x150] sm:$0xff] %v362_v26 }
  0x44   : >> { %365 = vst [vmem:[%s2144_s27 + $0x158] sm:$0xff] %v364_v27  ;;  %306 = sbr.rel (!%p303_p0) target bundleno = 40 (0x28), region = 231 }
  0x45   : >> { %367 = vst [vmem:[%s2144_s27 + $0x160] sm:$0xff] %v366_v28 }
  0x46   : >> { %369 = vst [vmem:[%s2144_s27 + $0x168] sm:$0xff] %v368_v29 }
  0x47   : >> { %371 = vst [vmem:[%s2144_s27 + $0x170] sm:$0xff] %v370_v30 }
  0x48   : >> { %373 = vst [vmem:[%s2144_s27 + $0x178] sm:$0xff] %v372_v31  ;;  %s3178_s27 = smov %s2324_s12 }
  0x49 PF: > { %s2390_s13 = sand.u32 15, %s1754_s23   ;;  %s1929_s22 = sshll.u32 %s2278_s26, 7 }
  0x4a   : > { %s2394_s9 = scalar_lea.vmem %s2270_s14, %s1929_s22   ;;  %s387_s0 = scalar_lea.vmem %s2274_s24, %s1929_s22 [#allocation3]  }
  0x4b   : > { %p1762_p1 = scmp.le.s32.totalorder %s2390_s13, 0 }
  0x4c   : > { %s2158_s11 = smov (!%p1762_p1), %s387_s0   ;;  %s2162_s8 = smov (!%p1762_p1), %s2394_s9  }
  0x4d   : > { %1696 = sbr.rel (%p1762_p1) target bundleno = 90 (0x5a), region = 236  ;;  %s2166_s7 = smov (!%p1762_p1), 0  }
  0x4e   : > { %s2170_s12 = smov (!%p1762_p1), 0  }
  0x52 LB: >> { %v397_v32 = vld [vmem:[%s2164_s8] sm:$0xff]  ;;  %s401_s10 = sadd.s32 1, %s2168_s7  ;;  %s391_s12 = sadd.s32 1, %s2172_s12   ;;  %s2172_s12 = sphi %s2170_s12, %s391_s12   ;;  %s2168_s7 = sphi %s2166_s7, %s2167_s7   ;;  %s2164_s8 = sphi %s2162_s8, %s406_s8   ;;  %s2160_s11 = sphi %s2158_s11, %s407_s11  }
  0x53   : >> { %v399_v33 = vld [vmem:[%s2164_s8 + $0x240] sm:$0xff]  ;;  %398 = vst [vmem:[%s2160_s11] sm:$0xff] %v397_v32  ;;  %p402_p2 = scmp.ge.s32.totalorder %s401_s10, %s2390_s13  ;;  %p390_p3 = scmp.ge.s32.totalorder %s391_s12, %s2390_s13 }
  0x54   : >> { %400 = vst [vmem:[%s2160_s11 + $0x100] sm:$0xff] %v399_v33 }
  0x55   : >> { %s3191_s10 = smov (%p402_p2, %s401_s10), 0  ;;  %393 = sbr.rel (!%p390_p3) target bundleno = 82 (0x52), region = 242 }
  0x56   : >> { %s1763_s14 = sshll.u32 %s3191_s10, 3  ;;  %s2167_s7 = smov %s3191_s10  }
  0x57   : >> { %s406_s8 = scalar_lea.vmem %s2394_s9, %s1763_s14   ;;  %s407_s11 = scalar_lea.vmem %s387_s0, %s1763_s14 [#allocation3]  }
  0x5a PF: > { %413 = sbr.rel (!%p2247_p7) target bundleno = 110 (0x6e), region = 76  ;;  %s415_s23 = sand.u32 (%p2247_p7), 1, %s2128_s16  }
  0x5b   : > { %s1766_s24 = sshll.u32 (%p2247_p7), %s2140_s19, 8  ;;  %s1765_s26 = sshll.u32 (%p2247_p7), %s415_s23, 7 }
  0x5c   : > { %s2409_s29 = scalar_lea.vmem (%p2247_p7), %s3168_s1, %s1766_s24  ;;  %s417_s0 = scalar_lea.vmem (%p2247_p7), [#allocation4], %s1765_s26 }
  0x5d   : > { %v1767_v34 = vld [vmem:[%s2409_s29 + $0x100] sm:$0xff] (%p2247_p7)  ;;  %v1768_v35 = vld [vmem:[%s2409_s29 + $0x108] sm:$0xff] (%p2247_p7)  ;;  %v1769_v36 = vld [vmem:[%s2409_s29 + $0x110] sm:$0xff] (%p2247_p7) }
  0x5e   : > { %483 = vst [vmem:[%s417_s0] sm:$0xff] (%p2247_p7), %v1767_v34  ;;  %v1770_v37 = vld [vmem:[%s2409_s29 + $0x118] sm:$0xff] (%p2247_p7)  ;;  %v1771_v38 = vld [vmem:[%s2409_s29 + $0x120] sm:$0xff] (%p2247_p7)  ;;  %v1772_v39 = vld [vmem:[%s2409_s29 + $0x128] sm:$0xff] (%p2247_p7) }
  0x5f   : > { %485 = vst [vmem:[%s417_s0 + $0x8] sm:$0xff] %v1768_v35  ;;  %v1773_v40 = vld [vmem:[%s2409_s29 + $0x130] sm:$0xff]  ;;  %v1774_v41 = vld [vmem:[%s2409_s29 + $0x138] sm:$0xff]  ;;  %v1775_v42 = vld [vmem:[%s2409_s29 + $0x340] sm:$0xff] }
  0x60   : > { %487 = vst [vmem:[%s417_s0 + $0x10] sm:$0xff] %v1769_v36  ;;  %v1776_v43 = vld [vmem:[%s2409_s29 + $0x348] sm:$0xff]  ;;  %v1777_v44 = vld [vmem:[%s2409_s29 + $0x350] sm:$0xff]  ;;  %v1778_v45 = vld [vmem:[%s2409_s29 + $0x358] sm:$0xff] }
  0x61   : > { %489 = vst [vmem:[%s417_s0 + $0x18] sm:$0xff] %v1770_v37  ;;  %v1779_v46 = vld [vmem:[%s2409_s29 + $0x360] sm:$0xff]  ;;  %v1780_v47 = vld [vmem:[%s2409_s29 + $0x368] sm:$0xff]  ;;  %v1781_v48 = vld [vmem:[%s2409_s29 + $0x370] sm:$0xff] }
  0x62   : > { %491 = vst [vmem:[%s417_s0 + $0x20] sm:$0xff] %v1771_v38  ;;  %v1782_v49 = vld [vmem:[%s2409_s29 + $0x378] sm:$0xff] }
  0x63   : > { %493 = vst [vmem:[%s417_s0 + $0x28] sm:$0xff] %v1772_v39 }
  0x64   : > { %495 = vst [vmem:[%s417_s0 + $0x30] sm:$0xff] %v1773_v40 }
  0x65   : > { %497 = vst [vmem:[%s417_s0 + $0x38] sm:$0xff] %v1774_v41 }
  0x66   : > { %499 = vst [vmem:[%s417_s0 + $0x40] sm:$0xff] %v1775_v42 }
  0x67   : > { %501 = vst [vmem:[%s417_s0 + $0x48] sm:$0xff] %v1776_v43 }
  0x68   : > { %503 = vst [vmem:[%s417_s0 + $0x50] sm:$0xff] %v1777_v44 }
  0x69   : > { %505 = vst [vmem:[%s417_s0 + $0x58] sm:$0xff] %v1778_v45 }
  0x6a   : > { %507 = vst [vmem:[%s417_s0 + $0x60] sm:$0xff] %v1779_v46 }
  0x6b   : > { %509 = vst [vmem:[%s417_s0 + $0x68] sm:$0xff] %v1780_v47 }
  0x6c   : > { %511 = vst [vmem:[%s417_s0 + $0x70] sm:$0xff] %v1781_v48 }
  0x6d   : > { %513 = vst [vmem:[%s417_s0 + $0x78] sm:$0xff] %v1782_v49 }
  0x6e PF: > { %p1783_p4 = scmp.ge.s32.totalorder %s2140_s19, 1  ;;  %p518_p5 = scmp.lt.s32.totalorder %s2140_s19, 3 }
  0x70   : > { %p519_p6 = pnand %p1783_p4, %p518_p5 }
  0x71   : > { %s525_s11 = sand.u32 (!%p519_p6), 1, %s2132_s17   ;;  %s532_s24 = sand.u32 (!%p519_p6), 1, %s2124_s15  }
  0x72   : > { %522 = sbr.rel (%p519_p6) target bundleno = 454 (0x1c6), region = 114  ;;  %s1784_s23 = sshll.u32 (!%p519_p6), %s525_s11, 9 }
  0x73   : > { %s2555_s27 = scalar_lea.vmem (!%p519_p6), [#allocation3], %s1784_s23  ;;  %s1785_s26 = sshll.u32 (!%p519_p6), %s532_s24, 7 }
  0x74   : > { %s3032_s15 = scalar_lea.vmem (!%p519_p6), [#allocation4], %s1785_s26  ;;  %p575_p7 = scmp.lt.s32.totalorder (!%p519_p6), %s2225_s20, 1 }
  0x77   : > { %v648_v50 = vld [vmem:[%s3169_s2 + $0x78] sm:$0xff]  ;;  %v647_v51 = vld [vmem:[%s3169_s2 + $0x70] sm:$0xff]  ;;  %v646_v52 = vld [vmem:[%s3169_s2 + $0x68] sm:$0xff]  ;;  %vm796_vm0 = vcmask 1046528   ;;  %s576_s17 = scalar_select %p575_p7, %s2225_s20, 1 }
  0x78   : > { %1934 = vmatpush.msra.mxu1 %v648_v50  ;;  %649 = vmatpush.msra.mxu0 %v648_v50  ;;  %v1819_v53 = vld [vmem:[%s3169_s2 + $0x178] sm:$0xff]  ;;  %v1818_v54 = vld [vmem:[%s3169_s2 + $0x170] sm:$0xff]  ;;  %v645_v55 = vld [vmem:[%s3169_s2 + $0x60] sm:$0xff]  ;;  %s1931_s23 = sshll.u32 (%p2257_p8), %s2225_s20, 5 }
  0x79   : > { %846 = vmatpush.msra.mxu2 %v1819_v53  ;;  %v1817_v56 = vld [vmem:[%s3169_s2 + $0x168] sm:$0xff]  ;;  %v644_v57 = vld [vmem:[%s3169_s2 + $0x58] sm:$0xff]  ;;  %v1816_v58 = vld [vmem:[%s3169_s2 + $0x160] sm:$0xff]  ;;  %s1528_s9 = scalar_lea.vmem (%p2257_p8), %s3170_s3, %s1931_s23 }
  0x7a   : > { %1935 = vmatpush.msra.mxu1 %v647_v51  ;;  %650 = vmatpush.msra.mxu0 %v647_v51  ;;  %v643_v59 = vld [vmem:[%s3169_s2 + $0x50] sm:$0xff]  ;;  %v1835_v60 = vld [vmem:[%s3169_s2 + $0x1f8] sm:$0xff]  ;;  %v642_v63 = vld [vmem:[%s3169_s2 + $0x48] sm:$0xff] }
  0x7b   : > { %847 = vmatpush.msra.mxu2 %v1818_v54  ;;  %v1815_v61 = vld [vmem:[%s3169_s2 + $0x158] sm:$0xff]  ;;  %v1834_v62 = vld [vmem:[%s3169_s2 + $0x1f0] sm:$0xff]  ;;  %928 = vmatpush.msra.mxu3 %v1835_v60  ;;  %v1833_v1 = vld [vmem:[%s3169_s2 + $0x1e8] sm:$0xff] }
  0x7c   : > { %1936 = vmatpush.msra.mxu1 %v646_v52  ;;  %651 = vmatpush.msra.mxu0 %v646_v52  ;;  %v1814_v0 = vld [vmem:[%s3169_s2 + $0x150] sm:$0xff]  ;;  %v641_v2 = vld [vmem:[%s3169_s2 + $0x40] sm:$0xff]  ;;  %v1813_v3 = vld [vmem:[%s3169_s2 + $0x148] sm:$0xff] }
  0x7d   : > { %848 = vmatpush.msra.mxu2 %v1817_v56  ;;  %929 = vmatpush.msra.mxu3 %v1834_v62  ;;  %v1832_v4 = vld [vmem:[%s3169_s2 + $0x1e0] sm:$0xff]  ;;  %v640_v5 = vld [vmem:[%s3169_s2 + $0x38] sm:$0xff]  ;;  %v639_v8 = vld [vmem:[%s3169_s2 + $0x30] sm:$0xff] }
  0x7e   : > { %1937 = vmatpush.msra.mxu1 %v645_v55  ;;  %652 = vmatpush.msra.mxu0 %v645_v55  ;;  %v1812_v6 = vld [vmem:[%s3169_s2 + $0x140] sm:$0xff]  ;;  %v1831_v7 = vld [vmem:[%s3169_s2 + $0x1d8] sm:$0xff]  ;;  %v1830_v10 = vld [vmem:[%s3169_s2 + $0x1d0] sm:$0xff] }
  0x7f   : > { %849 = vmatpush.msra.mxu2 %v1816_v58  ;;  %930 = vmatpush.msra.mxu3 %v1833_v1  ;;  %v1811_v9 = vld [vmem:[%s3169_s2 + $0x138] sm:$0xff]  ;;  %v638_v11 = vld [vmem:[%s3169_s2 + $0x28] sm:$0xff]  ;;  %v1810_v12 = vld [vmem:[%s3169_s2 + $0x130] sm:$0xff] }
  0x80   : > { %1938 = vmatpush.msra.mxu1 %v644_v57  ;;  %653 = vmatpush.msra.mxu0 %v644_v57  ;;  %v1829_v13 = vld [vmem:[%s3169_s2 + $0x1c8] sm:$0xff]  ;;  %v637_v14 = vld [vmem:[%s3169_s2 + $0x20] sm:$0xff]  ;;  %v636_v17 = vld [vmem:[%s3169_s2 + $0x18] sm:$0xff] }
  0x81   : > { %850 = vmatpush.msra.mxu2 %v1815_v61  ;;  %931 = vmatpush.msra.mxu3 %v1832_v4  ;;  %v1809_v15 = vld [vmem:[%s3169_s2 + $0x128] sm:$0xff]  ;;  %v1828_v16 = vld [vmem:[%s3169_s2 + $0x1c0] sm:$0xff]  ;;  %v1827_v19 = vld [vmem:[%s3169_s2 + $0x1b8] sm:$0xff] }
  0x82   : > { %1939 = vmatpush.msra.mxu1 %v643_v59  ;;  %654 = vmatpush.msra.mxu0 %v643_v59  ;;  %v1808_v18 = vld [vmem:[%s3169_s2 + $0x120] sm:$0xff]  ;;  %v635_v20 = vld [vmem:[%s3169_s2 + $0x10] sm:$0xff]  ;;  %v1807_v21 = vld [vmem:[%s3169_s2 + $0x118] sm:$0xff] }
  0x83   : > { %851 = vmatpush.msra.mxu2 %v1814_v0  ;;  %932 = vmatpush.msra.mxu3 %v1831_v7  ;;  %v1826_v22 = vld [vmem:[%s3169_s2 + $0x1b0] sm:$0xff]  ;;  %v634_v23 = vld [vmem:[%s3169_s2 + $0x8] sm:$0xff]  ;;  %v633_v26 = vld [vmem:[%s3169_s2] sm:$0xff] }
  0x84   : > { %1940 = vmatpush.msra.mxu1 %v642_v63  ;;  %655 = vmatpush.msra.mxu0 %v642_v63  ;;  %v1806_v24 = vld [vmem:[%s3169_s2 + $0x110] sm:$0xff]  ;;  %v1825_v25 = vld [vmem:[%s3169_s2 + $0x1a8] sm:$0xff]  ;;  %v2559_v28 = vld [vmem:[%s2555_s27 + $0x100] sm:$0xff] }
  0x85   : > { %852 = vmatpush.msra.mxu2 %v1813_v3  ;;  %933 = vmatpush.msra.mxu3 %v1830_v10  ;;  %v580_v27 = vld [vmem:[%s2555_s27 + $0x8] sm:$0x1]  ;;  %v579_v29 = vld [vmem:[%s2555_s27] sm:$0xff]  ;;  %v1803_v30 = vld [vmem:[%s3169_s2 + $0xf8] sm:$0xff] }
  0x86   : > { %1941 = vmatpush.msra.mxu1 %v641_v2  ;;  %656 = vmatpush.msra.mxu0 %v641_v2  ;;  %v1851_v31 = vld [vmem:[%s3169_s2 + $0x278] sm:$0xff]  ;;  %v797_v32 = vrot.slane %v579_v29, 1  ;;  %v1805_v33 = vld [vmem:[%s3169_s2 + $0x108] sm:$0xff]  ;;  %v798_v34 = vrot.slane %v580_v27, 1  ;;  %v1824_v35 = vld [vmem:[%s3169_s2 + $0x1a0] sm:$0xff] }
  0x87   : > { %853 = vmatpush.msra.mxu2 %v1812_v6  ;;  %934 = vmatpush.msra.mxu3 %v1829_v13  ;;  %v1802_v36 = vld [vmem:[%s3169_s2 + $0xf0] sm:$0xff]  ;;  %v1804_v38 = vld [vmem:[%s3169_s2 + $0x100] sm:$0xff]  ;;  %v1823_v39 = vld [vmem:[%s3169_s2 + $0x198] sm:$0xff] }
  0x88   : > { %1942 = vmatpush.msra.mxu1 %v640_v5  ;;  %657 = vmatpush.msra.mxu0 %v640_v5  ;;  %v1850_v37 = vld [vmem:[%s3169_s2 + $0x270] sm:$0xff]  ;;  %v1801_v40 = vld [vmem:[%s3169_s2 + $0xe8] sm:$0xff]  ;;  %v799_v42 = vsel %vm796_vm0, %v797_v32, %v798_v34  ;;  %v1800_v44 = vld [vmem:[%s3169_s2 + $0xe0] sm:$0xff] }
  0x89   : > { %854 = vmatpush.msra.mxu2 %v1811_v9  ;;  %935 = vmatpush.msra.mxu3 %v1828_v16  ;;  %v1849_v41 = vld [vmem:[%s3169_s2 + $0x268] sm:$0xff]  ;;  %v1822_v43 = vld [vmem:[%s3169_s2 + $0x190] sm:$0xff]  ;;  %v1848_v45 = vld [vmem:[%s3169_s2 + $0x260] sm:$0xff] }
  0x8a   : > { %1943 = vmatpush.msra.mxu1 %v639_v8  ;;  %658 = vmatpush.msra.mxu0 %v639_v8  ;;  %v586_v46 = vld [vmem:[%s2555_s27 + $0x48] sm:$0x1]  ;;  %v2605_v47 = vld [vmem:[%s2555_s27 + $0x140] sm:$0xff]  ;;  %v1799_v49 = vld [vmem:[%s3169_s2 + $0xd8] sm:$0xff] }
  0x8b   : > { %855 = vmatpush.msra.mxu2 %v1810_v12  ;;  %936 = vmatpush.msra.mxu3 %v1827_v19  ;;  %v2608_v48 = vld [vmem:[%s2555_s27 + $0x40] sm:$0xff]  ;;  %v1847_v50 = vld [vmem:[%s3169_s2 + $0x258] sm:$0xff]  ;;  %v801_v53 = vrot.slane %v586_v46, 1  ;;  %v1821_v54 = vld [vmem:[%s3169_s2 + $0x188] sm:$0xff] }
  0x8c   : > { %1944 = vmatpush.msra.mxu1 %v638_v11  ;;  %659 = vmatpush.msra.mxu0 %v638_v11  ;;  %v800_v51 = vrot.slane %v2608_v48, 1  ;;  %v1883_v52 = vld [vmem:[%s3169_s2 + $0x378] sm:$0xff]  ;;  %v1798_v55 = vld [vmem:[%s3169_s2 + $0xd0] sm:$0xff]  ;;  %v1820_v58 = vld [vmem:[%s3169_s2 + $0x180] sm:$0xff] }
  0x8d   : > { %856 = vmatpush.msra.mxu2 %v1809_v15  ;;  %937 = vmatpush.msra.mxu3 %v1826_v22  ;;  %v1846_v56 = vld [vmem:[%s3169_s2 + $0x250] sm:$0xff]  ;;  %v1797_v59 = vld [vmem:[%s3169_s2 + $0xc8] sm:$0xff]  ;;  %v2647_v62 = vld [vmem:[%s2555_s27 + $0x20] sm:$0xff] }
  0x8e   : > { %1945 = vmatpush.msra.mxu1 %v637_v14  ;;  %660 = vmatpush.msra.mxu0 %v637_v14  ;;  %v1882_v57 = vld [vmem:[%s3169_s2 + $0x370] sm:$0xff]  ;;  %v1845_v60 = vld [vmem:[%s3169_s2 + $0x248] sm:$0xff]  ;;  %v2644_v61 = vsel %vm796_vm0, %v800_v51, %v801_v53  ;;  %v1796_v63 = vld [vmem:[%s3169_s2 + $0xc0] sm:$0xff] }
  0x8f   : > { %857 = vmatpush.msra.mxu2 %v1808_v18  ;;  %938 = vmatpush.msra.mxu3 %v1825_v25  ;;  %v1844_v0 = vld [vmem:[%s3169_s2 + $0x240] sm:$0xff]  ;;  %v592_v1 = vld [vmem:[%s2555_s27 + $0x88] sm:$0x1]  ;;  %v1795_v4 = vld [vmem:[%s3169_s2 + $0xb8] sm:$0xff] }
  0x90   : > { %1946 = vmatpush.msra.mxu1 %v636_v17  ;;  %661 = vmatpush.msra.mxu0 %v636_v17  ;;  %v2657_v2 = vld [vmem:[%s2555_s27 + $0x180] sm:$0xff]  ;;  %v1843_v5 = vld [vmem:[%s3169_s2 + $0x238] sm:$0xff]  ;;  %v1881_v7 = vld [vmem:[%s3169_s2 + $0x368] sm:$0xff]  ;;  %v804_v9 = vrot.slane %v592_v1, 1 }
  0x91   : > { %858 = vmatpush.msra.mxu2 %v1807_v21  ;;  %939 = vmatpush.msra.mxu3 %v1824_v35  ;;  %v2660_v3 = vld [vmem:[%s2555_s27 + $0x80] sm:$0xff]  ;;  %v1899_v8 = vld [vmem:[%s3169_s2 + $0x3f8] sm:$0xff]  ;;  %v1794_v10 = vld [vmem:[%s3169_s2 + $0xb0] sm:$0xff] }
  0x92   : > { %1947 = vmatpush.msra.mxu1 %v635_v20  ;;  %662 = vmatpush.msra.mxu0 %v635_v20  ;;  %v803_v6 = vrot.slane %v2660_v3, 1  ;;  %v1842_v11 = vld [vmem:[%s3169_s2 + $0x230] sm:$0xff]  ;;  %v1880_v12 = vld [vmem:[%s3169_s2 + $0x360] sm:$0xff]  ;;  %v1793_v14 = vld [vmem:[%s3169_s2 + $0xa8] sm:$0xff] }
  0x93   : > { %859 = vmatpush.msra.mxu2 %v1806_v24  ;;  %940 = vmatpush.msra.mxu3 %v1823_v39  ;;  %v1898_v13 = vld [vmem:[%s3169_s2 + $0x3f0] sm:$0xff]  ;;  %v1841_v15 = vld [vmem:[%s3169_s2 + $0x228] sm:$0xff]  ;;  %v2701_v17 = vld [vmem:[%s2555_s27 + $0x60] sm:$0xff] }
  0x94   : > { %1948 = vmatpush.msra.mxu1 %v634_v23  ;;  %663 = vmatpush.msra.mxu0 %v634_v23  ;;  %v2698_v16 = vsel %vm796_vm0, %v803_v6, %v804_v9  ;;  %v1792_v18 = vld [vmem:[%s3169_s2 + $0xa0] sm:$0xff]  ;;  %v598_v20 = vld [vmem:[%s2555_s27 + $0xc8] sm:$0x1]  ;;  %v1791_v23 = vld [vmem:[%s3169_s2 + $0x98] sm:$0xff] }
  0x95   : > { %860 = vmatpush.msra.mxu2 %v1805_v33  ;;  %941 = vmatpush.msra.mxu3 %v1822_v43  ;;  %v1840_v19 = vld [vmem:[%s3169_s2 + $0x220] sm:$0xff]  ;;  %v1839_v24 = vld [vmem:[%s3169_s2 + $0x218] sm:$0xff]  ;;  %v1897_v27 = vld [vmem:[%s3169_s2 + $0x3e8] sm:$0xff] }
  0x96   : > { %1949 = vmatpush.msra.mxu1 %v633_v26  ;;  %664 = vmatpush.msra.mxu0 %v633_v26  ;;  %v2711_v21 = vld [vmem:[%s2555_s27 + $0x1c0] sm:$0xff]  ;;  %v1879_v26 = vld [vmem:[%s3169_s2 + $0x358] sm:$0xff]  ;;  %v1878_v32 = vld [vmem:[%s3169_s2 + $0x350] sm:$0xff] }
  0x97   : > { %677 = vmatmul.f32.vlgmr.msra.gmra.mxu1 %v2559_v28  ;;  %665 = vmatmul.f32.vlgmr.msra.gmra.mxu0 %v579_v29  ;;  %v2714_v22 = vld [vmem:[%s2555_s27 + $0xc0] sm:$0xff]  ;;  %v807_v29 = vrot.slane %v598_v20, 1  ;;  %v1789_v34 = vld [vmem:[%s3169_s2 + $0x88] sm:$0xff]  ;;  %v1867_v43 = vld [vmem:[%s3169_s2 + $0x2f8] sm:$0xff] }
  0x98   : > { %715 = vmatpush.msrb.mxu1 %v1803_v30  ;;  %1010 = vmatpush.msrb.mxu0 %v1851_v31  ;;  %v806_v25 = vrot.slane %v2714_v22, 1  ;;  %v1790_v30 = vld [vmem:[%s3169_s2 + $0x90] sm:$0xff]  ;;  %v1896_v33 = vld [vmem:[%s3169_s2 + $0x3e0] sm:$0xff]  ;;  %v1837_v35 = vld [vmem:[%s3169_s2 + $0x208] sm:$0xff] }
  0x99   : > { %861 = vmatpush.msra.mxu2 %v1804_v38  ;;  %942 = vmatpush.msra.mxu3 %v1821_v54  ;;  %v1838_v31 = vld [vmem:[%s3169_s2 + $0x210] sm:$0xff]  ;;  %v1788_v38 = vld [vmem:[%s3169_s2 + $0x80] sm:$0xff]  ;;  %v1895_v46 = vld [vmem:[%s3169_s2 + $0x3d8] sm:$0xff] }
  0x9a   : > { %716 = vmatpush.msrb.mxu1 %v1802_v36  ;;  %1011 = vmatpush.msrb.mxu0 %v1850_v37  ;;  %v2752_v36 = vsel %vm796_vm0, %v806_v25, %v807_v29  ;;  %v2755_v37 = vld [vmem:[%s2555_s27 + $0xa0] sm:$0xff]  ;;  %v1866_v51 = vld [vmem:[%s3169_s2 + $0x2f0] sm:$0xff]  ;;  %v1865_v54 = vld [vmem:[%s3169_s2 + $0x2e8] sm:$0xff]  ;;  %v815_v29 = vrot.slane %v2657_v2, 1 }
  0x9b   : > { %862 = vmatmul.f32.vlgmr.msra.gmra.mxu2 %v799_v42  ;;  %943 = vmatpush.msra.mxu3 %v1820_v58  ;;  %v1836_v39 = vld [vmem:[%s3169_s2 + $0x200] sm:$0xff]  ;;  %v584_v42 = vld [vmem:[%s2555_s27 + $0x30] sm:$0xff]  ;;  %v1863_v1 = vld [vmem:[%s3169_s2 + $0x2d8] sm:$0xff] }
  0x9c   : > { %717 = vmatpush.msrb.mxu1 %v1801_v40  ;;  %1012 = vmatpush.msrb.mxu0 %v1849_v41  ;;  %v604_v40 = vld [vmem:[%s2555_s27 + $0x108] sm:$0x1]  ;;  %v581_v41 = vld [vmem:[%s2555_s27 + $0x10] sm:$0xff]  ;;  %v1864_v58 = vld [vmem:[%s3169_s2 + $0x2e0] sm:$0xff] }
  0x9d   : > { %1222 = vmatpush.msrb.mxu2 %v1883_v52  ;;  %944 = vmatmul.f32.vlgmr.msra.gmra.mxu3 %v2647_v62  ;;  %v1894_v52 = vld [vmem:[%s3169_s2 + $0x3d0] sm:$0xff]  ;;  %v616_v20 = vld [vmem:[%s2555_s27 + $0x188] sm:$0x1] }
  0x9e   : > { %718 = vmatpush.msrb.mxu1 %v1800_v44  ;;  %1013 = vmatpush.msrb.mxu0 %v1848_v45  ;;  %v1877_v44 = vld [vmem:[%s3169_s2 + $0x348] sm:$0xff]  ;;  %v809_v45 = vrot.slane %v2559_v28, 1  ;;  %v1876_v28 = vld [vmem:[%s3169_s2 + $0x340] sm:$0xff]  ;;  %v2795_v53 = vld [vmem:[%s3169_s2 + $0x470] sm:$0xff] }
  0x9f   : > { %680 = vmatmul.f32.gmra.mxu1 %v2605_v47  ;;  %668 = vmatmul.f32.gmra.mxu0 %v2608_v48  ;;  %v1862_v9 = vld [vmem:[%s3169_s2 + $0x2d0] sm:$0xff] }
  0xa0   : > { %719 = vmatpush.msrb.mxu1 %v1799_v49  ;;  %1014 = vmatpush.msrb.mxu0 %v1847_v50  ;;  %v810_v49 = vrot.slane %v604_v40, 1  ;;  %v2781_v50 = vld [vmem:[%s3169_s2 + $0x478] sm:$0xff]  ;;  %v596_v25 = vld [vmem:[%s2555_s27 + $0xb0] sm:$0xff]  ;;  %v1888_v40 = vld [vmem:[%s3169_s2 + $0x3a0] sm:$0xff] }
  0xa1   : > { %1223 = vmatpush.msrb.mxu2 %v1882_v57  ;;  %1304 = vmatpush.msrb.mxu3 %v1899_v8  ;;  %v2806_v57 = vld [vmem:[%s2555_s27 + $0xe0] sm:$0xff]  ;;  %v2834_v8 = vld [vmem:[%s3169_s2 + $0x468] sm:$0xff] }
  0xa2   : > { %720 = vmatpush.msrb.mxu1 %v1798_v55  ;;  %1015 = vmatpush.msrb.mxu0 %v1846_v56  ;;  %v1875_v55 = vld [vmem:[%s3169_s2 + $0x338] sm:$0xff]  ;;  %v811_v56 = vsel %vm796_vm0, %v809_v45, %v810_v49  ;;  %v1856_v45 = vld [vmem:[%s3169_s2 + $0x2a0] sm:$0xff]  ;;  %v602_v49 = vld [vmem:[%s2555_s27 + $0xf0] sm:$0xff] }
  0xa3   : > { %865 = vmatmul.f32.gmra.mxu2 %v2644_v61  ;;  %1305 = vmatpush.msrb.mxu3 %v1898_v13  ;;  %v1861_v13 = vld [vmem:[%s3169_s2 + $0x2c8] sm:$0xff] }
  0xa4   : > { %721 = vmatpush.msrb.mxu1 %v1797_v59  ;;  %1016 = vmatpush.msrb.mxu0 %v1845_v60  ;;  %v1874_v59 = vld [vmem:[%s3169_s2 + $0x330] sm:$0xff]  ;;  %v610_v60 = vld [vmem:[%s2555_s27 + $0x148] sm:$0x1] }
  0xa5   : > { %1224 = vmatpush.msrb.mxu2 %v1881_v7  ;;  %947 = vmatmul.f32.gmra.mxu3 %v2701_v17  ;;  %v813_v6 = vrot.slane %v610_v60, 1  ;;  %v1873_v7 = vld [vmem:[%s3169_s2 + $0x328] sm:$0xff]  ;;  %v1854_v60 = vld [vmem:[%s3169_s2 + $0x290] sm:$0xff] }
  0xa6   : > { %722 = vmatpush.msrb.mxu1 %v1796_v63  ;;  %1017 = vmatpush.msrb.mxu0 %v1844_v0  ;;  %v2817_v63 = vld [vmem:[%s2555_s27 + $0x50] sm:$0xff] }
  0xa7   : > { %683 = vmatmul.f32.gmra.mxu1 %v2657_v2  ;;  %671 = vmatmul.f32.gmra.mxu0 %v2660_v3  ;;  %v590_v0 = vld [vmem:[%s2555_s27 + $0x70] sm:$0xff] }
  0xa8   : > { %723 = vmatpush.msrb.mxu1 %v1795_v4  ;;  %1018 = vmatpush.msrb.mxu0 %v1843_v5  ;;  %v1893_v4 = vld [vmem:[%s3169_s2 + $0x3c8] sm:$0xff]  ;;  %v812_v5 = vrot.slane %v2605_v47, 1 }
  0xa9   : > { %1225 = vmatpush.msrb.mxu2 %v1880_v12  ;;  %1306 = vmatpush.msrb.mxu3 %v1897_v27  ;;  %v2849_v12 = vld [vmem:[%s3169_s2 + $0x460] sm:$0xff]  ;;  %v1890_v27 = vld [vmem:[%s3169_s2 + $0x3b0] sm:$0xff] }
  0xaa   : > { %724 = vmatpush.msrb.mxu1 %v1794_v10  ;;  %1019 = vmatpush.msrb.mxu0 %v1842_v11  ;;  %v1892_v10 = vld [vmem:[%s3169_s2 + $0x3c0] sm:$0xff] }
  0xab   : > { %868 = vmatmul.f32.gmra.mxu2 %v2698_v16  ;;  %1307 = vmatpush.msrb.mxu3 %v1896_v33  ;;  %v1872_v11 = vld [vmem:[%s3169_s2 + $0x320] sm:$0xff]  ;;  %v1858_v33 = vld [vmem:[%s3169_s2 + $0x2b0] sm:$0xff] }
  0xac   : > { %725 = vmatpush.msrb.mxu1 %v1793_v14  ;;  %1020 = vmatpush.msrb.mxu0 %v1841_v15  ;;  %v1891_v14 = vld [vmem:[%s3169_s2 + $0x3b8] sm:$0xff]  ;;  %v2859_v15 = vsel %vm796_vm0, %v812_v5, %v813_v6  ;;  %v1906_v5 = vld [vmem:[%s3169_s2 + $0x430] sm:$0xff]  ;;  %v1853_v6 = vld [vmem:[%s3169_s2 + $0x288] sm:$0xff] }
  0xad   : > { %1226 = vmatpush.msrb.mxu2 %v1879_v26  ;;  %950 = vmatmul.f32.gmra.mxu3 %v2755_v37  ;;  %v1859_v26 = vld [vmem:[%s3169_s2 + $0x2b8] sm:$0xff] }
  0xae   : > { %726 = vmatpush.msrb.mxu1 %v1792_v18  ;;  %1021 = vmatpush.msrb.mxu0 %v1840_v19  ;;  %v2862_v18 = vld [vmem:[%s2555_s27 + $0x120] sm:$0xff] }
  0xaf   : > { %686 = vmatmul.f32.gmra.mxu1 %v2711_v21  ;;  %674 = vmatmul.f32.gmra.mxu0 %v2714_v22  ;;  %v1860_v19 = vld [vmem:[%s3169_s2 + $0x2c0] sm:$0xff] }
  0xb0   : > { %727 = vmatpush.msrb.mxu1 %v1791_v23  ;;  %1022 = vmatpush.msrb.mxu0 %v1839_v24  ;;  %v1871_v23 = vld [vmem:[%s3169_s2 + $0x318] sm:$0xff]  ;;  %v2873_v24 = vld [vmem:[%s2555_s27 + $0x90] sm:$0xff] }
  0xb1   : > { %1227 = vmatpush.msrb.mxu2 %v1878_v32  ;;  %1308 = vmatpush.msrb.mxu3 %v1895_v46  ;;  %v1870_v32 = vld [vmem:[%s3169_s2 + $0x310] sm:$0xff] }
  0xb2   : > { %728 = vmatpush.msrb.mxu1 %v1790_v30  ;;  %1023 = vmatpush.msrb.mxu0 %v1838_v31  ;;  %v816_v30 = vrot.slane %v616_v20, 1  ;;  %v2888_v31 = vld [vmem:[%s3169_s2 + $0x458] sm:$0xff]  ;;  %v2932_v46 = vld [vmem:[%s2555_s27 + $0xd0] sm:$0xff]  ;;  %v1901_v20 = vld [vmem:[%s3169_s2 + $0x408] sm:$0xff] }
  0xb3   : > { %871 = vmatmul.f32.gmra.mxu2 %v2752_v36  ;;  %1309 = vmatpush.msrb.mxu3 %v1894_v52  ;;  %v818_v52 = vrot.slane %v2711_v21, 1 }
  0xb4   : > { %729 = vmatpush.msrb.mxu1 %v1789_v34  ;;  %1024 = vmatpush.msrb.mxu0 %v1837_v35  ;;  %v1889_v34 = vld [vmem:[%s3169_s2 + $0x3a8] sm:$0xff]  ;;  %v2903_v35 = vld [vmem:[%s3169_s2 + $0x450] sm:$0xff] }
  0xb5   : > { %1228 = vmatpush.msrb.mxu2 %v1877_v44  ;;  %953 = vmatmul.f32.gmra.mxu3 %v2806_v57  ;;  %v2926_v44 = vld [vmem:[%s3169_s2 + $0x448] sm:$0xff] }
  0xb6   : > { %730 = vmatpush.msrb.mxu1 %v1788_v38  ;;  %1025 = vmatpush.msrb.mxu0 %v1836_v39  ;;  %v1869_v38 = vld [vmem:[%s3169_s2 + $0x308] sm:$0xff] }
  0xb7   : > { %731 = vmatmul.f32.vlgmr.msrb.gmra.mxu1 %v581_v41  ;;  %1026 = vmatmul.f32.vlgmr.msrb.gmra.mxu0 %v584_v42  ;;  %v1857_v39 = vld [vmem:[%s3169_s2 + $0x2a8] sm:$0xff]  ;;  %v2916_v41 = vsel %vm796_vm0, %v815_v29, %v816_v30  ;;  %v2919_v42 = vld [vmem:[%s2555_s27 + $0x160] sm:$0xff] }
  0xb8   : > { %1140 = vmatpush.msra.mxu1 %v1867_v43  ;;  %1398 = vmatpush.msra.mxu0 %v2781_v50  ;;  %v622_v43 = vld [vmem:[%s2555_s27 + $0x1c8] sm:$0x1]  ;;  %v627_v30 = vld [vmem:[%s3032_s15] sm:$0xff] }
  0xb9   : > { %1229 = vmatpush.msrb.mxu2 %v1876_v28  ;;  %1310 = vmatpush.msrb.mxu3 %v1893_v4  ;;  %v1887_v28 = vld [vmem:[%s3169_s2 + $0x398] sm:$0xff]  ;;  %v2968_v4 = vld [vmem:[%s2555_s27 + $0x1a0] sm:$0xff]  ;;  %v583_v29 = vld [vmem:[%s2555_s27 + $0x28] sm:$0x1] }
  0xba   : > { %1141 = vmatpush.msra.mxu1 %v1866_v51  ;;  %1399 = vmatpush.msra.mxu0 %v2795_v53  ;;  %v1868_v51 = vld [vmem:[%s3169_s2 + $0x300] sm:$0xff] }
  0xbb   : > { %1230 = vmatpush.msrb.mxu2 %v1875_v55  ;;  %1311 = vmatpush.msrb.mxu3 %v1892_v10  ;;  %v1908_v55 = vld [vmem:[%s3169_s2 + $0x440] sm:$0xff]  ;;  %v1905_v10 = vld [vmem:[%s3169_s2 + $0x428] sm:$0xff] }
  0xbc   : > { %1142 = vmatpush.msra.mxu1 %v1865_v54  ;;  %874 = vmatmul.f32.gmra.mxu2 %v811_v56  ;;  %v819_v54 = vrot.slane %v622_v43, 1  ;;  %v1855_v56 = vld [vmem:[%s3169_s2 + $0x298] sm:$0xff] }
  0xbd   : > { %1231 = vmatpush.msrb.mxu2 %v1874_v59  ;;  %1400 = vmatpush.msra.mxu0 %v2834_v8  ;;  %v1907_v59 = vld [vmem:[%s3169_s2 + $0x438] sm:$0xff] }
  0xbe   : > { %1143 = vmatpush.msra.mxu1 %v1864_v58  ;;  %1312 = vmatpush.msrb.mxu3 %v1891_v14  ;;  %v1886_v58 = vld [vmem:[%s3169_s2 + $0x390] sm:$0xff]  ;;  %v1903_v14 = vld [vmem:[%s3169_s2 + $0x418] sm:$0xff] }
  0xbf   : > { %734 = vmatmul.f32.gmra.mxu1 %v2817_v63  ;;  %1029 = vmatmul.f32.gmra.mxu0 %v590_v0  ;;  %v1885_v0 = vld [vmem:[%s3169_s2 + $0x388] sm:$0xff] }
  0xc0   : > { %1144 = vmatpush.msra.mxu1 %v1863_v1  ;;  %1232 = vmatpush.msrb.mxu2 %v1873_v7  ;;  %v2965_v1 = vsel %vm796_vm0, %v818_v52, %v819_v54  ;;  %v605_v7 = vld [vmem:[%s2555_s27 + $0x110] sm:$0xff] }
  0xc1   : > { %1401 = vmatpush.msra.mxu0 %v2849_v12  ;;  %956 = vmatmul.f32.gmra.mxu3 %v2862_v18  ;;  %v632_v54 = vld [vmem:[%s3032_s15 + $0x50] sm:$0xff] }
  0xc2   : > { %1145 = vmatpush.msra.mxu1 %v1862_v9  ;;  %1233 = vmatpush.msrb.mxu2 %v1872_v11  ;;  %v608_v9 = vld [vmem:[%s2555_s27 + $0x130] sm:$0xff]  ;;  %v1904_v11 = vld [vmem:[%s3169_s2 + $0x420] sm:$0xff] }
  0xc3   : > { %1313 = vmatpush.msrb.mxu3 %v1890_v27  ;;  %1402 = vmatpush.msra.mxu0 %v2888_v31  ;;  %v626_v27 = vld [vmem:[%s2555_s27 + $0x1f0] sm:$0xff] }
  0xc4   : > { %1146 = vmatpush.msra.mxu1 %v1861_v13  ;;  %877 = vmatmul.f32.gmra.mxu2 %v2859_v15  ;;  %v2996_v13 = vld [vmem:[%s2555_s27 + $0x1e0] sm:$0xff] }
  0xc5   : > { %1234 = vmatpush.msrb.mxu2 %v1871_v23  ;;  %1314 = vmatpush.msrb.mxu3 %v1889_v34  ;;  %v617_v23 = vld [vmem:[%s2555_s27 + $0x190] sm:$0xff]  ;;  %v595_v34 = vld [vmem:[%s2555_s27 + $0xa8] sm:$0x1] }
  0xc6   : > { %1147 = vmatpush.msra.mxu1 %v1860_v19  ;;  %1403 = vmatpush.msra.mxu0 %v2903_v35  ;;  %v3003_v19 = vld [vmem:[%s2555_s27 + $0x150] sm:$0xff] }
  0xc7   : > { %737 = vmatmul.f32.gmra.mxu1 %v2873_v24  ;;  %1032 = vmatmul.f32.gmra.mxu0 %v596_v25  ;;  %v620_v25 = vld [vmem:[%s2555_s27 + $0x1b0] sm:$0xff] }
  0xc8   : > { %1148 = vmatpush.msra.mxu1 %v1859_v26  ;;  %1235 = vmatpush.msrb.mxu2 %v1870_v32  ;;  %v623_v26 = vld [vmem:[%s2555_s27 + $0x1d0] sm:$0xff]  ;;  %v589_v32 = vld [vmem:[%s2555_s27 + $0x68] sm:$0x1] }
  0xc9   : > { %1315 = vmatpush.msrb.mxu3 %v1888_v40  ;;  %1404 = vmatpush.msra.mxu0 %v2926_v44  ;;  %v1373_v40 = vrot.slane %v627_v30, 1 }
  0xca   : > { %1149 = vmatpush.msra.mxu1 %v1858_v33  ;;  %1236 = vmatpush.msrb.mxu2 %v1869_v38  ;;  %v1098_v38 = vrot.slane %v595_v34, 1 }
  0xcb   : > { %959 = vmatmul.f32.gmra.mxu3 %v2919_v42  ;;  %1405 = vmatpush.msra.mxu0 %v1908_v55 }
  0xcc   : > { %1150 = vmatpush.msra.mxu1 %v1857_v39  ;;  %880 = vmatmul.f32.gmra.mxu2 %v2916_v41  ;;  %v601_v39 = vld [vmem:[%s2555_s27 + $0xe8] sm:$0x1] }
  0xcd   : > { %1237 = vmatpush.msrb.mxu2 %v1868_v51  ;;  %1316 = vmatpush.msrb.mxu3 %v1887_v28  ;;  %v613_v28 = vld [vmem:[%s2555_s27 + $0x168] sm:$0x1] }
  0xce   : > { %1151 = vmatpush.msra.mxu1 %v1856_v45  ;;  %1406 = vmatpush.msra.mxu0 %v1907_v59  ;;  %v607_v45 = vld [vmem:[%s2555_s27 + $0x128] sm:$0x1]  ;;  %v1107_v52 = vrot.slane %v613_v28, 1 }
  0xcf   : > { %740 = vmatmul.f32.gmra.mxu1 %v2932_v46  ;;  %1035 = vmatmul.f32.gmra.mxu0 %v602_v49 }
  0xd0   : > { %1152 = vmatpush.msra.mxu1 %v1855_v56  ;;  %1950 = vmatpush.msra.mxu2 %v2781_v50  ;;  %v1884_v50 = vld [vmem:[%s3169_s2 + $0x380] sm:$0xff] }
  0xd1   : > { %1317 = vmatpush.msrb.mxu3 %v1886_v58  ;;  %1407 = vmatpush.msra.mxu0 %v1906_v5 }
  0xd2   : > { %1153 = vmatpush.msra.mxu1 %v1854_v60  ;;  %1951 = vmatpush.msra.mxu2 %v2795_v53  ;;  %v1852_v53 = vld [vmem:[%s3169_s2 + $0x280] sm:$0xff] }
  0xd3   : > { %1318 = vmatpush.msrb.mxu3 %v1885_v0  ;;  %1408 = vmatpush.msra.mxu0 %v1905_v10 }
  0xd4   : > { %883 = vmatmul.f32.gmra.mxu2 %v2965_v1  ;;  %962 = vmatmul.f32.gmra.mxu3 %v2968_v4 }
  0xd5   : > { %1154 = vmatpush.msra.mxu1 %v1853_v6  ;;  %1952 = vmatpush.msra.mxu2 %v2834_v8  ;;  %v614_v8 = vld [vmem:[%s2555_s27 + $0x170] sm:$0xff] }
  0xd6   : > { %1319 = vmatpush.msrb.mxu3 %v1884_v50  ;;  %1409 = vmatpush.msra.mxu0 %v1904_v11 }
  0xd7   : > { %743 = vmatmul.f32.gmra.mxu1 %v605_v7  ;;  %1038 = vmatmul.f32.gmra.mxu0 %v608_v9 }
  0xd8   : > { %1155 = vmatpush.msra.mxu1 %v1852_v53  ;;  %1953 = vmatpush.msra.mxu2 %v2849_v12  ;;  %v1902_v12 = vld [vmem:[%s3169_s2 + $0x410] sm:$0xff] }
  0xd9   : > { %1410 = vmatpush.msra.mxu0 %v1903_v14 }
  0xda   : > { %1954 = vmatpush.msra.mxu2 %v2888_v31 }
  0xdb   : > { %1411 = vmatpush.msra.mxu0 %v1902_v12 }
  0xdc   : > { %1238 = vmatmul.f32.vlgmr.msrb.gmra.mxu2 %v2608_v48  ;;  %965 = vmatmul.f32.gmra.mxu3 %v2996_v13  ;;  %v1900_v48 = vld [vmem:[%s3169_s2 + $0x400] sm:$0xff] }
  0xdd   : > { %1955 = vmatpush.msra.mxu2 %v2903_v35  ;;  %1412 = vmatpush.msra.mxu0 %v1901_v20  ;;  %v1097_v35 = vrot.slane %v2755_v37, 1 }
  0xdf   : > { %746 = vmatmul.f32.gmra.mxu1 %v3003_v19  ;;  %1041 = vmatmul.f32.gmra.mxu0 %v614_v8 }
  0xe0   : > { %1956 = vmatpush.msra.mxu2 %v2926_v44  ;;  %1413 = vmatpush.msra.mxu0 %v1900_v48 }
  0xe2   : > { %1957 = vmatpush.msra.mxu2 %v1908_v55  ;;  %v631_v55 = vld [vmem:[%s3032_s15 + $0x48] sm:$0x1] }
  0xe3   : > { %v1377_v0 = vrot.slane %v631_v55, 1 }
  0xe4   : > { %1958 = vmatpush.msra.mxu2 %v1907_v59  ;;  %1320 = vmatmul.f32.vlgmr.msrb.gmra.mxu3 %v2817_v63  ;;  %v1092_v63 = vrot.slane %v583_v29, 1  ;;  %v619_v59 = vld [vmem:[%s2555_s27 + $0x1a8] sm:$0x1] }
  0xe5   : > { %1241 = vmatmul.f32.gmra.mxu2 %v2660_v3  ;;  %v1091_v3 = vrot.slane %v2647_v62, 1  ;;  %v1094_v62 = vrot.slane %v2701_v17, 1  ;;  %v628_v17 = vld [vmem:[%s3032_s15 + $0x8] sm:$0x1] }
  0xe6   : > { %1959 = vmatpush.msra.mxu2 %v1906_v5  ;;  %v1374_v43 = vrot.slane %v628_v17, 1 }
  0xe7   : > { %749 = vmatmul.f32.gmra.mxu1 %v617_v23  ;;  %1044 = vmatmul.f32.gmra.mxu0 %v620_v25  ;;  %v1093_v31 = vsel %vm796_vm0, %v1091_v3, %v1092_v63 }
  0xe8   : > { %1960 = vmatpush.msra.mxu2 %v1905_v10  ;;  %v1375_v44 = vsel %vm796_vm0, %v1373_v40, %v1374_v43  ;;  %v625_v10 = vld [vmem:[%s2555_s27 + $0x1e8] sm:$0x1]  ;;  %s1786_s27 = sshll.u32 %s525_s11, 6  ;;  %s1787_s11 = sshll.u32 %s576_s17, 1 }
  0xe9   : > { %v1113_v53 = vrot.slane %v625_v10, 1  ;;  %s3108_s28 = scalar_lea.vmem [#allocation5], %s1786_s27  ;;  %s578_s30 = scalar_lea.vmem %s3171_s4, %s1787_s11 }
  0xea   : > { %1961 = vmatpush.msra.mxu2 %v1904_v11 }
  0xec   : > { %1962 = vmatpush.msra.mxu2 %v1903_v14  ;;  %1323 = vmatmul.f32.gmra.mxu3 %v2873_v24  ;;  %v629_v24 = vld [vmem:[%s3032_s15 + $0x10] sm:$0xff] }
  0xed   : > { %1244 = vmatmul.f32.gmra.mxu2 %v2714_v22  ;;  %v1095_v22 = vrot.slane %v589_v32, 1 }
  0xee   : > { %1963 = vmatpush.msra.mxu2 %v1902_v12 }
  0xef   : > { %752 = vmatmul.f32.gmra.mxu1 %v623_v26  ;;  %1047 = vmatmul.f32.gmra.mxu0 %v626_v27  ;;  %v1096_v33 = vsel %vm796_vm0, %v1094_v62, %v1095_v22 }
  0xf0   : > { %1964 = vmatpush.msra.mxu2 %v1901_v20 }
  0xf2   : > { %1965 = vmatpush.msra.mxu2 %v1900_v48 }
  0xf4   : > { %1326 = vmatmul.f32.gmra.mxu3 %v2932_v46 }
  0xf5   : > { %1247 = vmatmul.f32.gmra.mxu2 %v627_v30 }
  0xf7   : > { %1156 = vmatmul.f32.vlgmr.msra.gmra.mxu1 %v1093_v31  ;;  %1414 = vmatmul.f32.vlgmr.msra.gmra.mxu0 %v2644_v61  ;;  %v1099_v61 = vsel %vm796_vm0, %v1097_v35, %v1098_v38 }
  0xfc   : > { %1329 = vmatmul.f32.gmra.mxu3 %v629_v24 }
  0xfd   : > { %1250 = vmatmul.f32.gmra.mxu2 %v2605_v47  ;;  %v1100_v47 = vrot.slane %v2806_v57, 1  ;;  %v630_v57 = vld [vmem:[%s3032_s15 + $0x40] sm:$0xff] }
  0xfe   : > { %v1376_v60 = vrot.slane %v630_v57, 1 }
  0xff   : > { %1159 = vmatmul.f32.gmra.mxu1 %v1096_v33  ;;  %1417 = vmatmul.f32.gmra.mxu0 %v2698_v16  ;;  %v1101_v16 = vrot.slane %v601_v39, 1 }
 0x100   : > { %v1378_v6 = vsel %vm796_vm0, %v1376_v60, %v1377_v0 }
 0x101   : > { %v1102_v37 = vsel %vm796_vm0, %v1100_v47, %v1101_v16 }
 0x104   : > { %1332 = vmatmul.f32.gmra.mxu3 %v3003_v19 }
 0x105   : > { %1253 = vmatmul.f32.gmra.mxu2 %v2657_v2  ;;  %v1103_v2 = vrot.slane %v2862_v18, 1 }
 0x107   : > { %1162 = vmatmul.f32.gmra.mxu1 %v1099_v61  ;;  %1420 = vmatmul.f32.gmra.mxu0 %v2752_v36  ;;  %v1104_v36 = vrot.slane %v607_v45, 1 }
 0x109   : > { %v1105_v49 = vsel %vm796_vm0, %v1103_v2, %v1104_v36 }
 0x10c   : > { %1335 = vmatmul.f32.gmra.mxu3 %v617_v23 }
 0x10d   : > { %1256 = vmatmul.f32.gmra.mxu2 %v2711_v21  ;;  %v1106_v21 = vrot.slane %v2919_v42, 1  ;;  %v1110_v42 = vrot.slane %v619_v59, 1 }
 0x10f   : > { %1165 = vmatmul.f32.gmra.mxu1 %v1102_v37  ;;  %1423 = vmatmul.f32.gmra.mxu0 %v1375_v44  ;;  %v1108_v56 = vsel %vm796_vm0, %v1106_v21, %v1107_v52 }
 0x114   : > { %v3059_v46 = vpop.f32.mrf.mxu1  ;;  %v666_v51 = vpop.f32.mrf.mxu0  ;;  %1338 = vmatmul.f32.gmra.mxu3 %v623_v26 }
 0x115   : > { %1259 = vmatmul.f32.gmra.mxu2 %v630_v57 }
 0x117   : > { %1168 = vmatmul.f32.gmra.mxu1 %v1105_v49  ;;  %1426 = vmatmul.f32.gmra.mxu0 %v2859_v15  ;;  %v1109_v15 = vrot.slane %v2968_v4, 1 }
 0x119   : > { %v1111_v9 = vsel %vm796_vm0, %v1109_v15, %v1110_v42 }
 0x11c   : > { %v681_v18 = vpop.f32.mrf.mxu1  ;;  %v669_v58 = vpop.f32.mrf.mxu0  ;;  %1341 = vmatmul.f32.gmra.mxu3 %v632_v54 }
 0x11d   : > { %1432 = vmatmul.f32.vlgmr.msra.gmra.mxu2 %v2965_v1  ;;  %v1112_v1 = vrot.slane %v2996_v13, 1 }
 0x11e   : > { %v863_v5 = vpop.f32.mrf.mxu2 }
 0x11f   : > { %1171 = vmatmul.f32.gmra.mxu1 %v1108_v56  ;;  %1429 = vmatmul.f32.gmra.mxu0 %v2916_v41  ;;  %v1114_v41 = vsel %vm796_vm0, %v1112_v1, %v1113_v53 }
 0x120   : > { %v945_v14 = vpop.f32.mrf.mxu3 }
 0x124   : > { %v684_v7 = vpop.f32.mrf.mxu1  ;;  %v672_v50 = vpop.f32.mrf.mxu0 }
 0x125   : > { %1435 = vmatmul.f32.gmra.mxu2 %v1378_v6 }
 0x126   : > { %v866_v11 = vpop.f32.mrf.mxu2 }
 0x127   : > { %1174 = vmatmul.f32.gmra.mxu1 %v1111_v9 }
 0x128   : > { %v948_v12 = vpop.f32.mrf.mxu3 }
 0x12c   : > { %v687_v19 = vpop.f32.mrf.mxu1  ;;  %v675_v4 = vpop.f32.mrf.mxu0 }
 0x12e   : > { %v869_v8 = vpop.f32.mrf.mxu2 }
 0x12f   : > { %1177 = vmatmul.f32.gmra.mxu1 %v1114_v41 }
 0x130   : > { %v951_v27 = vpop.f32.mrf.mxu3 }
 0x134   : > { %v732_v20 = vpop.f32.mrf.mxu1  ;;  %v1027_v48 = vpop.f32.mrf.mxu0 }
 0x135   : > { %v764_v23 = vadd.f32 %v732_v20, %v666_v51 }
 0x136   : > { %v872_v26 = vpop.f32.mrf.mxu2 }
 0x137   : > { %v895_v25 = vadd.f32 %v863_v5, %v764_v23 }
 0x138   : > { %v3077_v31 = vpop.f32.mrf.mxu3 }
 0x139   : > { %v977_v0 = vadd.f32 %v945_v14, %v895_v25 }
 0x13b   : > { %v1059_v5 = vadd.f32 %v1027_v48, %v977_v0 }
 0x13c   : > { %v735_v29 = vpop.f32.mrf.mxu1  ;;  %v1030_v3 = vpop.f32.mrf.mxu0 }
 0x13d   : > { %v765_v63 = vadd.f32 %v735_v29, %v669_v58 }
 0x13f   : > { %v896_v13 = vadd.f32 %v866_v11, %v765_v63  ;;  %v875_v30 = vpop.f32.mrf.mxu2 }
 0x141   : > { %v978_v10 = vadd.f32 %v948_v12, %v896_v13 }
 0x143   : > { %v1060_v11 = vadd.f32 %v1030_v3, %v978_v10 }
 0x144   : > { %v738_v32 = vpop.f32.mrf.mxu1  ;;  %v1033_v62 = vpop.f32.mrf.mxu0 }
 0x145   : > { %v766_v22 = vadd.f32 %v738_v32, %v672_v50  ;;  %v3079_v34 = vpop.f32.mrf.mxu3 }
 0x147   : > { %v897_v24 = vadd.f32 %v869_v8, %v766_v22  ;;  %v878_v33 = vpop.f32.mrf.mxu2 }
 0x149   : > { %v979_v20 = vadd.f32 %v951_v27, %v897_v24 }
 0x14b   : > { %v1061_v25 = vadd.f32 %v1033_v62, %v979_v20 }
 0x14c   : > { %v741_v35 = vpop.f32.mrf.mxu1  ;;  %v3081_v38 = vpop.f32.mrf.mxu0 }
 0x14d   : > { %v767_v61 = vadd.f32 %v741_v35, %v675_v4 }
 0x14e   : > { %v3083_v47 = vpop.f32.mrf.mxu3 }
 0x14f   : > { %v898_v39 = vadd.f32 %v872_v26, %v767_v61  ;;  %v881_v17 = vpop.f32.mrf.mxu2 }
 0x154   : > { %v744_v40 = vpop.f32.mrf.mxu1  ;;  %v3085_v16 = vpop.f32.mrf.mxu0 }
 0x155   : > { %v768_v43 = vadd.f32 %v744_v40, %v3059_v46 }
 0x157   : > { %v3088_v37 = vadd.f32 %v875_v30, %v768_v43  ;;  %v884_v44 = vpop.f32.mrf.mxu2  ;;  %v3090_v45 = vpop.f32.mrf.mxu3 }
 0x15c   : > { %v747_v2 = vpop.f32.mrf.mxu1  ;;  %v3092_v36 = vpop.f32.mrf.mxu0 }
 0x15d   : > { %v769_v57 = vadd.f32 %v747_v2, %v681_v18 }
 0x15f   : > { %v3094_v49 = vadd.f32 %v878_v33, %v769_v57  ;;  %v1239_v51 = vpop.f32.mrf.mxu2  ;;  %v3096_v28 = vpop.f32.mrf.mxu3  ;;  %v980_v33 = vadd.f32 %v3077_v31, %v898_v39 }
 0x161   : > { %v1062_v24 = vadd.f32 %v3081_v38, %v980_v33 }
 0x164   : > { %v750_v21 = vpop.f32.mrf.mxu1  ;;  %v3098_v52 = vpop.f32.mrf.mxu0 }
 0x165   : > { %v770_v54 = vadd.f32 %v750_v21, %v684_v7 }
 0x167   : > { %v3100_v55 = vadd.f32 %v881_v17, %v770_v54  ;;  %v1321_v56 = vpop.f32.mrf.mxu3 }
 0x168   : > { %v1242_v46 = vpop.f32.mrf.mxu2 }
 0x16c   : > { %v753_v58 = vpop.f32.mrf.mxu1  ;;  %v3102_v59 = vpop.f32.mrf.mxu0 }
 0x16d   : > { %v771_v60 = vadd.f32 %v753_v58, %v687_v19 }
 0x16f   : > { %v3104_v18 = vadd.f32 %v884_v44, %v771_v60  ;;  %v1324_v42 = vpop.f32.mrf.mxu3 }
 0x170   : > { %v1245_v15 = vpop.f32.mrf.mxu2 }
 0x174   : > { %v1157_v6 = vpop.f32.mrf.mxu1  ;;  %v1415_v9 = vpop.f32.mrf.mxu0 }
 0x175   : > { %v1189_v50 = vadd.f32 %v1157_v6, %v1059_v5  ;;  %v982_v5 = vadd.f32 %v3083_v47, %v3094_v49 }
 0x177   : > { %v1271_v7 = vadd.f32 %v1239_v51, %v1189_v50  ;;  %v1327_v4 = vpop.f32.mrf.mxu3  ;;  %v981_v51 = vadd.f32 %v3079_v34, %v3088_v37  ;;  %v1064_v50 = vadd.f32 %v3092_v36, %v982_v5 }
 0x178   : > { %v1248_v1 = vpop.f32.mrf.mxu2 }
 0x179   : > { %v1353_v53 = vadd.f32 %v1321_v56, %v1271_v7  ;;  %v1063_v56 = vadd.f32 %v3085_v16, %v981_v51 }
 0x17b   : > { %v1447_v41 = vadd.f32 %v1415_v9, %v1353_v53 }
 0x17c   : > { %v1160_v8 = vpop.f32.mrf.mxu1  ;;  %v1418_v19 = vpop.f32.mrf.mxu0 }
 0x17d   : > { %1471 = vst [vmem:[%s3108_s28] sm:$0xff] %v1447_v41  ;;  %v1190_v14 = vadd.f32 %v1160_v8, %v1060_v11  ;;  %v1493_v3 = vmul.f32 %v1447_v41, %v1447_v41 }
 0x17f   : > { %v1272_v48 = vadd.f32 %v1242_v46, %v1190_v14  ;;  %v1330_v22 = vpop.f32.mrf.mxu3 }
 0x180   : > { %v1251_v23 = vpop.f32.mrf.mxu2 }
 0x181   : > { %v1354_v12 = vadd.f32 %v1324_v42, %v1272_v48 }
 0x183   : > { %v1448_v26 = vadd.f32 %v1418_v19, %v1354_v12 }
 0x184   : > { %v1163_v29 = vpop.f32.mrf.mxu1  ;;  %v1421_v63 = vpop.f32.mrf.mxu0 }
 0x185   : > { %1472 = vst [vmem:[%s3108_s28 + $0x8] sm:$0xff] %v1448_v26  ;;  %v1479_v13 = vadd.f32 %v1448_v26, %v1447_v41  ;;  %v1494_v30 = vmul.f32 %v1448_v26, %v1448_v26  ;;  %v1191_v32 = vadd.f32 %v1163_v29, %v1061_v25  ;;  %v983_v41 = vadd.f32 %v3090_v45, %v3100_v55 }
 0x186   : > { %v984_v26 = vadd.f32 %v3096_v28, %v3104_v18 }
 0x187   : > { %v1501_v35 = vadd.f32 %v1494_v30, %v1493_v3  ;;  %v1273_v61 = vadd.f32 %v1245_v15, %v1191_v32  ;;  %v1333_v31 = vpop.f32.mrf.mxu3  ;;  %v1065_v19 = vadd.f32 %v3098_v52, %v983_v41 }
 0x188   : > { %v1254_v17 = vpop.f32.mrf.mxu2 }
 0x189   : > { %v1355_v27 = vadd.f32 %v1327_v4, %v1273_v61 }
 0x18b   : > { %v1449_v40 = vadd.f32 %v1421_v63, %v1355_v27  ;;  %v1066_v63 = vadd.f32 %v3102_v59, %v984_v26 }
 0x18c   : > { %v1166_v62 = vpop.f32.mrf.mxu1  ;;  %v1424_v43 = vpop.f32.mrf.mxu0 }
 0x18d   : > { %1473 = vst [vmem:[%s3108_s28 + $0x10] sm:$0xff] %v1449_v40  ;;  %v1480_v44 = vadd.f32 %v1479_v13, %v1449_v40  ;;  %v1495_v2 = vmul.f32 %v1449_v40, %v1449_v40  ;;  %v1192_v57 = vadd.f32 %v1166_v62, %v1062_v24 }
 0x18f   : > { %v1502_v21 = vadd.f32 %v1501_v35, %v1495_v2  ;;  %v1274_v54 = vadd.f32 %v1248_v1, %v1192_v57  ;;  %v1336_v9 = vpop.f32.mrf.mxu3 }
 0x190   : > { %v1257_v46 = vpop.f32.mrf.mxu2 }
 0x191   : > { %v1356_v39 = vadd.f32 %v1330_v22, %v1274_v54 }
 0x193   : > { %v1450_v58 = vadd.f32 %v1424_v43, %v1356_v39 }
 0x194   : > { %v1169_v38 = vpop.f32.mrf.mxu1  ;;  %v1427_v42 = vpop.f32.mrf.mxu0 }
 0x195   : > { %1474 = vst [vmem:[%s3108_s28 + $0x18] sm:$0xff] %v1450_v58  ;;  %v1481_v60 = vadd.f32 %v1480_v44, %v1450_v58  ;;  %v1496_v0 = vmul.f32 %v1450_v58, %v1450_v58  ;;  %v1193_v15 = vadd.f32 %v1169_v38, %v1063_v56  ;;  %v1573_v56 = vld [vmem:[%s3108_s28 + $0x8] sm:$0xff] (%p2257_p8)  ;;  %v1575_v58 = vld [vmem:[%s3108_s28 + $0x10] sm:$0xff] (%p2257_p8) }
 0x196   : > { %1574 = vst [vmem:[%s1528_s9 + $0x8] sm:$0xff] (%p2257_p8), %v1573_v56 }
 0x197   : > { %v1503_v6 = vadd.f32 %v1502_v21, %v1496_v0  ;;  %v1275_v34 = vadd.f32 %v1251_v23, %v1193_v15  ;;  %v1339_v20 = vpop.f32.mrf.mxu3  ;;  %1576 = vst [vmem:[%s1528_s9 + $0x10] sm:$0xff] (%p2257_p8), %v1575_v58 }
 0x198   : > { %v1260_v7 = vpop.f32.mrf.mxu2 }
 0x199   : > { %v1357_v37 = vadd.f32 %v1333_v31, %v1275_v34 }
 0x19b   : > { %v1451_v10 = vadd.f32 %v1427_v42, %v1357_v37 }
 0x19c   : > { %v1172_v16 = vpop.f32.mrf.mxu1  ;;  %v1430_v47 = vpop.f32.mrf.mxu0  ;;  %v1577_v38 = vld [vmem:[%s3108_s28 + $0x18] sm:$0xff] (%p2257_p8) }
 0x19d   : > { %1475 = vst [vmem:[%s3108_s28 + $0x20] sm:$0xff] %v1451_v10  ;;  %v1482_v1 = vadd.f32 %v1481_v60, %v1451_v10  ;;  %v1497_v53 = vmul.f32 %v1451_v10, %v1451_v10  ;;  %v1194_v11 = vadd.f32 %v1172_v16, %v1064_v50 }
 0x19e   : > { %1578 = vst [vmem:[%s1528_s9 + $0x18] sm:$0xff] (%p2257_p8), %v1577_v38 }
 0x19f   : > { %v1504_v4 = vadd.f32 %v1503_v6, %v1497_v53  ;;  %v1276_v8 = vadd.f32 %v1254_v17, %v1194_v11  ;;  %v1342_v22 = vpop.f32.mrf.mxu3 }
 0x1a0   : > { %v1433_v25 = vpop.f32.mrf.mxu2 }
 0x1a1   : > { %v1358_v49 = vadd.f32 %v1336_v9, %v1276_v8 }
 0x1a3   : > { %v1452_v14 = vadd.f32 %v1430_v47, %v1358_v49 }
 0x1a4   : > { %v1175_v36 = vpop.f32.mrf.mxu1  ;;  %v1579_v60 = vld [vmem:[%s3108_s28 + $0x20] sm:$0xff] (%p2257_p8) }
 0x1a5   : > { %1476 = vst [vmem:[%s3108_s28 + $0x28] sm:$0xff] %v1452_v14  ;;  %v1483_v48 = vadd.f32 %v1482_v1, %v1452_v14  ;;  %v1498_v23 = vmul.f32 %v1452_v14, %v1452_v14  ;;  %v1195_v12 = vadd.f32 %v1175_v36, %v1065_v19 }
 0x1a6   : > { %1580 = vst [vmem:[%s1528_s9 + $0x40] sm:$0xff] (%p2257_p8), %v1579_v60 }
 0x1a7   : > { %v1505_v29 = vadd.f32 %v1504_v4, %v1498_v23  ;;  %v1277_v45 = vadd.f32 %v1257_v46, %v1195_v12  ;;  %v1571_v46 = vld [vmem:[%s3108_s28] sm:$0xff] (%p2257_p8) }
 0x1a8   : > { %v1436_v61 = vpop.f32.mrf.mxu2  ;;  %1572 = vst [vmem:[%s1528_s9] sm:$0xff] (%p2257_p8), %v1571_v46 }
 0x1a9   : > { %v1359_v55 = vadd.f32 %v1339_v20, %v1277_v45 }
 0x1ab   : > { %v1453_v52 = vadd.f32 %v1433_v25, %v1359_v55 }
 0x1ac   : > { %v1178_v3 = vpop.f32.mrf.mxu1  ;;  %v1581_v0 = vld [vmem:[%s3108_s28 + $0x28] sm:$0xff] (%p2257_p8) }
 0x1ad   : > { %1477 = vst [vmem:[%s3108_s28 + $0x30] sm:$0xff] %v1453_v52  ;;  %v1484_v13 = vadd.f32 %v1483_v48, %v1453_v52  ;;  %v1499_v30 = vmul.f32 %v1453_v52, %v1453_v52  ;;  %v1196_v32 = vadd.f32 %v1178_v3, %v1066_v63 }
 0x1ae   : > { %1582 = vst [vmem:[%s1528_s9 + $0x48] sm:$0xff] (%p2257_p8), %v1581_v0 }
 0x1af   : > { %v1506_v33 = vadd.f32 %v1505_v29, %v1499_v30  ;;  %v1278_v35 = vadd.f32 %v1260_v7, %v1196_v32 }
 0x1b1   : > { %v1360_v17 = vadd.f32 %v1342_v22, %v1278_v35 }
 0x1b3   : > { %v1454_v28 = vadd.f32 %v1436_v61, %v1360_v17 }
 0x1b4   : > { %v1583_v15 = vld [vmem:[%s3108_s28 + $0x30] sm:$0xff] (%p2257_p8) }
 0x1b5   : > { %1478 = vst [vmem:[%s3108_s28 + $0x38] sm:$0xff] %v1454_v28  ;;  %v1485_v18 = vadd.f32 %v1484_v13, %v1454_v28  ;;  %v1500_v27 = vmul.f32 %v1454_v28, %v1454_v28 }
 0x1b6   : > { %1584 = vst [vmem:[%s1528_s9 + $0x50] sm:$0xff] (%p2257_p8), %v1583_v15 }
 0x1b7   : > { %v1486_v24 = vrot.slane %v1485_v18, 4  ;;  %v1507_v40 = vadd.f32 %v1506_v33, %v1500_v27 }
 0x1b9   : > { %v1487_v59 = vadd.f32 %v1486_v24, %v1485_v18  ;;  %v1508_v62 = vrot.slane %v1507_v40, 4 }
 0x1bb   : > { %v1488_v43 = vrot.slane %v1487_v59, 2  ;;  %v1509_v44 = vadd.f32 %v1508_v62, %v1507_v40 }
 0x1bc   : > { %v1585_v42 = vld [vmem:[%s3108_s28 + $0x38] sm:$0xff] (%p2257_p8) }
 0x1bd   : > { %v1489_v2 = vadd.f32 %v1488_v43, %v1487_v59  ;;  %v1510_v57 = vrot.slane %v1509_v44, 2  ;;  %1586 = vst [vmem:[%s1528_s9 + $0x58] sm:$0xff] (%p2257_p8), %v1585_v42 }
 0x1bf   : > { %v1490_v51 = vrot.slane %v1489_v2, 1  ;;  %v1511_v21 = vadd.f32 %v1510_v57, %v1509_v44 }
 0x1c1   : > { %v1491_v54 = vadd.f32 %v1490_v51, %v1489_v2  ;;  %v1512_v31 = vrot.slane %v1511_v21, 1  ;;  %1525 = sbr.rel (!%p2257_p8) target bundleno = 454 (0x1c6), region = 126 }
 0x1c3   : > { %1492 = vst [vmem:[%s578_s30] sm:$0x1] %v1491_v54  ;;  %v1513_v39 = vadd.f32 %v1512_v31, %v1511_v21 }
 0x1c5   : > { %1514 = vst [vmem:[%s578_s30 + $0x1] sm:$0x1] %v1513_v39 }
 0x1c6 PF: > { %p12_p8 = scmp.ge.s32.totalorder %s2228_s21, 4   ;;  %s3181_s15 = smov %s2128_s16 }
 0x1c7   : > { %s3182_s16 = smov %s2252_s5  ;;  %s3183_s17 = smov %s2136_s18 }
 0x1c8   : > { %s3184_s18 = smov %s2238_s25  ;;  %s3185_s19 = smov %s2228_s21 }
 0x1c9   :  { %14 = sbr.rel (!%p12_p8) target bundleno = 5 (0x5), region = 253 }

</bundles_post_ra>
